<compile_context>
chip_gen: v6e
topology: v6e:2x2x1
jax: 0.10.0
libtpu: 0.0.40
codegen_flags: <defaults>
</compile_context>

<pallas_src>
import jax
import jax.numpy as jnp
import numpy as np
from jax.experimental import pallas as pl
from jax.experimental.pallas import tpu as pltpu

# ---------------- config consistent with Decoder.forward -----------------
SAMPLE_SIZE     = 16
PATCH_SIZE      = 4
CHANNELS        = 4
D_MODEL         = 32
N_HEADS         = 4
HEAD_DIM        = D_MODEL // N_HEADS
N_LAYERS        = 2
D_FF            = 4 * D_MODEL
LATENT_SIZE     = 8                                     # n_latents
LATENT_CHANNELS = 8
N_TOKENS        = (SAMPLE_SIZE // PATCH_SIZE) ** 2      # 16
N_TOTAL         = N_TOKENS + LATENT_SIZE                # 24
PATCH_DIM       = CHANNELS * PATCH_SIZE * PATCH_SIZE    # 64
OUT_PAD         = 128                                   # lane-dense output width
EPS             = 1e-5
BATCH           = 2


def _layer_norm(x, w, b):
    mu  = jnp.mean(x, axis=-1, keepdims=True)
    var = jnp.mean((x - mu) ** 2, axis=-1, keepdims=True)
    return (x - mu) * jax.lax.rsqrt(var + EPS) * w + b


# ------------------------------- Pallas kernel ---------------------------------
def _decoder_body(z_ref, xb_ref, mask,
                  w_in_ref, ln1_w_ref, ln1_b_ref,
                  w_proj_ref, b_proj_ref, b_o_ref,
                  ln2_w_ref, ln2_b_ref, w_m1_ref, b_m1_ref, w_m2_ref, b_m2_ref,
                  lnf_w_ref, lnf_b_ref, w_out_ref, b_out_ref,
                  o_ref):
    # x = (zero-padded z) @ W_in + (pos | img_tok+pos)  -- no concat, no scratch
    x = jnp.dot(z_ref[...], w_in_ref[...],
                preferred_element_type=jnp.float32) + xb_ref[...]
    scale = 1.0 / (HEAD_DIM ** 0.5)

    for l in range(N_LAYERS):
        # ---------------- self-attention (pre-LN, bidirectional) ----------------
        h = _layer_norm(x, ln1_w_ref[l], ln1_b_ref[l])
        # ONE fused projection matmul per layer: [ q(32) | k(32) | vo(128) ]
        proj = jnp.dot(h, w_proj_ref[l],
                       preferred_element_type=jnp.float32) + b_proj_ref[l]
        attn = None
        for hh in range(N_HEADS):
            qh  = proj[:, hh * HEAD_DIM:(hh + 1) * HEAD_DIM]
            kh  = proj[:, D_MODEL + hh * HEAD_DIM: D_MODEL + (hh + 1) * HEAD_DIM]
            voh = proj[:, 2 * D_MODEL + hh * D_MODEL:
                          2 * D_MODEL + (hh + 1) * D_MODEL]
            s = jax.lax.dot_general(qh, kh, (((1,), (1,)), ((), ())),
                                    preferred_element_type=jnp.float32) * scale
            if mask is not None:                 # static: dropped when bps == 1
                s = s + mask
            s = s - jnp.max(s, axis=-1, keepdims=True)
            p = jnp.exp(s)
            p = p * pl.reciprocal(jnp.sum(p, axis=-1, keepdims=True), approx=True)
            c = jnp.dot(p, voh, preferred_element_type=jnp.float32)     # (S, D)
            attn = c if attn is None else attn + c
        x = x + attn + b_o_ref[l]
        # -------------------------------- MLP -----------------------------------
        h = _layer_norm(x, ln2_w_ref[l], ln2_b_ref[l])
        h = jnp.dot(h, w_m1_ref[l], preferred_element_type=jnp.float32) + b_m1_ref[l]
        h = jax.nn.gelu(h, approximate=True)
        h = jnp.dot(h, w_m2_ref[l], preferred_element_type=jnp.float32) + b_m2_ref[l]
        x = x + h

    # drop latent rows (contiguous, sublane-aligned block), then proj_out
    n_lat = x.shape[0] - o_ref.shape[0]          # = bps * LATENT_SIZE (static)
    xi = x[n_lat:, :]
    xi = _layer_norm(xi, lnf_w_ref[...], lnf_b_ref[...])
    # 128-lane-dense store (w_out zero-padded 64 -> 128); glue slices to 64.
    o_ref[...] = jnp.dot(xi, w_out_ref[...],
                         preferred_element_type=jnp.float32) + b_out_ref[...]


def decoder_kernel_masked(z_ref, xb_ref, mask_ref, *rest):
    _decoder_body(z_ref, xb_ref, mask_ref[...], *rest)


def decoder_kernel_nomask(z_ref, xb_ref, *rest):
    _decoder_body(z_ref, xb_ref, None, *rest)


# ------------------------------- wrapper / glue ---------------------------------
PARAM_ORDER = ["w_in", "ln1_w", "ln1_b",
               "w_proj", "b_proj", "b_o",
               "ln2_w", "ln2_b", "w_m1", "b_m1", "w_m2", "b_m2",
               "lnf_w", "lnf_b", "w_out_pad", "b_out_pad"]


def init_params(key):
    ks = jax.random.split(key, 8)
    p = {}
    p["w_in"]    = jax.random.normal(ks[0], (LATENT_CHANNELS, D_MODEL), jnp.float32) * 0.02
    p["img_tok"] = jax.random.normal(ks[1], (N_TOKENS, D_MODEL), jnp.float32) * 0.02
    p["pos"]     = jax.random.normal(ks[2], (N_TOTAL, D_MODEL), jnp.float32) * 0.02
    p["ln1_w"]   = jnp.ones((N_LAYERS, 1, D_MODEL), jnp.float32)
    p["ln1_b"]   = jnp.zeros((N_LAYERS, 1, D_MODEL), jnp.float32)
    p["w_qkv"]   = jax.random.normal(ks[3], (N_LAYERS, D_MODEL, 3 * D_MODEL), jnp.float32) * 0.02
    p["b_qkv"]   = jnp.zeros((N_LAYERS, 1, 3 * D_MODEL), jnp.float32)
    p["w_o"]     = jax.random.normal(ks[4], (N_LAYERS, D_MODEL, D_MODEL), jnp.float32) * 0.02
    p["b_o"]     = jnp.zeros((N_LAYERS, 1, D_MODEL), jnp.float32)
    p["ln2_w"]   = jnp.ones((N_LAYERS, 1, D_MODEL), jnp.float32)
    p["ln2_b"]   = jnp.zeros((N_LAYERS, 1, D_MODEL), jnp.float32)
    p["w_m1"]    = jax.random.normal(ks[5], (N_LAYERS, D_MODEL, D_FF), jnp.float32) * 0.02
    p["b_m1"]    = jnp.zeros((N_LAYERS, 1, D_FF), jnp.float32)
    p["w_m2"]    = jax.random.normal(ks[6], (N_LAYERS, D_FF, D_MODEL), jnp.float32) * 0.02
    p["b_m2"]    = jnp.zeros((N_LAYERS, 1, D_MODEL), jnp.float32)
    p["lnf_w"]   = jnp.ones((1, D_MODEL), jnp.float32)
    p["lnf_b"]   = jnp.zeros((1, D_MODEL), jnp.float32)
    p["w_out"]   = jax.random.normal(ks[7], (D_MODEL, PATCH_DIM), jnp.float32) * 0.02
    p["b_out"]   = jnp.zeros((1, PATCH_DIM), jnp.float32)
    return p


def prepare_params(p):
    """Fuse QKV + fold W_o into W_v; pad the output projection to 128 lanes."""
    pp = {k: p[k] for k in ("w_in", "ln1_w", "ln1_b", "b_o", "ln2_w", "ln2_b",
                            "w_m1", "b_m1", "w_m2", "b_m2", "lnf_w", "lnf_b")}
    w_q = p["w_qkv"][:, :, :D_MODEL]                            # (L, D, D)
    w_k = p["w_qkv"][:, :, D_MODEL:2 * D_MODEL]                 # (L, D, D)
    w_v = p["w_qkv"][:, :, 2 * D_MODEL:]                        # (L, D, D)
    b_q = p["b_qkv"][:, :, :D_MODEL]                            # (L, 1, D)
    b_k = p["b_qkv"][:, :, D_MODEL:2 * D_MODEL]
    b_v = p["b_qkv"][:, :, 2 * D_MODEL:]
    # W_vo_h = W_v_h @ W_o_h  (exact: no nonlinearity between V and W_o)
    w_v_h = w_v.reshape(N_LAYERS, D_MODEL, N_HEADS, HEAD_DIM)       # (L,D,H,HD)
    w_o_h = p["w_o"].reshape(N_LAYERS, N_HEADS, HEAD_DIM, D_MODEL)  # (L,H,HD,D)
    w_vo  = jnp.einsum('ldhe,lhef->lhdf', w_v_h, w_o_h)             # (L,H,D,D)
    w_vo  = jnp.transpose(w_vo, (0, 2, 1, 3)).reshape(
        N_LAYERS, D_MODEL, N_HEADS * D_MODEL)                       # (L,D,128)
    b_v_h = b_v.reshape(N_LAYERS, 1, N_HEADS, HEAD_DIM)
    b_vo  = jnp.einsum('lxhe,lhef->lhxf', b_v_h, w_o_h)             # (L,H,1,D)
    b_vo  = jnp.transpose(b_vo, (0, 2, 1, 3)).reshape(
        N_LAYERS, 1, N_HEADS * D_MODEL)                             # (L,1,128)
    pp["w_proj"] = jnp.concatenate([w_q, w_k, w_vo], axis=-1)       # (L, D, 192)
    pp["b_proj"] = jnp.concatenate([b_q, b_k, b_vo], axis=-1)       # (L, 1, 192)
    # lane-dense output projection: zero-pad 64 -> 128 lanes
    pp["w_out_pad"] = jnp.pad(p["w_out"], ((0, 0), (0, OUT_PAD - PATCH_DIM)))
    pp["b_out_pad"] = jnp.pad(p["b_out"], ((0, 0), (0, OUT_PAD - PATCH_DIM)))
    return pp


def build_static_inputs(p, bps):
    """Per-grid-step x_base (pos / img_tok+pos) and block-diagonal attn mask."""
    pos = p["pos"]
    lat_base = jnp.tile(pos[:LATENT_SIZE], (bps, 1))                   # (bps*LS, D)
    img_base = jnp.tile(p["img_tok"] + pos[LATENT_SIZE:], (bps, 1))    # (bps*NT, D)
    x_base = jnp.concatenate([lat_base, img_base], axis=0)             # (bps*N_TOTAL, D)
    if bps == 1:
        return x_base, None                      # mask is all-zero: drop it entirely
    row_batch = np.concatenate([np.repeat(np.arange(bps), LATENT_SIZE),
                                np.repeat(np.arange(bps), N_TOKENS)])
    mask = np.where(row_batch[:, None] == row_batch[None, :], 0.0, -1e9)
    return x_base, jnp.asarray(mask, dtype=jnp.float32)


def _full_spec(a):
    nd = a.ndim
    return pl.BlockSpec(a.shape, lambda g, _nd=nd: (0,) * _nd)


def _multi_tensorcore():
    """True if a parallel grid axis can be sharded across >1 TensorCore."""
    try:
        kind = jax.devices()[0].device_kind.lower()
    except Exception:
        return False
    return any(tag in kind for tag in ("v7", "v5p", "v4"))


def decoder_forward(z, p, bps=None):
    B = z.shape[0]
    if bps is None:
        if _multi_tensorcore() and B > 1:
            # one grid block per TensorCore; fold B/2 batches per block
            n_blocks = 2 if B % 2 == 0 else 1
            bps = B // n_blocks
        else:
            bps = B                               # single TC: fold the whole batch
    assert B % bps == 0
    n_blocks = B // bps
    S = bps * N_TOTAL

    pp = prepare_params(p)
    x_base, mask = build_static_inputs(p, bps)

    # zero-padded latents, token-type-major within each grid block
    z_lat = z.reshape(n_blocks, bps * LATENT_SIZE, LATENT_CHANNELS)
    z_pad = jnp.zeros((n_blocks, bps * N_TOKENS, LATENT_CHANNELS), z.dtype)
    z_full = jnp.concatenate([z_lat, z_pad], axis=1).reshape(n_blocks * S, LATENT_CHANNELS)

    in_specs = [pl.BlockSpec((S, LATENT_CHANNELS), lambda g: (g, 0)),
                _full_spec(x_base)]
    args = [z_full, x_base]
    if mask is not None:
        in_specs.append(_full_spec(mask))
        args.append(mask)
        kernel = decoder_kernel_masked
    else:
        kernel = decoder_kernel_nomask
    in_specs += [_full_spec(pp[k]) for k in PARAM_ORDER]
    args += [pp[k] for k in PARAM_ORDER]

    out = pl.pallas_call(
        kernel,
        out_shape=jax.ShapeDtypeStruct((B * N_TOKENS, OUT_PAD), jnp.float32),
        grid=(n_blocks,),
        in_specs=in_specs,
        out_specs=pl.BlockSpec((bps * N_TOKENS, OUT_PAD), lambda g: (g, 0)),
        compiler_params=pltpu.CompilerParams(dimension_semantics=("parallel",)),
    )(*args)

    tokens = out[:, :PATCH_DIM].reshape(B, N_TOKENS, PATCH_DIM)
    # un-patchify (glue): 'b (h w) (p1 p2 c) -> b c (h p1) (w p2)'  -> NCHW
    n_p = SAMPLE_SIZE // PATCH_SIZE
    img = tokens.reshape(B, n_p, n_p, PATCH_SIZE, PATCH_SIZE, CHANNELS)
    img = img.transpose(0, 5, 1, 3, 2, 4)
    return img.reshape(B, CHANNELS, SAMPLE_SIZE, SAMPLE_SIZE)


# ----------------------------- pure-JAX reference -------------------------------
def reference_forward(z, p):
    B = z.shape[0]

    def ln(x, w, b):
        mu = jnp.mean(x, -1, keepdims=True)
        var = jnp.mean((x - mu) ** 2, -1, keepdims=True)
        return (x - mu) * jax.lax.rsqrt(var + EPS) * w + b

    x = jnp.einsum('blc,cd->bld', z, p["w_in"])
    x = jnp.concatenate(
        [x, jnp.broadcast_to(p["img_tok"], (B,) + p["img_tok"].shape)], axis=1)
    x = x + p["pos"]
    for l in range(N_LAYERS):
        h = ln(x, p["ln1_w"][l], p["ln1_b"][l])
        qkv = jnp.einsum('bnd,de->bne', h, p["w_qkv"][l]) + p["b_qkv"][l]
        q, k, v = jnp.split(qkv, 3, axis=-1)
        q = q.reshape(B, N_TOTAL, N_HEADS, HEAD_DIM).transpose(0, 2, 1, 3)
        k = k.reshape(B, N_TOTAL, N_HEADS, HEAD_DIM).transpose(0, 2, 1, 3)
        v = v.reshape(B, N_TOTAL, N_HEADS, HEAD_DIM).transpose(0, 2, 1, 3)
        s = jnp.einsum('bhqd,bhkd->bhqk', q, k) / (HEAD_DIM ** 0.5)
        a = jax.nn.softmax(s, axis=-1)
        o = jnp.einsum('bhqk,bhkd->bhqd', a, v).transpose(0, 2, 1, 3)
        o = o.reshape(B, N_TOTAL, D_MODEL)
        x = x + jnp.einsum('bnd,de->bne', o, p["w_o"][l]) + p["b_o"][l]
        h = ln(x, p["ln2_w"][l], p["ln2_b"][l])
        h = jnp.einsum('bnd,df->bnf', h, p["w_m1"][l]) + p["b_m1"][l]
        h = jax.nn.gelu(h, approximate=True)
        h = jnp.einsum('bnf,fd->bnd', h, p["w_m2"][l]) + p["b_m2"][l]
        x = x + h
    xi = ln(x[:, LATENT_SIZE:], p["lnf_w"], p["lnf_b"])
    out = jnp.einsum('bnd,dp->bnp', xi, p["w_out"]) + p["b_out"]
    n_p = SAMPLE_SIZE // PATCH_SIZE
    img = out.reshape(B, n_p, n_p, PATCH_SIZE, PATCH_SIZE, CHANNELS)
    img = img.transpose(0, 5, 1, 3, 2, 4)
    return img.reshape(B, CHANNELS, SAMPLE_SIZE, SAMPLE_SIZE)


if __name__ == "__main__":
    key = jax.random.PRNGKey(0)
    kz, kp = jax.random.split(key)
    params = init_params(kp)
    z = jax.random.normal(kz, (BATCH, LATENT_SIZE, LATENT_CHANNELS), jnp.float32)

    ref = reference_forward(z, params)

    # auto-selected path (batch folded on single-TC chips, 2-way parallel on multi-TC)
    out = jax.block_until_ready(decoder_forward(z, params))
    assert out.shape == (BATCH, CHANNELS, SAMPLE_SIZE, SAMPLE_SIZE)
    np.testing.assert_allclose(np.asarray(out), np.asarray(ref), atol=2e-3, rtol=2e-3)

    # also validate both explicit batching paths (masked fold / per-batch no-mask)
    for bps in (BATCH, 1):
        out2 = jax.block_until_ready(decoder_forward(z, params, bps=bps))
        np.testing.assert_allclose(np.asarray(out2), np.asarray(ref), atol=2e-3, rtol=2e-3)

    print("KERNEL_OK")
</pallas_src>

<mosaic_0001>
module attributes {stable_mosaic.version = 11 : i64} {
  func.func @decoder_kernel_masked(%arg0: i32, %arg1: memref<48x8xf32, #tpu.memory_space<vmem>>, %arg2: memref<48x32xf32, #tpu.memory_space<vmem>>, %arg3: memref<48x48xf32, #tpu.memory_space<vmem>>, %arg4: memref<8x32xf32, #tpu.memory_space<vmem>>, %arg5: memref<2x1x32xf32, #tpu.memory_space<vmem>>, %arg6: memref<2x1x32xf32, #tpu.memory_space<vmem>>, %arg7: memref<2x32x192xf32, #tpu.memory_space<vmem>>, %arg8: memref<2x1x192xf32, #tpu.memory_space<vmem>>, %arg9: memref<2x1x32xf32, #tpu.memory_space<vmem>>, %arg10: memref<2x1x32xf32, #tpu.memory_space<vmem>>, %arg11: memref<2x1x32xf32, #tpu.memory_space<vmem>>, %arg12: memref<2x32x128xf32, #tpu.memory_space<vmem>>, %arg13: memref<2x1x128xf32, #tpu.memory_space<vmem>>, %arg14: memref<2x128x32xf32, #tpu.memory_space<vmem>>, %arg15: memref<2x1x32xf32, #tpu.memory_space<vmem>>, %arg16: memref<1x32xf32, #tpu.memory_space<vmem>>, %arg17: memref<1x32xf32, #tpu.memory_space<vmem>>, %arg18: memref<32x128xf32, #tpu.memory_space<vmem>>, %arg19: memref<1x128xf32, #tpu.memory_space<vmem>>, %arg20: memref<32x128xf32, #tpu.memory_space<vmem>>) attributes {dimension_semantics = [#tpu.dimension_semantics<parallel>], iteration_bounds = array<i64: 1>, scalar_prefetch = 0 : i64, scratch_operands = 0 : i64, tpu.core_type = #tpu.core_type<tc>, window_params = [{transform_indices = @transform_0, window_bounds = array<i64: 48, 8>}, {pipeline_mode = #tpu.pipeline_mode<synchronous>, transform_indices = @transform_1, window_bounds = array<i64: 48, 32>}, {pipeline_mode = #tpu.pipeline_mode<synchronous>, transform_indices = @transform_2, window_bounds = array<i64: 48, 48>}, {pipeline_mode = #tpu.pipeline_mode<synchronous>, transform_indices = @transform_3, window_bounds = array<i64: 8, 32>}, {pipeline_mode = #tpu.pipeline_mode<synchronous>, transform_indices = @transform_4, window_bounds = array<i64: 2, 1, 32>}, {pipeline_mode = #tpu.pipeline_mode<synchronous>, transform_indices = @transform_5, window_bounds = array<i64: 2, 1, 32>}, {pipeline_mode = #tpu.pipeline_mode<synchronous>, transform_indices = @transform_6, window_bounds = array<i64: 2, 32, 192>}, {pipeline_mode = #tpu.pipeline_mode<synchronous>, transform_indices = @transform_7, window_bounds = array<i64: 2, 1, 192>}, {pipeline_mode = #tpu.pipeline_mode<synchronous>, transform_indices = @transform_8, window_bounds = array<i64: 2, 1, 32>}, {pipeline_mode = #tpu.pipeline_mode<synchronous>, transform_indices = @transform_9, window_bounds = array<i64: 2, 1, 32>}, {pipeline_mode = #tpu.pipeline_mode<synchronous>, transform_indices = @transform_10, window_bounds = array<i64: 2, 1, 32>}, {pipeline_mode = #tpu.pipeline_mode<synchronous>, transform_indices = @transform_11, window_bounds = array<i64: 2, 32, 128>}, {pipeline_mode = #tpu.pipeline_mode<synchronous>, transform_indices = @transform_12, window_bounds = array<i64: 2, 1, 128>}, {pipeline_mode = #tpu.pipeline_mode<synchronous>, transform_indices = @transform_13, window_bounds = array<i64: 2, 128, 32>}, {pipeline_mode = #tpu.pipeline_mode<synchronous>, transform_indices = @transform_14, window_bounds = array<i64: 2, 1, 32>}, {pipeline_mode = #tpu.pipeline_mode<synchronous>, transform_indices = @transform_15, window_bounds = array<i64: 1, 32>}, {pipeline_mode = #tpu.pipeline_mode<synchronous>, transform_indices = @transform_16, window_bounds = array<i64: 1, 32>}, {pipeline_mode = #tpu.pipeline_mode<synchronous>, transform_indices = @transform_17, window_bounds = array<i64: 32, 128>}, {pipeline_mode = #tpu.pipeline_mode<synchronous>, transform_indices = @transform_18, window_bounds = array<i64: 1, 128>}, {transform_indices = @transform_19, window_bounds = array<i64: 32, 128>}]} {
    %c0 = arith.constant 0 : index
    %c0_0 = arith.constant 0 : index
    %0 = vector.load %arg3[%c0, %c0_0] : memref<48x48xf32, #tpu.memory_space<vmem>>, vector<48x48xf32>
    %c0_1 = arith.constant 0 : index
    %c0_2 = arith.constant 0 : index
    %1 = vector.load %arg1[%c0_1, %c0_2] : memref<48x8xf32, #tpu.memory_space<vmem>>, vector<48x8xf32>
    %c0_3 = arith.constant 0 : index
    %c0_4 = arith.constant 0 : index
    %2 = vector.load %arg4[%c0_3, %c0_4] : memref<8x32xf32, #tpu.memory_space<vmem>>, vector<8x32xf32>
    %cst = arith.constant dense<0.000000e+00> : vector<48x32xf32>
    %3 = tpu.matmul %1, %2, %cst {dimension_numbers = #tpu.dot_dimension_numbers<[1], [0], [0], [1], [0, 0, 1, 1], [], []>} : vector<48x8xf32>, vector<8x32xf32>, vector<48x32xf32> -> vector<48x32xf32>
    %c0_5 = arith.constant 0 : index
    %c0_6 = arith.constant 0 : index
    %4 = vector.load %arg2[%c0_5, %c0_6] : memref<48x32xf32, #tpu.memory_space<vmem>>, vector<48x32xf32>
    %5 = arith.addf %3, %4 : vector<48x32xf32>
    %c0_7 = arith.constant 0 : index
    %c0_8 = arith.constant 0 : index
    %c0_9 = arith.constant 0 : index
    %6 = vector.load %arg5[%c0_7, %c0_8, %c0_9] : memref<2x1x32xf32, #tpu.memory_space<vmem>>, vector<1x1x32xf32>
    %7 = vector.shape_cast %6 : vector<1x1x32xf32> to vector<1x32xf32>
    %c0_10 = arith.constant 0 : index
    %c0_11 = arith.constant 0 : index
    %c0_12 = arith.constant 0 : index
    %8 = vector.load %arg6[%c0_10, %c0_11, %c0_12] : memref<2x1x32xf32, #tpu.memory_space<vmem>>, vector<1x1x32xf32>
    %9 = vector.shape_cast %8 : vector<1x1x32xf32> to vector<1x32xf32>
    %cst_13 = arith.constant dense<0.000000e+00> : vector<48xf32>
    %10 = vector.multi_reduction <add>, %5, %cst_13 [1] : vector<48x32xf32> to vector<48xf32>
    %11 = vector.shape_cast %10 : vector<48xf32> to vector<48x1xf32>
    %cst_14 = arith.constant 3.200000e+01 : f32
    %12 = vector.broadcast %cst_14 : f32 to vector<48x1xf32>
    %13 = arith.divf %11, %12 : vector<48x1xf32>
    %14 = vector.broadcast %13 : vector<48x1xf32> to vector<48x32xf32>
    %15 = arith.subf %5, %14 : vector<48x32xf32>
    %16 = arith.mulf %15, %15 : vector<48x32xf32>
    %cst_15 = arith.constant dense<0.000000e+00> : vector<48xf32>
    %17 = vector.multi_reduction <add>, %16, %cst_15 [1] : vector<48x32xf32> to vector<48xf32>
    %18 = vector.shape_cast %17 : vector<48xf32> to vector<48x1xf32>
    %cst_16 = arith.constant 3.200000e+01 : f32
    %19 = vector.broadcast %cst_16 : f32 to vector<48x1xf32>
    %20 = arith.divf %18, %19 : vector<48x1xf32>
    %21 = vector.broadcast %13 : vector<48x1xf32> to vector<48x32xf32>
    %22 = arith.subf %5, %21 : vector<48x32xf32>
    %cst_17 = arith.constant 9.99999974E-6 : f32
    %23 = vector.broadcast %cst_17 : f32 to vector<48x1xf32>
    %24 = arith.addf %20, %23 : vector<48x1xf32>
    %25 = math.rsqrt %24 : vector<48x1xf32>
    %26 = vector.broadcast %25 : vector<48x1xf32> to vector<48x32xf32>
    %27 = arith.mulf %22, %26 : vector<48x32xf32>
    %28 = vector.broadcast %7 : vector<1x32xf32> to vector<48x32xf32>
    %29 = arith.mulf %27, %28 : vector<48x32xf32>
    %30 = vector.broadcast %9 : vector<1x32xf32> to vector<48x32xf32>
    %31 = arith.addf %29, %30 : vector<48x32xf32>
    %c0_18 = arith.constant 0 : index
    %c0_19 = arith.constant 0 : index
    %c0_20 = arith.constant 0 : index
    %32 = vector.load %arg7[%c0_18, %c0_19, %c0_20] : memref<2x32x192xf32, #tpu.memory_space<vmem>>, vector<1x32x192xf32>
    %33 = vector.shape_cast %32 : vector<1x32x192xf32> to vector<32x192xf32>
    %cst_21 = arith.constant dense<0.000000e+00> : vector<48x192xf32>
    %34 = tpu.matmul %31, %33, %cst_21 {dimension_numbers = #tpu.dot_dimension_numbers<[1], [0], [0], [1], [0, 0, 1, 1], [], []>} : vector<48x32xf32>, vector<32x192xf32>, vector<48x192xf32> -> vector<48x192xf32>
    %c0_22 = arith.constant 0 : index
    %c0_23 = arith.constant 0 : index
    %c0_24 = arith.constant 0 : index
    %35 = vector.load %arg8[%c0_22, %c0_23, %c0_24] : memref<2x1x192xf32, #tpu.memory_space<vmem>>, vector<1x1x192xf32>
    %36 = vector.shape_cast %35 : vector<1x1x192xf32> to vector<1x192xf32>
    %37 = vector.broadcast %36 : vector<1x192xf32> to vector<48x192xf32>
    %38 = arith.addf %34, %37 : vector<48x192xf32>
    %39 = vector.extract_strided_slice %38 {offsets = [0, 0], sizes = [48, 8], strides = [1, 1]} : vector<48x192xf32> to vector<48x8xf32>
    %40 = vector.extract_strided_slice %38 {offsets = [0, 32], sizes = [48, 8], strides = [1, 1]} : vector<48x192xf32> to vector<48x8xf32>
    %41 = vector.extract_strided_slice %38 {offsets = [0, 64], sizes = [48, 32], strides = [1, 1]} : vector<48x192xf32> to vector<48x32xf32>
    %cst_25 = arith.constant dense<0.000000e+00> : vector<48x48xf32>
    %42 = tpu.matmul %39, %40, %cst_25 {dimension_numbers = #tpu.dot_dimension_numbers<[1], [1], [0], [0], [0, 0, 1, 0], [], []>} : vector<48x8xf32>, vector<48x8xf32>, vector<48x48xf32> -> vector<48x48xf32>
    %cst_26 = arith.constant 0.353553385 : f32
    %43 = vector.broadcast %cst_26 : f32 to vector<48x48xf32>
    %44 = arith.mulf %42, %43 : vector<48x48xf32>
    %45 = arith.addf %44, %0 : vector<48x48xf32>
    %cst_27 = arith.constant dense<0xFF800000> : vector<48xf32>
    %46 = vector.multi_reduction <maximumf>, %45, %cst_27 [1] : vector<48x48xf32> to vector<48xf32>
    %47 = vector.shape_cast %46 : vector<48xf32> to vector<48x1xf32>
    %48 = vector.broadcast %47 : vector<48x1xf32> to vector<48x48xf32>
    %49 = arith.subf %45, %48 : vector<48x48xf32>
    %50 = math.exp %49 : vector<48x48xf32>
    %cst_28 = arith.constant dense<0.000000e+00> : vector<48xf32>
    %51 = vector.multi_reduction <add>, %50, %cst_28 [1] : vector<48x48xf32> to vector<48xf32>
    %52 = vector.shape_cast %51 : vector<48xf32> to vector<48x1xf32>
    %53 = tpu.reciprocal %52 {approx = true} : vector<48x1xf32> -> vector<48x1xf32>
    %54 = vector.broadcast %53 : vector<48x1xf32> to vector<48x48xf32>
    %55 = arith.mulf %50, %54 : vector<48x48xf32>
    %cst_29 = arith.constant dense<0.000000e+00> : vector<48x32xf32>
    %56 = tpu.matmul %55, %41, %cst_29 {dimension_numbers = #tpu.dot_dimension_numbers<[1], [0], [0], [1], [0, 0, 1, 1], [], []>} : vector<48x48xf32>, vector<48x32xf32>, vector<48x32xf32> -> vector<48x32xf32>
    %57 = vector.extract_strided_slice %38 {offsets = [0, 8], sizes = [48, 8], strides = [1, 1]} : vector<48x192xf32> to vector<48x8xf32>
    %58 = vector.extract_strided_slice %38 {offsets = [0, 40], sizes = [48, 8], strides = [1, 1]} : vector<48x192xf32> to vector<48x8xf32>
    %59 = vector.extract_strided_slice %38 {offsets = [0, 96], sizes = [48, 32], strides = [1, 1]} : vector<48x192xf32> to vector<48x32xf32>
    %cst_30 = arith.constant dense<0.000000e+00> : vector<48x48xf32>
    %60 = tpu.matmul %57, %58, %cst_30 {dimension_numbers = #tpu.dot_dimension_numbers<[1], [1], [0], [0], [0, 0, 1, 0], [], []>} : vector<48x8xf32>, vector<48x8xf32>, vector<48x48xf32> -> vector<48x48xf32>
    %cst_31 = arith.constant 0.353553385 : f32
    %61 = vector.broadcast %cst_31 : f32 to vector<48x48xf32>
    %62 = arith.mulf %60, %61 : vector<48x48xf32>
    %63 = arith.addf %62, %0 : vector<48x48xf32>
    %cst_32 = arith.constant dense<0xFF800000> : vector<48xf32>
    %64 = vector.multi_reduction <maximumf>, %63, %cst_32 [1] : vector<48x48xf32> to vector<48xf32>
    %65 = vector.shape_cast %64 : vector<48xf32> to vector<48x1xf32>
    %66 = vector.broadcast %65 : vector<48x1xf32> to vector<48x48xf32>
    %67 = arith.subf %63, %66 : vector<48x48xf32>
    %68 = math.exp %67 : vector<48x48xf32>
    %cst_33 = arith.constant dense<0.000000e+00> : vector<48xf32>
    %69 = vector.multi_reduction <add>, %68, %cst_33 [1] : vector<48x48xf32> to vector<48xf32>
    %70 = vector.shape_cast %69 : vector<48xf32> to vector<48x1xf32>
    %71 = tpu.reciprocal %70 {approx = true} : vector<48x1xf32> -> vector<48x1xf32>
    %72 = vector.broadcast %71 : vector<48x1xf32> to vector<48x48xf32>
    %73 = arith.mulf %68, %72 : vector<48x48xf32>
    %cst_34 = arith.constant dense<0.000000e+00> : vector<48x32xf32>
    %74 = tpu.matmul %73, %59, %cst_34 {dimension_numbers = #tpu.dot_dimension_numbers<[1], [0], [0], [1], [0, 0, 1, 1], [], []>} : vector<48x48xf32>, vector<48x32xf32>, vector<48x32xf32> -> vector<48x32xf32>
    %75 = arith.addf %56, %74 : vector<48x32xf32>
    %76 = vector.extract_strided_slice %38 {offsets = [0, 16], sizes = [48, 8], strides = [1, 1]} : vector<48x192xf32> to vector<48x8xf32>
    %77 = vector.extract_strided_slice %38 {offsets = [0, 48], sizes = [48, 8], strides = [1, 1]} : vector<48x192xf32> to vector<48x8xf32>
    %78 = vector.extract_strided_slice %38 {offsets = [0, 128], sizes = [48, 32], strides = [1, 1]} : vector<48x192xf32> to vector<48x32xf32>
    %cst_35 = arith.constant dense<0.000000e+00> : vector<48x48xf32>
    %79 = tpu.matmul %76, %77, %cst_35 {dimension_numbers = #tpu.dot_dimension_numbers<[1], [1], [0], [0], [0, 0, 1, 0], [], []>} : vector<48x8xf32>, vector<48x8xf32>, vector<48x48xf32> -> vector<48x48xf32>
    %cst_36 = arith.constant 0.353553385 : f32
    %80 = vector.broadcast %cst_36 : f32 to vector<48x48xf32>
    %81 = arith.mulf %79, %80 : vector<48x48xf32>
    %82 = arith.addf %81, %0 : vector<48x48xf32>
    %cst_37 = arith.constant dense<0xFF800000> : vector<48xf32>
    %83 = vector.multi_reduction <maximumf>, %82, %cst_37 [1] : vector<48x48xf32> to vector<48xf32>
    %84 = vector.shape_cast %83 : vector<48xf32> to vector<48x1xf32>
    %85 = vector.broadcast %84 : vector<48x1xf32> to vector<48x48xf32>
    %86 = arith.subf %82, %85 : vector<48x48xf32>
    %87 = math.exp %86 : vector<48x48xf32>
    %cst_38 = arith.constant dense<0.000000e+00> : vector<48xf32>
    %88 = vector.multi_reduction <add>, %87, %cst_38 [1] : vector<48x48xf32> to vector<48xf32>
    %89 = vector.shape_cast %88 : vector<48xf32> to vector<48x1xf32>
    %90 = tpu.reciprocal %89 {approx = true} : vector<48x1xf32> -> vector<48x1xf32>
    %91 = vector.broadcast %90 : vector<48x1xf32> to vector<48x48xf32>
    %92 = arith.mulf %87, %91 : vector<48x48xf32>
    %cst_39 = arith.constant dense<0.000000e+00> : vector<48x32xf32>
    %93 = tpu.matmul %92, %78, %cst_39 {dimension_numbers = #tpu.dot_dimension_numbers<[1], [0], [0], [1], [0, 0, 1, 1], [], []>} : vector<48x48xf32>, vector<48x32xf32>, vector<48x32xf32> -> vector<48x32xf32>
    %94 = arith.addf %75, %93 : vector<48x32xf32>
    %95 = vector.extract_strided_slice %38 {offsets = [0, 24], sizes = [48, 8], strides = [1, 1]} : vector<48x192xf32> to vector<48x8xf32>
    %96 = vector.extract_strided_slice %38 {offsets = [0, 56], sizes = [48, 8], strides = [1, 1]} : vector<48x192xf32> to vector<48x8xf32>
    %97 = vector.extract_strided_slice %38 {offsets = [0, 160], sizes = [48, 32], strides = [1, 1]} : vector<48x192xf32> to vector<48x32xf32>
    %cst_40 = arith.constant dense<0.000000e+00> : vector<48x48xf32>
    %98 = tpu.matmul %95, %96, %cst_40 {dimension_numbers = #tpu.dot_dimension_numbers<[1], [1], [0], [0], [0, 0, 1, 0], [], []>} : vector<48x8xf32>, vector<48x8xf32>, vector<48x48xf32> -> vector<48x48xf32>
    %cst_41 = arith.constant 0.353553385 : f32
    %99 = vector.broadcast %cst_41 : f32 to vector<48x48xf32>
    %100 = arith.mulf %98, %99 : vector<48x48xf32>
    %101 = arith.addf %100, %0 : vector<48x48xf32>
    %cst_42 = arith.constant dense<0xFF800000> : vector<48xf32>
    %102 = vector.multi_reduction <maximumf>, %101, %cst_42 [1] : vector<48x48xf32> to vector<48xf32>
    %103 = vector.shape_cast %102 : vector<48xf32> to vector<48x1xf32>
    %104 = vector.broadcast %103 : vector<48x1xf32> to vector<48x48xf32>
    %105 = arith.subf %101, %104 : vector<48x48xf32>
    %106 = math.exp %105 : vector<48x48xf32>
    %cst_43 = arith.constant dense<0.000000e+00> : vector<48xf32>
    %107 = vector.multi_reduction <add>, %106, %cst_43 [1] : vector<48x48xf32> to vector<48xf32>
    %108 = vector.shape_cast %107 : vector<48xf32> to vector<48x1xf32>
    %109 = tpu.reciprocal %108 {approx = true} : vector<48x1xf32> -> vector<48x1xf32>
    %110 = vector.broadcast %109 : vector<48x1xf32> to vector<48x48xf32>
    %111 = arith.mulf %106, %110 : vector<48x48xf32>
    %cst_44 = arith.constant dense<0.000000e+00> : vector<48x32xf32>
    %112 = tpu.matmul %111, %97, %cst_44 {dimension_numbers = #tpu.dot_dimension_numbers<[1], [0], [0], [1], [0, 0, 1, 1], [], []>} : vector<48x48xf32>, vector<48x32xf32>, vector<48x32xf32> -> vector<48x32xf32>
    %113 = arith.addf %94, %112 : vector<48x32xf32>
    %114 = arith.addf %5, %113 : vector<48x32xf32>
    %c0_45 = arith.constant 0 : index
    %c0_46 = arith.constant 0 : index
    %c0_47 = arith.constant 0 : index
    %115 = vector.load %arg9[%c0_45, %c0_46, %c0_47] : memref<2x1x32xf32, #tpu.memory_space<vmem>>, vector<1x1x32xf32>
    %116 = vector.shape_cast %115 : vector<1x1x32xf32> to vector<1x32xf32>
    %117 = vector.broadcast %116 : vector<1x32xf32> to vector<48x32xf32>
    %118 = arith.addf %114, %117 : vector<48x32xf32>
    %c0_48 = arith.constant 0 : index
    %c0_49 = arith.constant 0 : index
    %c0_50 = arith.constant 0 : index
    %119 = vector.load %arg10[%c0_48, %c0_49, %c0_50] : memref<2x1x32xf32, #tpu.memory_space<vmem>>, vector<1x1x32xf32>
    %120 = vector.shape_cast %119 : vector<1x1x32xf32> to vector<1x32xf32>
    %c0_51 = arith.constant 0 : index
    %c0_52 = arith.constant 0 : index
    %c0_53 = arith.constant 0 : index
    %121 = vector.load %arg11[%c0_51, %c0_52, %c0_53] : memref<2x1x32xf32, #tpu.memory_space<vmem>>, vector<1x1x32xf32>
    %122 = vector.shape_cast %121 : vector<1x1x32xf32> to vector<1x32xf32>
    %cst_54 = arith.constant dense<0.000000e+00> : vector<48xf32>
    %123 = vector.multi_reduction <add>, %118, %cst_54 [1] : vector<48x32xf32> to vector<48xf32>
    %124 = vector.shape_cast %123 : vector<48xf32> to vector<48x1xf32>
    %cst_55 = arith.constant 3.200000e+01 : f32
    %125 = vector.broadcast %cst_55 : f32 to vector<48x1xf32>
    %126 = arith.divf %124, %125 : vector<48x1xf32>
    %127 = vector.broadcast %126 : vector<48x1xf32> to vector<48x32xf32>
    %128 = arith.subf %118, %127 : vector<48x32xf32>
    %129 = arith.mulf %128, %128 : vector<48x32xf32>
    %cst_56 = arith.constant dense<0.000000e+00> : vector<48xf32>
    %130 = vector.multi_reduction <add>, %129, %cst_56 [1] : vector<48x32xf32> to vector<48xf32>
    %131 = vector.shape_cast %130 : vector<48xf32> to vector<48x1xf32>
    %cst_57 = arith.constant 3.200000e+01 : f32
    %132 = vector.broadcast %cst_57 : f32 to vector<48x1xf32>
    %133 = arith.divf %131, %132 : vector<48x1xf32>
    %134 = vector.broadcast %126 : vector<48x1xf32> to vector<48x32xf32>
    %135 = arith.subf %118, %134 : vector<48x32xf32>
    %cst_58 = arith.constant 9.99999974E-6 : f32
    %136 = vector.broadcast %cst_58 : f32 to vector<48x1xf32>
    %137 = arith.addf %133, %136 : vector<48x1xf32>
    %138 = math.rsqrt %137 : vector<48x1xf32>
    %139 = vector.broadcast %138 : vector<48x1xf32> to vector<48x32xf32>
    %140 = arith.mulf %135, %139 : vector<48x32xf32>
    %141 = vector.broadcast %120 : vector<1x32xf32> to vector<48x32xf32>
    %142 = arith.mulf %140, %141 : vector<48x32xf32>
    %143 = vector.broadcast %122 : vector<1x32xf32> to vector<48x32xf32>
    %144 = arith.addf %142, %143 : vector<48x32xf32>
    %c0_59 = arith.constant 0 : index
    %c0_60 = arith.constant 0 : index
    %c0_61 = arith.constant 0 : index
    %145 = vector.load %arg12[%c0_59, %c0_60, %c0_61] : memref<2x32x128xf32, #tpu.memory_space<vmem>>, vector<1x32x128xf32>
    %146 = vector.shape_cast %145 : vector<1x32x128xf32> to vector<32x128xf32>
    %cst_62 = arith.constant dense<0.000000e+00> : vector<48x128xf32>
    %147 = tpu.matmul %144, %146, %cst_62 {dimension_numbers = #tpu.dot_dimension_numbers<[1], [0], [0], [1], [0, 0, 1, 1], [], []>} : vector<48x32xf32>, vector<32x128xf32>, vector<48x128xf32> -> vector<48x128xf32>
    %c0_63 = arith.constant 0 : index
    %c0_64 = arith.constant 0 : index
    %c0_65 = arith.constant 0 : index
    %148 = vector.load %arg13[%c0_63, %c0_64, %c0_65] : memref<2x1x128xf32, #tpu.memory_space<vmem>>, vector<1x1x128xf32>
    %149 = vector.shape_cast %148 : vector<1x1x128xf32> to vector<1x128xf32>
    %150 = vector.broadcast %149 : vector<1x128xf32> to vector<48x128xf32>
    %151 = arith.addf %147, %150 : vector<48x128xf32>
    %152 = arith.mulf %151, %151 : vector<48x128xf32>
    %153 = arith.mulf %151, %152 : vector<48x128xf32>
    %cst_66 = arith.constant 4.471500e-02 : f32
    %154 = vector.broadcast %cst_66 : f32 to vector<48x128xf32>
    %155 = arith.mulf %154, %153 : vector<48x128xf32>
    %156 = arith.addf %151, %155 : vector<48x128xf32>
    %cst_67 = arith.constant 0.797884583 : f32
    %157 = vector.broadcast %cst_67 : f32 to vector<48x128xf32>
    %158 = arith.mulf %157, %156 : vector<48x128xf32>
    %159 = math.tanh %158 : vector<48x128xf32>
    %cst_68 = arith.constant 1.000000e+00 : f32
    %160 = vector.broadcast %cst_68 : f32 to vector<48x128xf32>
    %161 = arith.addf %160, %159 : vector<48x128xf32>
    %cst_69 = arith.constant 5.000000e-01 : f32
    %162 = vector.broadcast %cst_69 : f32 to vector<48x128xf32>
    %163 = arith.mulf %162, %161 : vector<48x128xf32>
    %164 = arith.mulf %151, %163 : vector<48x128xf32>
    %c0_70 = arith.constant 0 : index
    %c0_71 = arith.constant 0 : index
    %c0_72 = arith.constant 0 : index
    %165 = vector.load %arg14[%c0_70, %c0_71, %c0_72] : memref<2x128x32xf32, #tpu.memory_space<vmem>>, vector<1x128x32xf32>
    %166 = vector.shape_cast %165 : vector<1x128x32xf32> to vector<128x32xf32>
    %cst_73 = arith.constant dense<0.000000e+00> : vector<48x32xf32>
    %167 = tpu.matmul %164, %166, %cst_73 {dimension_numbers = #tpu.dot_dimension_numbers<[1], [0], [0], [1], [0, 0, 1, 1], [], []>} : vector<48x128xf32>, vector<128x32xf32>, vector<48x32xf32> -> vector<48x32xf32>
    %c0_74 = arith.constant 0 : index
    %c0_75 = arith.constant 0 : index
    %c0_76 = arith.constant 0 : index
    %168 = vector.load %arg15[%c0_74, %c0_75, %c0_76] : memref<2x1x32xf32, #tpu.memory_space<vmem>>, vector<1x1x32xf32>
    %169 = vector.shape_cast %168 : vector<1x1x32xf32> to vector<1x32xf32>
    %170 = vector.broadcast %169 : vector<1x32xf32> to vector<48x32xf32>
    %171 = arith.addf %167, %170 : vector<48x32xf32>
    %172 = arith.addf %118, %171 : vector<48x32xf32>
    %c1 = arith.constant 1 : index
    %c0_77 = arith.constant 0 : index
    %c0_78 = arith.constant 0 : index
    %173 = vector.load %arg5[%c1, %c0_77, %c0_78] : memref<2x1x32xf32, #tpu.memory_space<vmem>>, vector<1x1x32xf32>
    %174 = vector.shape_cast %173 : vector<1x1x32xf32> to vector<1x32xf32>
    %c1_79 = arith.constant 1 : index
    %c0_80 = arith.constant 0 : index
    %c0_81 = arith.constant 0 : index
    %175 = vector.load %arg6[%c1_79, %c0_80, %c0_81] : memref<2x1x32xf32, #tpu.memory_space<vmem>>, vector<1x1x32xf32>
    %176 = vector.shape_cast %175 : vector<1x1x32xf32> to vector<1x32xf32>
    %cst_82 = arith.constant dense<0.000000e+00> : vector<48xf32>
    %177 = vector.multi_reduction <add>, %172, %cst_82 [1] : vector<48x32xf32> to vector<48xf32>
    %178 = vector.shape_cast %177 : vector<48xf32> to vector<48x1xf32>
    %cst_83 = arith.constant 3.200000e+01 : f32
    %179 = vector.broadcast %cst_83 : f32 to vector<48x1xf32>
    %180 = arith.divf %178, %179 : vector<48x1xf32>
    %181 = vector.broadcast %180 : vector<48x1xf32> to vector<48x32xf32>
    %182 = arith.subf %172, %181 : vector<48x32xf32>
    %183 = arith.mulf %182, %182 : vector<48x32xf32>
    %cst_84 = arith.constant dense<0.000000e+00> : vector<48xf32>
    %184 = vector.multi_reduction <add>, %183, %cst_84 [1] : vector<48x32xf32> to vector<48xf32>
    %185 = vector.shape_cast %184 : vector<48xf32> to vector<48x1xf32>
    %cst_85 = arith.constant 3.200000e+01 : f32
    %186 = vector.broadcast %cst_85 : f32 to vector<48x1xf32>
    %187 = arith.divf %185, %186 : vector<48x1xf32>
    %188 = vector.broadcast %180 : vector<48x1xf32> to vector<48x32xf32>
    %189 = arith.subf %172, %188 : vector<48x32xf32>
    %cst_86 = arith.constant 9.99999974E-6 : f32
    %190 = vector.broadcast %cst_86 : f32 to vector<48x1xf32>
    %191 = arith.addf %187, %190 : vector<48x1xf32>
    %192 = math.rsqrt %191 : vector<48x1xf32>
    %193 = vector.broadcast %192 : vector<48x1xf32> to vector<48x32xf32>
    %194 = arith.mulf %189, %193 : vector<48x32xf32>
    %195 = vector.broadcast %174 : vector<1x32xf32> to vector<48x32xf32>
    %196 = arith.mulf %194, %195 : vector<48x32xf32>
    %197 = vector.broadcast %176 : vector<1x32xf32> to vector<48x32xf32>
    %198 = arith.addf %196, %197 : vector<48x32xf32>
    %c1_87 = arith.constant 1 : index
    %c0_88 = arith.constant 0 : index
    %c0_89 = arith.constant 0 : index
    %199 = vector.load %arg7[%c1_87, %c0_88, %c0_89] : memref<2x32x192xf32, #tpu.memory_space<vmem>>, vector<1x32x192xf32>
    %200 = vector.shape_cast %199 : vector<1x32x192xf32> to vector<32x192xf32>
    %cst_90 = arith.constant dense<0.000000e+00> : vector<48x192xf32>
    %201 = tpu.matmul %198, %200, %cst_90 {dimension_numbers = #tpu.dot_dimension_numbers<[1], [0], [0], [1], [0, 0, 1, 1], [], []>} : vector<48x32xf32>, vector<32x192xf32>, vector<48x192xf32> -> vector<48x192xf32>
    %c1_91 = arith.constant 1 : index
    %c0_92 = arith.constant 0 : index
    %c0_93 = arith.constant 0 : index
    %202 = vector.load %arg8[%c1_91, %c0_92, %c0_93] : memref<2x1x192xf32, #tpu.memory_space<vmem>>, vector<1x1x192xf32>
    %203 = vector.shape_cast %202 : vector<1x1x192xf32> to vector<1x192xf32>
    %204 = vector.broadcast %203 : vector<1x192xf32> to vector<48x192xf32>
    %205 = arith.addf %201, %204 : vector<48x192xf32>
    %206 = vector.extract_strided_slice %205 {offsets = [0, 0], sizes = [48, 8], strides = [1, 1]} : vector<48x192xf32> to vector<48x8xf32>
    %207 = vector.extract_strided_slice %205 {offsets = [0, 32], sizes = [48, 8], strides = [1, 1]} : vector<48x192xf32> to vector<48x8xf32>
    %208 = vector.extract_strided_slice %205 {offsets = [0, 64], sizes = [48, 32], strides = [1, 1]} : vector<48x192xf32> to vector<48x32xf32>
    %cst_94 = arith.constant dense<0.000000e+00> : vector<48x48xf32>
    %209 = tpu.matmul %206, %207, %cst_94 {dimension_numbers = #tpu.dot_dimension_numbers<[1], [1], [0], [0], [0, 0, 1, 0], [], []>} : vector<48x8xf32>, vector<48x8xf32>, vector<48x48xf32> -> vector<48x48xf32>
    %cst_95 = arith.constant 0.353553385 : f32
    %210 = vector.broadcast %cst_95 : f32 to vector<48x48xf32>
    %211 = arith.mulf %209, %210 : vector<48x48xf32>
    %212 = arith.addf %211, %0 : vector<48x48xf32>
    %cst_96 = arith.constant dense<0xFF800000> : vector<48xf32>
    %213 = vector.multi_reduction <maximumf>, %212, %cst_96 [1] : vector<48x48xf32> to vector<48xf32>
    %214 = vector.shape_cast %213 : vector<48xf32> to vector<48x1xf32>
    %215 = vector.broadcast %214 : vector<48x1xf32> to vector<48x48xf32>
    %216 = arith.subf %212, %215 : vector<48x48xf32>
    %217 = math.exp %216 : vector<48x48xf32>
    %cst_97 = arith.constant dense<0.000000e+00> : vector<48xf32>
    %218 = vector.multi_reduction <add>, %217, %cst_97 [1] : vector<48x48xf32> to vector<48xf32>
    %219 = vector.shape_cast %218 : vector<48xf32> to vector<48x1xf32>
    %220 = tpu.reciprocal %219 {approx = true} : vector<48x1xf32> -> vector<48x1xf32>
    %221 = vector.broadcast %220 : vector<48x1xf32> to vector<48x48xf32>
    %222 = arith.mulf %217, %221 : vector<48x48xf32>
    %cst_98 = arith.constant dense<0.000000e+00> : vector<48x32xf32>
    %223 = tpu.matmul %222, %208, %cst_98 {dimension_numbers = #tpu.dot_dimension_numbers<[1], [0], [0], [1], [0, 0, 1, 1], [], []>} : vector<48x48xf32>, vector<48x32xf32>, vector<48x32xf32> -> vector<48x32xf32>
    %224 = vector.extract_strided_slice %205 {offsets = [0, 8], sizes = [48, 8], strides = [1, 1]} : vector<48x192xf32> to vector<48x8xf32>
    %225 = vector.extract_strided_slice %205 {offsets = [0, 40], sizes = [48, 8], strides = [1, 1]} : vector<48x192xf32> to vector<48x8xf32>
    %226 = vector.extract_strided_slice %205 {offsets = [0, 96], sizes = [48, 32], strides = [1, 1]} : vector<48x192xf32> to vector<48x32xf32>
    %cst_99 = arith.constant dense<0.000000e+00> : vector<48x48xf32>
    %227 = tpu.matmul %224, %225, %cst_99 {dimension_numbers = #tpu.dot_dimension_numbers<[1], [1], [0], [0], [0, 0, 1, 0], [], []>} : vector<48x8xf32>, vector<48x8xf32>, vector<48x48xf32> -> vector<48x48xf32>
    %cst_100 = arith.constant 0.353553385 : f32
    %228 = vector.broadcast %cst_100 : f32 to vector<48x48xf32>
    %229 = arith.mulf %227, %228 : vector<48x48xf32>
    %230 = arith.addf %229, %0 : vector<48x48xf32>
    %cst_101 = arith.constant dense<0xFF800000> : vector<48xf32>
    %231 = vector.multi_reduction <maximumf>, %230, %cst_101 [1] : vector<48x48xf32> to vector<48xf32>
    %232 = vector.shape_cast %231 : vector<48xf32> to vector<48x1xf32>
    %233 = vector.broadcast %232 : vector<48x1xf32> to vector<48x48xf32>
    %234 = arith.subf %230, %233 : vector<48x48xf32>
    %235 = math.exp %234 : vector<48x48xf32>
    %cst_102 = arith.constant dense<0.000000e+00> : vector<48xf32>
    %236 = vector.multi_reduction <add>, %235, %cst_102 [1] : vector<48x48xf32> to vector<48xf32>
    %237 = vector.shape_cast %236 : vector<48xf32> to vector<48x1xf32>
    %238 = tpu.reciprocal %237 {approx = true} : vector<48x1xf32> -> vector<48x1xf32>
    %239 = vector.broadcast %238 : vector<48x1xf32> to vector<48x48xf32>
    %240 = arith.mulf %235, %239 : vector<48x48xf32>
    %cst_103 = arith.constant dense<0.000000e+00> : vector<48x32xf32>
    %241 = tpu.matmul %240, %226, %cst_103 {dimension_numbers = #tpu.dot_dimension_numbers<[1], [0], [0], [1], [0, 0, 1, 1], [], []>} : vector<48x48xf32>, vector<48x32xf32>, vector<48x32xf32> -> vector<48x32xf32>
    %242 = arith.addf %223, %241 : vector<48x32xf32>
    %243 = vector.extract_strided_slice %205 {offsets = [0, 16], sizes = [48, 8], strides = [1, 1]} : vector<48x192xf32> to vector<48x8xf32>
    %244 = vector.extract_strided_slice %205 {offsets = [0, 48], sizes = [48, 8], strides = [1, 1]} : vector<48x192xf32> to vector<48x8xf32>
    %245 = vector.extract_strided_slice %205 {offsets = [0, 128], sizes = [48, 32], strides = [1, 1]} : vector<48x192xf32> to vector<48x32xf32>
    %cst_104 = arith.constant dense<0.000000e+00> : vector<48x48xf32>
    %246 = tpu.matmul %243, %244, %cst_104 {dimension_numbers = #tpu.dot_dimension_numbers<[1], [1], [0], [0], [0, 0, 1, 0], [], []>} : vector<48x8xf32>, vector<48x8xf32>, vector<48x48xf32> -> vector<48x48xf32>
    %cst_105 = arith.constant 0.353553385 : f32
    %247 = vector.broadcast %cst_105 : f32 to vector<48x48xf32>
    %248 = arith.mulf %246, %247 : vector<48x48xf32>
    %249 = arith.addf %248, %0 : vector<48x48xf32>
    %cst_106 = arith.constant dense<0xFF800000> : vector<48xf32>
    %250 = vector.multi_reduction <maximumf>, %249, %cst_106 [1] : vector<48x48xf32> to vector<48xf32>
    %251 = vector.shape_cast %250 : vector<48xf32> to vector<48x1xf32>
    %252 = vector.broadcast %251 : vector<48x1xf32> to vector<48x48xf32>
    %253 = arith.subf %249, %252 : vector<48x48xf32>
    %254 = math.exp %253 : vector<48x48xf32>
    %cst_107 = arith.constant dense<0.000000e+00> : vector<48xf32>
    %255 = vector.multi_reduction <add>, %254, %cst_107 [1] : vector<48x48xf32> to vector<48xf32>
    %256 = vector.shape_cast %255 : vector<48xf32> to vector<48x1xf32>
    %257 = tpu.reciprocal %256 {approx = true} : vector<48x1xf32> -> vector<48x1xf32>
    %258 = vector.broadcast %257 : vector<48x1xf32> to vector<48x48xf32>
    %259 = arith.mulf %254, %258 : vector<48x48xf32>
    %cst_108 = arith.constant dense<0.000000e+00> : vector<48x32xf32>
    %260 = tpu.matmul %259, %245, %cst_108 {dimension_numbers = #tpu.dot_dimension_numbers<[1], [0], [0], [1], [0, 0, 1, 1], [], []>} : vector<48x48xf32>, vector<48x32xf32>, vector<48x32xf32> -> vector<48x32xf32>
    %261 = arith.addf %242, %260 : vector<48x32xf32>
    %262 = vector.extract_strided_slice %205 {offsets = [0, 24], sizes = [48, 8], strides = [1, 1]} : vector<48x192xf32> to vector<48x8xf32>
    %263 = vector.extract_strided_slice %205 {offsets = [0, 56], sizes = [48, 8], strides = [1, 1]} : vector<48x192xf32> to vector<48x8xf32>
    %264 = vector.extract_strided_slice %205 {offsets = [0, 160], sizes = [48, 32], strides = [1, 1]} : vector<48x192xf32> to vector<48x32xf32>
    %cst_109 = arith.constant dense<0.000000e+00> : vector<48x48xf32>
    %265 = tpu.matmul %262, %263, %cst_109 {dimension_numbers = #tpu.dot_dimension_numbers<[1], [1], [0], [0], [0, 0, 1, 0], [], []>} : vector<48x8xf32>, vector<48x8xf32>, vector<48x48xf32> -> vector<48x48xf32>
    %cst_110 = arith.constant 0.353553385 : f32
    %266 = vector.broadcast %cst_110 : f32 to vector<48x48xf32>
    %267 = arith.mulf %265, %266 : vector<48x48xf32>
    %268 = arith.addf %267, %0 : vector<48x48xf32>
    %cst_111 = arith.constant dense<0xFF800000> : vector<48xf32>
    %269 = vector.multi_reduction <maximumf>, %268, %cst_111 [1] : vector<48x48xf32> to vector<48xf32>
    %270 = vector.shape_cast %269 : vector<48xf32> to vector<48x1xf32>
    %271 = vector.broadcast %270 : vector<48x1xf32> to vector<48x48xf32>
    %272 = arith.subf %268, %271 : vector<48x48xf32>
    %273 = math.exp %272 : vector<48x48xf32>
    %cst_112 = arith.constant dense<0.000000e+00> : vector<48xf32>
    %274 = vector.multi_reduction <add>, %273, %cst_112 [1] : vector<48x48xf32> to vector<48xf32>
    %275 = vector.shape_cast %274 : vector<48xf32> to vector<48x1xf32>
    %276 = tpu.reciprocal %275 {approx = true} : vector<48x1xf32> -> vector<48x1xf32>
    %277 = vector.broadcast %276 : vector<48x1xf32> to vector<48x48xf32>
    %278 = arith.mulf %273, %277 : vector<48x48xf32>
    %cst_113 = arith.constant dense<0.000000e+00> : vector<48x32xf32>
    %279 = tpu.matmul %278, %264, %cst_113 {dimension_numbers = #tpu.dot_dimension_numbers<[1], [0], [0], [1], [0, 0, 1, 1], [], []>} : vector<48x48xf32>, vector<48x32xf32>, vector<48x32xf32> -> vector<48x32xf32>
    %280 = arith.addf %261, %279 : vector<48x32xf32>
    %281 = arith.addf %172, %280 : vector<48x32xf32>
    %c1_114 = arith.constant 1 : index
    %c0_115 = arith.constant 0 : index
    %c0_116 = arith.constant 0 : index
    %282 = vector.load %arg9[%c1_114, %c0_115, %c0_116] : memref<2x1x32xf32, #tpu.memory_space<vmem>>, vector<1x1x32xf32>
    %283 = vector.shape_cast %282 : vector<1x1x32xf32> to vector<1x32xf32>
    %284 = vector.broadcast %283 : vector<1x32xf32> to vector<48x32xf32>
    %285 = arith.addf %281, %284 : vector<48x32xf32>
    %c1_117 = arith.constant 1 : index
    %c0_118 = arith.constant 0 : index
    %c0_119 = arith.constant 0 : index
    %286 = vector.load %arg10[%c1_117, %c0_118, %c0_119] : memref<2x1x32xf32, #tpu.memory_space<vmem>>, vector<1x1x32xf32>
    %287 = vector.shape_cast %286 : vector<1x1x32xf32> to vector<1x32xf32>
    %c1_120 = arith.constant 1 : index
    %c0_121 = arith.constant 0 : index
    %c0_122 = arith.constant 0 : index
    %288 = vector.load %arg11[%c1_120, %c0_121, %c0_122] : memref<2x1x32xf32, #tpu.memory_space<vmem>>, vector<1x1x32xf32>
    %289 = vector.shape_cast %288 : vector<1x1x32xf32> to vector<1x32xf32>
    %cst_123 = arith.constant dense<0.000000e+00> : vector<48xf32>
    %290 = vector.multi_reduction <add>, %285, %cst_123 [1] : vector<48x32xf32> to vector<48xf32>
    %291 = vector.shape_cast %290 : vector<48xf32> to vector<48x1xf32>
    %cst_124 = arith.constant 3.200000e+01 : f32
    %292 = vector.broadcast %cst_124 : f32 to vector<48x1xf32>
    %293 = arith.divf %291, %292 : vector<48x1xf32>
    %294 = vector.broadcast %293 : vector<48x1xf32> to vector<48x32xf32>
    %295 = arith.subf %285, %294 : vector<48x32xf32>
    %296 = arith.mulf %295, %295 : vector<48x32xf32>
    %cst_125 = arith.constant dense<0.000000e+00> : vector<48xf32>
    %297 = vector.multi_reduction <add>, %296, %cst_125 [1] : vector<48x32xf32> to vector<48xf32>
    %298 = vector.shape_cast %297 : vector<48xf32> to vector<48x1xf32>
    %cst_126 = arith.constant 3.200000e+01 : f32
    %299 = vector.broadcast %cst_126 : f32 to vector<48x1xf32>
    %300 = arith.divf %298, %299 : vector<48x1xf32>
    %301 = vector.broadcast %293 : vector<48x1xf32> to vector<48x32xf32>
    %302 = arith.subf %285, %301 : vector<48x32xf32>
    %cst_127 = arith.constant 9.99999974E-6 : f32
    %303 = vector.broadcast %cst_127 : f32 to vector<48x1xf32>
    %304 = arith.addf %300, %303 : vector<48x1xf32>
    %305 = math.rsqrt %304 : vector<48x1xf32>
    %306 = vector.broadcast %305 : vector<48x1xf32> to vector<48x32xf32>
    %307 = arith.mulf %302, %306 : vector<48x32xf32>
    %308 = vector.broadcast %287 : vector<1x32xf32> to vector<48x32xf32>
    %309 = arith.mulf %307, %308 : vector<48x32xf32>
    %310 = vector.broadcast %289 : vector<1x32xf32> to vector<48x32xf32>
    %311 = arith.addf %309, %310 : vector<48x32xf32>
    %c1_128 = arith.constant 1 : index
    %c0_129 = arith.constant 0 : index
    %c0_130 = arith.constant 0 : index
    %312 = vector.load %arg12[%c1_128, %c0_129, %c0_130] : memref<2x32x128xf32, #tpu.memory_space<vmem>>, vector<1x32x128xf32>
    %313 = vector.shape_cast %312 : vector<1x32x128xf32> to vector<32x128xf32>
    %cst_131 = arith.constant dense<0.000000e+00> : vector<48x128xf32>
    %314 = tpu.matmul %311, %313, %cst_131 {dimension_numbers = #tpu.dot_dimension_numbers<[1], [0], [0], [1], [0, 0, 1, 1], [], []>} : vector<48x32xf32>, vector<32x128xf32>, vector<48x128xf32> -> vector<48x128xf32>
    %c1_132 = arith.constant 1 : index
    %c0_133 = arith.constant 0 : index
    %c0_134 = arith.constant 0 : index
    %315 = vector.load %arg13[%c1_132, %c0_133, %c0_134] : memref<2x1x128xf32, #tpu.memory_space<vmem>>, vector<1x1x128xf32>
    %316 = vector.shape_cast %315 : vector<1x1x128xf32> to vector<1x128xf32>
    %317 = vector.broadcast %316 : vector<1x128xf32> to vector<48x128xf32>
    %318 = arith.addf %314, %317 : vector<48x128xf32>
    %319 = arith.mulf %318, %318 : vector<48x128xf32>
    %320 = arith.mulf %318, %319 : vector<48x128xf32>
    %cst_135 = arith.constant 4.471500e-02 : f32
    %321 = vector.broadcast %cst_135 : f32 to vector<48x128xf32>
    %322 = arith.mulf %321, %320 : vector<48x128xf32>
    %323 = arith.addf %318, %322 : vector<48x128xf32>
    %cst_136 = arith.constant 0.797884583 : f32
    %324 = vector.broadcast %cst_136 : f32 to vector<48x128xf32>
    %325 = arith.mulf %324, %323 : vector<48x128xf32>
    %326 = math.tanh %325 : vector<48x128xf32>
    %cst_137 = arith.constant 1.000000e+00 : f32
    %327 = vector.broadcast %cst_137 : f32 to vector<48x128xf32>
    %328 = arith.addf %327, %326 : vector<48x128xf32>
    %cst_138 = arith.constant 5.000000e-01 : f32
    %329 = vector.broadcast %cst_138 : f32 to vector<48x128xf32>
    %330 = arith.mulf %329, %328 : vector<48x128xf32>
    %331 = arith.mulf %318, %330 : vector<48x128xf32>
    %c1_139 = arith.constant 1 : index
    %c0_140 = arith.constant 0 : index
    %c0_141 = arith.constant 0 : index
    %332 = vector.load %arg14[%c1_139, %c0_140, %c0_141] : memref<2x128x32xf32, #tpu.memory_space<vmem>>, vector<1x128x32xf32>
    %333 = vector.shape_cast %332 : vector<1x128x32xf32> to vector<128x32xf32>
    %cst_142 = arith.constant dense<0.000000e+00> : vector<48x32xf32>
    %334 = tpu.matmul %331, %333, %cst_142 {dimension_numbers = #tpu.dot_dimension_numbers<[1], [0], [0], [1], [0, 0, 1, 1], [], []>} : vector<48x128xf32>, vector<128x32xf32>, vector<48x32xf32> -> vector<48x32xf32>
    %c1_143 = arith.constant 1 : index
    %c0_144 = arith.constant 0 : index
    %c0_145 = arith.constant 0 : index
    %335 = vector.load %arg15[%c1_143, %c0_144, %c0_145] : memref<2x1x32xf32, #tpu.memory_space<vmem>>, vector<1x1x32xf32>
    %336 = vector.shape_cast %335 : vector<1x1x32xf32> to vector<1x32xf32>
    %337 = vector.broadcast %336 : vector<1x32xf32> to vector<48x32xf32>
    %338 = arith.addf %334, %337 : vector<48x32xf32>
    %339 = arith.addf %285, %338 : vector<48x32xf32>
    %340 = vector.extract_strided_slice %339 {offsets = [16, 0], sizes = [32, 32], strides = [1, 1]} : vector<48x32xf32> to vector<32x32xf32>
    %c0_146 = arith.constant 0 : index
    %c0_147 = arith.constant 0 : index
    %341 = vector.load %arg16[%c0_146, %c0_147] : memref<1x32xf32, #tpu.memory_space<vmem>>, vector<1x32xf32>
    %c0_148 = arith.constant 0 : index
    %c0_149 = arith.constant 0 : index
    %342 = vector.load %arg17[%c0_148, %c0_149] : memref<1x32xf32, #tpu.memory_space<vmem>>, vector<1x32xf32>
    %cst_150 = arith.constant dense<0.000000e+00> : vector<32xf32>
    %343 = vector.multi_reduction <add>, %340, %cst_150 [1] : vector<32x32xf32> to vector<32xf32>
    %344 = vector.shape_cast %343 : vector<32xf32> to vector<32x1xf32>
    %cst_151 = arith.constant 3.200000e+01 : f32
    %345 = vector.broadcast %cst_151 : f32 to vector<32x1xf32>
    %346 = arith.divf %344, %345 : vector<32x1xf32>
    %347 = vector.broadcast %346 : vector<32x1xf32> to vector<32x32xf32>
    %348 = arith.subf %340, %347 : vector<32x32xf32>
    %349 = arith.mulf %348, %348 : vector<32x32xf32>
    %cst_152 = arith.constant dense<0.000000e+00> : vector<32xf32>
    %350 = vector.multi_reduction <add>, %349, %cst_152 [1] : vector<32x32xf32> to vector<32xf32>
    %351 = vector.shape_cast %350 : vector<32xf32> to vector<32x1xf32>
    %cst_153 = arith.constant 3.200000e+01 : f32
    %352 = vector.broadcast %cst_153 : f32 to vector<32x1xf32>
    %353 = arith.divf %351, %352 : vector<32x1xf32>
    %354 = vector.broadcast %346 : vector<32x1xf32> to vector<32x32xf32>
    %355 = arith.subf %340, %354 : vector<32x32xf32>
    %cst_154 = arith.constant 9.99999974E-6 : f32
    %356 = vector.broadcast %cst_154 : f32 to vector<32x1xf32>
    %357 = arith.addf %353, %356 : vector<32x1xf32>
    %358 = math.rsqrt %357 : vector<32x1xf32>
    %359 = vector.broadcast %358 : vector<32x1xf32> to vector<32x32xf32>
    %360 = arith.mulf %355, %359 : vector<32x32xf32>
    %361 = vector.broadcast %341 : vector<1x32xf32> to vector<32x32xf32>
    %362 = arith.mulf %360, %361 : vector<32x32xf32>
    %363 = vector.broadcast %342 : vector<1x32xf32> to vector<32x32xf32>
    %364 = arith.addf %362, %363 : vector<32x32xf32>
    %c0_155 = arith.constant 0 : index
    %c0_156 = arith.constant 0 : index
    %365 = vector.load %arg18[%c0_155, %c0_156] : memref<32x128xf32, #tpu.memory_space<vmem>>, vector<32x128xf32>
    %cst_157 = arith.constant dense<0.000000e+00> : vector<32x128xf32>
    %366 = tpu.matmul %364, %365, %cst_157 {dimension_numbers = #tpu.dot_dimension_numbers<[1], [0], [0], [1], [0, 0, 1, 1], [], []>} : vector<32x32xf32>, vector<32x128xf32>, vector<32x128xf32> -> vector<32x128xf32>
    %c0_158 = arith.constant 0 : index
    %c0_159 = arith.constant 0 : index
    %367 = vector.load %arg19[%c0_158, %c0_159] : memref<1x128xf32, #tpu.memory_space<vmem>>, vector<1x128xf32>
    %368 = vector.broadcast %367 : vector<1x128xf32> to vector<32x128xf32>
    %369 = arith.addf %366, %368 : vector<32x128xf32>
    %c0_160 = arith.constant 0 : index
    %c0_161 = arith.constant 0 : index
    %370 = vector.load %arg20[%c0_160, %c0_161] : memref<32x128xf32, #tpu.memory_space<vmem>>, vector<32x128xf32>
    tpu.vector_store %arg20[%c0_160, %c0_161], %369 {strides = array<i32>} : memref<32x128xf32, #tpu.memory_space<vmem>>, vector<32x128xf32>,
    return
  }
  func.func @transform_0(%arg0: i32) -> (i32, i32) {
    %c0_i32 = arith.constant 0 : i32
    %c0_i32_0 = arith.constant 0 : i32
    return %arg0, %c0_i32 : i32, i32
  }
  func.func @transform_1(%arg0: i32) -> (i32, i32) {
    %c0_i32 = arith.constant 0 : i32
    %c0_i32_0 = arith.constant 0 : i32
    %c0_i32_1 = arith.constant 0 : i32
    return %c0_i32, %c0_i32_0 : i32, i32
  }
  func.func @transform_2(%arg0: i32) -> (i32, i32) {
    %c0_i32 = arith.constant 0 : i32
    %c0_i32_0 = arith.constant 0 : i32
    %c0_i32_1 = arith.constant 0 : i32
    return %c0_i32, %c0_i32_0 : i32, i32
  }
  func.func @transform_3(%arg0: i32) -> (i32, i32) {
    %c0_i32 = arith.constant 0 : i32
    %c0_i32_0 = arith.constant 0 : i32
    %c0_i32_1 = arith.constant 0 : i32
    return %c0_i32, %c0_i32_0 : i32, i32
  }
  func.func @transform_4(%arg0: i32) -> (i32, i32, i32) {
    %c0_i32 = arith.constant 0 : i32
    %c0_i32_0 = arith.constant 0 : i32
    %c0_i32_1 = arith.constant 0 : i32
    %c0_i32_2 = arith.constant 0 : i32
    return %c0_i32, %c0_i32_0, %c0_i32_1 : i32, i32, i32
  }
  func.func @transform_5(%arg0: i32) -> (i32, i32, i32) {
    %c0_i32 = arith.constant 0 : i32
    %c0_i32_0 = arith.constant 0 : i32
    %c0_i32_1 = arith.constant 0 : i32
    %c0_i32_2 = arith.constant 0 : i32
    return %c0_i32, %c0_i32_0, %c0_i32_1 : i32, i32, i32
  }
  func.func @transform_6(%arg0: i32) -> (i32, i32, i32) {
    %c0_i32 = arith.constant 0 : i32
    %c0_i32_0 = arith.constant 0 : i32
    %c0_i32_1 = arith.constant 0 : i32
    %c0_i32_2 = arith.constant 0 : i32
    return %c0_i32, %c0_i32_0, %c0_i32_1 : i32, i32, i32
  }
  func.func @transform_7(%arg0: i32) -> (i32, i32, i32) {
    %c0_i32 = arith.constant 0 : i32
    %c0_i32_0 = arith.constant 0 : i32
    %c0_i32_1 = arith.constant 0 : i32
    %c0_i32_2 = arith.constant 0 : i32
    return %c0_i32, %c0_i32_0, %c0_i32_1 : i32, i32, i32
  }
  func.func @transform_8(%arg0: i32) -> (i32, i32, i32) {
    %c0_i32 = arith.constant 0 : i32
    %c0_i32_0 = arith.constant 0 : i32
    %c0_i32_1 = arith.constant 0 : i32
    %c0_i32_2 = arith.constant 0 : i32
    return %c0_i32, %c0_i32_0, %c0_i32_1 : i32, i32, i32
  }
  func.func @transform_9(%arg0: i32) -> (i32, i32, i32) {
    %c0_i32 = arith.constant 0 : i32
    %c0_i32_0 = arith.constant 0 : i32
    %c0_i32_1 = arith.constant 0 : i32
    %c0_i32_2 = arith.constant 0 : i32
    return %c0_i32, %c0_i32_0, %c0_i32_1 : i32, i32, i32
  }
  func.func @transform_10(%arg0: i32) -> (i32, i32, i32) {
    %c0_i32 = arith.constant 0 : i32
    %c0_i32_0 = arith.constant 0 : i32
    %c0_i32_1 = arith.constant 0 : i32
    %c0_i32_2 = arith.constant 0 : i32
    return %c0_i32, %c0_i32_0, %c0_i32_1 : i32, i32, i32
  }
  func.func @transform_11(%arg0: i32) -> (i32, i32, i32) {
    %c0_i32 = arith.constant 0 : i32
    %c0_i32_0 = arith.constant 0 : i32
    %c0_i32_1 = arith.constant 0 : i32
    %c0_i32_2 = arith.constant 0 : i32
    return %c0_i32, %c0_i32_0, %c0_i32_1 : i32, i32, i32
  }
  func.func @transform_12(%arg0: i32) -> (i32, i32, i32) {
    %c0_i32 = arith.constant 0 : i32
    %c0_i32_0 = arith.constant 0 : i32
    %c0_i32_1 = arith.constant 0 : i32
    %c0_i32_2 = arith.constant 0 : i32
    return %c0_i32, %c0_i32_0, %c0_i32_1 : i32, i32, i32
  }
  func.func @transform_13(%arg0: i32) -> (i32, i32, i32) {
    %c0_i32 = arith.constant 0 : i32
    %c0_i32_0 = arith.constant 0 : i32
    %c0_i32_1 = arith.constant 0 : i32
    %c0_i32_2 = arith.constant 0 : i32
    return %c0_i32, %c0_i32_0, %c0_i32_1 : i32, i32, i32
  }
  func.func @transform_14(%arg0: i32) -> (i32, i32, i32) {
    %c0_i32 = arith.constant 0 : i32
    %c0_i32_0 = arith.constant 0 : i32
    %c0_i32_1 = arith.constant 0 : i32
    %c0_i32_2 = arith.constant 0 : i32
    return %c0_i32, %c0_i32_0, %c0_i32_1 : i32, i32, i32
  }
  func.func @transform_15(%arg0: i32) -> (i32, i32) {
    %c0_i32 = arith.constant 0 : i32
    %c0_i32_0 = arith.constant 0 : i32
    %c0_i32_1 = arith.constant 0 : i32
    return %c0_i32, %c0_i32_0 : i32, i32
  }
  func.func @transform_16(%arg0: i32) -> (i32, i32) {
    %c0_i32 = arith.constant 0 : i32
    %c0_i32_0 = arith.constant 0 : i32
    %c0_i32_1 = arith.constant 0 : i32
    return %c0_i32, %c0_i32_0 : i32, i32
  }
  func.func @transform_17(%arg0: i32) -> (i32, i32) {
    %c0_i32 = arith.constant 0 : i32
    %c0_i32_0 = arith.constant 0 : i32
    %c0_i32_1 = arith.constant 0 : i32
    return %c0_i32, %c0_i32_0 : i32, i32
  }
  func.func @transform_18(%arg0: i32) -> (i32, i32) {
    %c0_i32 = arith.constant 0 : i32
    %c0_i32_0 = arith.constant 0 : i32
    %c0_i32_1 = arith.constant 0 : i32
    return %c0_i32, %c0_i32_0 : i32, i32
  }
  func.func @transform_19(%arg0: i32) -> (i32, i32) {
    %c0_i32 = arith.constant 0 : i32
    %c0_i32_0 = arith.constant 0 : i32
    return %arg0, %c0_i32 : i32, i32
  }
}

</mosaic_0001>

<bundles_post_ra>
// kernel: tpu_custom_call.1
= control target key start
LH: loop header
LB: loop body
LE: loop exit
PB: predicated region body
PF: predicated region fallthrough
CT: control target
= control target key end

     0   :  { %s7715_s0 = inlined_call_operand.vmem [shape: f32[48,8], index: 0, kind: input, shape index: {}]   ;;  %s7716_s1 = inlined_call_operand.vmem [shape: f32[48,32], index: 1, kind: input, shape index: {}]   ;;  %s7717_s2 = inlined_call_operand.vmem [shape: f32[48,48], index: 2, kind: input, shape index: {}]   ;;  %s7718_s3 = inlined_call_operand.vmem [shape: f32[8,32], index: 3, kind: input, shape index: {}]   ;;  %s7719_s4 = inlined_call_operand.vmem [shape: f32[2,1,32], index: 4, kind: input, shape index: {}]   ;;  %s7720_s5 = inlined_call_operand.vmem [shape: f32[2,1,32], index: 5, kind: input, shape index: {}]   ;;  %s7721_s6 = inlined_call_operand.vmem [shape: f32[2,32,192], index: 6, kind: input, shape index: {}]   ;;  %s7722_s7 = inlined_call_operand.vmem [shape: f32[2,1,192], index: 7, kind: input, shape index: {}]   ;;  %s7723_s8 = inlined_call_operand.vmem [shape: f32[2,1,32], index: 8, kind: input, shape index: {}]   ;;  %s7724_s9 = inlined_call_operand.vmem [shape: f32[2,1,32], index: 9, kind: input, shape index: {}]   ;;  %s7725_s10 = inlined_call_operand.vmem [shape: f32[2,1,32], index: 10, kind: input, shape index: {}]   ;;  %s7726_s11 = inlined_call_operand.vmem [shape: f32[2,32,128], index: 11, kind: input, shape index: {}]   ;;  %s7727_s12 = inlined_call_operand.vmem [shape: f32[2,1,128], index: 12, kind: input, shape index: {}]   ;;  %s7728_s13 = inlined_call_operand.vmem [shape: f32[2,128,32], index: 13, kind: input, shape index: {}]   ;;  %s7729_s14 = inlined_call_operand.vmem [shape: f32[2,1,32], index: 14, kind: input, shape index: {}]   ;;  %s7730_s15 = inlined_call_operand.vmem [shape: f32[1,32], index: 15, kind: input, shape index: {}]   ;;  %s7731_s16 = inlined_call_operand.vmem [shape: f32[1,32], index: 16, kind: input, shape index: {}]   ;;  %s7732_s17 = inlined_call_operand.vmem [shape: f32[32,128], index: 17, kind: input, shape index: {}]   ;;  %s7733_s18 = inlined_call_operand.vmem [shape: f32[1,128], index: 18, kind: input, shape index: {}]   ;;  %s7734_s19 = inlined_call_operand.hbm [shape: f32[32,128], index: 19, kind: output, shape index: {}]  }
   0x1   :  { %7749 = sst [smem:[#allocation5_spill]] %s7715_s0 }
   0x2   :  { %7750 = sst [smem:[#allocation6_spill]] %s7716_s1 }
   0x3   :  { %7751 = sst [smem:[#allocation7_spill]] %s7717_s2 }
   0x4   :  { %7752 = sst [smem:[#allocation8_spill]] %s7718_s3 }
   0x5   :  { %7753 = sst [smem:[#allocation9_spill]] %s7729_s14 }
   0x6   :  { %s7754_s20 = sld [smem:[#allocation8_spill]]  ;;  %vm82_vm0 = vcmask 64512  }
   0x7   :  { %s7755_s14 = sld [smem:[#allocation5_spill]] }
   0xc   :  { %v75_v0 = vld [vmem:[%s7754_s20] sm:$0xff] }
   0xd   :  { %v69_v1 = vld [vmem:[%s7755_s14] sm:$0xff]  ;;  %v70_v2 = vld [vmem:[%s7755_s14 + $0x8] sm:$0xff]  ;;  %5050 = vmatprep.subr.mxu0 %v75_v0  ;;  %v71_v3 = vld [vmem:[%s7755_s14 + $0x10] sm:$0xff] }
   0xe   :  { %5052 = vmatprep.mubr.msk.f32.mxu0 %vm82_vm0, %v69_v1  ;;  %5051 = vmatpush3.msra.mxu0 %v75_v0 }
   0xf   :  { %24 = vsyncpa [#allocation3], 0  ;;  %5053 = vmatmul.mubr.msk.f32.vlgmr.msra.gmra.mxu0 %vm82_vm0, %v70_v2  ;;  %v72_v4 = vld [vmem:[%s7755_s14 + $0x18] sm:$0xff]  ;;  %v73_v5 = vld [vmem:[%s7755_s14 + $0x20] sm:$0xff]  ;;  %s7756_s20 = sld [smem:[#allocation6_spill]]  ;;  %vm198_vm1 = vcmask 261120  }
  0x10   :  { %5055 = vmatprep.mubr.msk.f32.mxu0 %vm82_vm0, %v71_v3  ;;  %v74_v6 = vld [vmem:[%s7755_s14 + $0x28] sm:$0xff]  ;;  %v309_v61 = vld [vmem:[%s7721_s6 + $0x38] sm:$0xff]  ;;  %v308_v62 = vld [vmem:[%s7721_s6 + $0x30] sm:$0xff]  ;;  %v5840_v1 = vmov 0.0   ;;  %s5841_s21 = smov 96   ;;  %s5842_s1 = smov 88  }
  0x11   :  { %v307_v63 = vld [vmem:[%s7721_s6 + $0x28] sm:$0xff]  ;;  %364 = vmatprep.subr.mxu1 %v309_v61  ;;  %v306_v0 = vld [vmem:[%s7721_s6 + $0x20] sm:$0xff]  ;;  %404 = vmatprep.mubr.f32.mxu1 %v5840_v1  ;;  %v305_v2 = vld [vmem:[%s7721_s6 + $0x18] sm:$0xff]  ;;  %s5843_s22 = smov 120   ;;  %s5844_s2 = smov 80   ;;  %vm590_vm2 = vcmask 392192  }
  0x12   :  { %365 = vmatpush1.msra.mxu1 %v308_v62  ;;  %v304_v3 = vld [vmem:[%s7721_s6 + $0x10] sm:$0xff]  ;;  %s7747_s14 = smov 112   ;;  %s7745_s23 = smov 32  }
  0x13   :  { %5056 = vmatmul.mubr.msk.f32.gmra.mxu0 %vm82_vm0, %v72_v4  ;;  %366 = vmatprep.subr.mxu1 %v307_v63  ;;  %v303_v4 = vld [vmem:[%s7721_s6 + $0x8] sm:$0xff]  ;;  %s7757_s3 = sld [smem:[#allocation7_spill]]  ;;  %s7743_s27 = smov 64  }
  0x14   :  { %5058 = vmatprep.mubr.msk.f32.mxu0 %vm82_vm0, %v73_v5  ;;  %367 = vmatpush1.msra.mxu1 %v306_v0  ;;  %v302_v5 = vld [vmem:[%s7721_s6] sm:$0xff]  ;;  %s7741_s28 = smov 72   ;;  %s7739_s29 = smov 104  }
  0x15   :  { %v76_v8 = vld [vmem:[%s7756_s20] sm:$0xff]  ;;  %v77_v9 = vld [vmem:[%s7756_s20 + $0x8] sm:$0xff]  ;;  %v78_v13 = vld [vmem:[%s7756_s20 + $0x10] sm:$0xff]  ;;  %368 = vmatprep.subr.mxu1 %v305_v2  ;;  %s5850_s25 = smov [#allocation2]  }
  0x16   :  { %v79_v16 = vld [vmem:[%s7756_s20 + $0x18] sm:$0xff]  ;;  %v81_v19 = vld [vmem:[%s7756_s20 + $0x28] sm:$0xff]  ;;  %v80_v21 = vld [vmem:[%s7756_s20 + $0x20] sm:$0xff]  ;;  %369 = vmatpush1.msra.mxu1 %v304_v3  ;;  %s4537_s26 = sshll.u32 %s5850_s25, 4  ;;  %s4538_s26 = int_to_ptr.vmem [resolvable:$true] %s4537_s26 }
  0x17   :  { %5059 = vmatmul.mubr.msk.f32.gmra.mxu0 %vm82_vm0, %v74_v6  ;;  %370 = vmatprep.subr.mxu1 %v303_v4  ;;  %p5823_p1 = scmp.lt.s32.totalorder %s4538_s26, %s4538_s26 }
  0x18   :  { %371 = vmatpush1.msra.mxu1 %v302_v5 }
  0xcf   :  { %v5054_v7 = vpop.f32.mrf.mxu0 }
  0xd0   :  { %v5991_v14 = vadd.f32 %v5054_v7, %v77_v9 }
  0xd1   :  { %v167_v10 = vpop.f32.mrf.mxu0 }
  0xd2   :  { %v5986_v11 = vadd.f32 %v167_v10, %v76_v8  ;;  %v202_v24 = vsel %vm198_vm1, %v5991_v14, 0.0 }
  0xd3   :  { %v5057_v12 = vpop.f32.mrf.mxu0 }
  0xd4   :  { %v199_v15 = vsel %vm198_vm1, %v5986_v11, 0.0  ;;  %v6006_v22 = vadd.f32 %v5057_v12, %v79_v16 }
  0xd5   :  { %v177_v17 = vpop.f32.mrf.mxu0  ;;  %200 = vadd.xlane.f32.xlu0 %v199_v15 }
  0xd6   :  { %v5998_v18 = vadd.f32 %v177_v17, %v78_v13  ;;  %v208_v28 = vsel %vm198_vm1, %v6006_v22, 0.0 }
  0xd7   :  { %v5060_v20 = vpop.f32.mrf.mxu0 }
  0xd8   :  { %v205_v23 = vsel %vm198_vm1, %v5998_v18, 0.0  ;;  %v6012_v26 = vadd.f32 %v5060_v20, %v81_v19 }
  0xd9   :  { %v187_v25 = vpop.f32.mrf.mxu0  ;;  %206 = vadd.xlane.f32.xlu1 %v205_v23  ;;  %203 = vadd.xlane.f32.xlu0 %v202_v24 }
  0xda   :  { %v6014_v27 = vadd.f32 %v187_v25, %v80_v21  ;;  %v214_v30 = vsel %vm198_vm1, %v6012_v26, 0.0 }
  0xdc   :  { %v211_v29 = vsel %vm198_vm1, %v6014_v27, 0.0 }
  0xdd   :  { %209 = vadd.xlane.f32.xlu1 %v208_v28  ;;  %212 = vadd.xlane.f32.xlu0 %v211_v29 }
  0xe1   :  { %215 = vadd.xlane.f32.xlu1 %v214_v30 }
 0x15e   :  { %v201_v31 = vpop.xlane.xlu0 %200 }
 0x15f   :  { %v218_v32 = vmul.f32 0.03125, %v201_v31  ;;  %v4554_v31 = vld [vmem:[%s7719_s4] ss:$0 sm:$0xff] }
 0x161   :  { %v6023_v33 = vsub.f32 %v5986_v11, %v218_v32 }
 0x162   :  { %v207_v34 = vpop.xlane.xlu1 %206  ;;  %v204_v35 = vpop.xlane.xlu0 %203 }
 0x163   :  { %v220_v36 = vmul.f32 0.03125, %v207_v34  ;;  %v219_v37 = vmul.f32 0.03125, %v204_v35  ;;  %v230_v38 = vmul.f32 %v6023_v33, %v6023_v33  ;;  %v4555_v34 = vld [vmem:[%s7720_s5] ss:$0 sm:$0xff] }
 0x165   :  { %v6028_v39 = vsub.f32 %v5998_v18, %v220_v36  ;;  %v6031_v40 = vsub.f32 %v5991_v14, %v219_v37  ;;  %v236_v41 = vsel %vm198_vm1, %v230_v38, 0.0 }
 0x166   :  { %v210_v42 = vpop.xlane.xlu1 %209  ;;  %237 = vadd.xlane.f32.xlu0 %v236_v41  ;;  %v213_v43 = vpop.xlane.xlu0 %212 }
 0x167   :  { %v221_v44 = vmul.f32 0.03125, %v210_v42  ;;  %v222_v45 = vmul.f32 0.03125, %v213_v43  ;;  %v232_v46 = vmul.f32 %v6028_v39, %v6028_v39  ;;  %v231_v47 = vmul.f32 %v6031_v40, %v6031_v40 }
 0x169   :  { %v6039_v48 = vsub.f32 %v6006_v22, %v221_v44  ;;  %v6042_v49 = vsub.f32 %v6014_v27, %v222_v45  ;;  %v242_v50 = vsel %vm198_vm1, %v232_v46, 0.0  ;;  %v239_v51 = vsel %vm198_vm1, %v231_v47, 0.0 }
 0x16a   :  { %v216_v52 = vpop.xlane.xlu1 %215  ;;  %243 = vadd.xlane.f32.xlu0 %v242_v50  ;;  %240 = vadd.xlane.f32.xlu1 %v239_v51 }
 0x16b   :  { %v223_v53 = vmul.f32 0.03125, %v216_v52  ;;  %v233_v54 = vmul.f32 %v6039_v48, %v6039_v48  ;;  %v234_v55 = vmul.f32 %v6042_v49, %v6042_v49 }
 0x16d   :  { %v6051_v56 = vsub.f32 %v6012_v26, %v223_v53  ;;  %v245_v57 = vsel %vm198_vm1, %v233_v54, 0.0  ;;  %v248_v58 = vsel %vm198_vm1, %v234_v55, 0.0 }
 0x16e   :  { %246 = vadd.xlane.f32.xlu1 %v245_v57  ;;  %249 = vadd.xlane.f32.xlu0 %v248_v58  ;;  %v312_v57 = vlaneseq }
 0x16f   :  { %v235_v59 = vmul.f32 %v6051_v56, %v6051_v56 }
 0x170   :  { %v6106_v58 = vshrl.u32 %v312_v57, 7 }
 0x171   :  { %v251_v60 = vsel %vm198_vm1, %v235_v59, 0.0 }
 0x172   :  { %252 = vadd.xlane.f32.xlu1 %v251_v60  ;;  %v314_v59 = vsub.s32 0, %v6106_v58 }
 0x1ef   :  { %v238_v6 = vpop.xlane.xlu0 %237 }
 0x1f0   :  { %v254_v7 = vmul.f32 0.03125, %v238_v6 }
 0x1f2   :  { %v260_v8 = vadd.f32 1e-05, %v254_v7 }
 0x1f3   :  { %v241_v9 = vpop.xlane.xlu1 %240  ;;  %v244_v10 = vpop.xlane.xlu0 %243 }
 0x1f4   :  { %5540 = vrsqrt.f32 %v260_v8  ;;  %v255_v12 = vmul.f32 0.03125, %v241_v9  ;;  %v256_v13 = vmul.f32 0.03125, %v244_v10 }
 0x1f6   :  { %v261_v15 = vadd.f32 1e-05, %v255_v12  ;;  %v262_v16 = vadd.f32 1e-05, %v256_v13 }
 0x1f7   :  { %v247_v17 = vpop.xlane.xlu1 %246  ;;  %v250_v19 = vpop.xlane.xlu0 %249 }
 0x1f8   :  { %5542 = vrsqrt.f32 %v261_v15  ;;  %v257_v20 = vmul.f32 0.03125, %v247_v17  ;;  %v258_v21 = vmul.f32 0.03125, %v250_v19 }
 0x1f9   :  { %5544 = vrsqrt.f32 %v262_v16 }
 0x1fa   :  { %v263_v23 = vadd.f32 1e-05, %v257_v20  ;;  %v264_v24 = vadd.f32 1e-05, %v258_v21 }
 0x1fb   :  { %v253_v25 = vpop.xlane.xlu1 %252 }
 0x1fc   :  { %5546 = vrsqrt.f32 %v263_v23  ;;  %v259_v28 = vmul.f32 0.03125, %v253_v25 }
 0x1fd   :  { %5548 = vrsqrt.f32 %v264_v24 }
 0x1fe   :  { %v265_v29 = vadd.f32 1e-05, %v259_v28 }
 0x200   :  { %5550 = vrsqrt.f32 %v265_v29 }
 0x201   :  { %v5541_v30 = vpop.eup %5540 }
 0x202   :  { %v272_v32 = vmul.f32 %v5541_v30, %v6023_v33 }
 0x204   :  { %v284_v35 = vmul.f32 %v4554_v31, %v272_v32 }
 0x205   :  { %v5543_v36 = vpop.eup %5542 }
 0x206   :  { %v5545_v37 = vpop.eup %5544  ;;  %v296_v38 = vadd.f32 %v4555_v34, %v284_v35  ;;  %v273_v41 = vmul.f32 %v5543_v36, %v6031_v40 }
 0x207   :  { %v274_v42 = vmul.f32 %v5545_v37, %v6028_v39 }
 0x208   :  { %4556 = vmatmul.mubr.msk.f32.vlgmr.msra.gmra.mxu1 %vm198_vm1, %v296_v38  ;;  %v285_v43 = vmul.f32 %v4554_v31, %v273_v41 }
 0x209   :  { %v5547_v44 = vpop.eup %5546  ;;  %410 = vmatprep.mubr.f32.mxu1 %v5840_v1  ;;  %v286_v33 = vmul.f32 %v4554_v31, %v274_v42 }
 0x20a   :  { %v297_v45 = vadd.f32 %v4555_v34, %v285_v43  ;;  %v275_v46 = vmul.f32 %v5547_v44, %v6039_v48  ;;  %v5549_v47 = vpop.eup %5548 }
 0x20b   :  { %v298_v50 = vadd.f32 %v4555_v34, %v286_v33  ;;  %v276_v40 = vmul.f32 %v5549_v47, %v6042_v49 }
 0x20c   :  { %4557 = vmatmul.mubr.msk.f32.gmra.mxu1 %vm198_vm1, %v297_v45  ;;  %v287_v51 = vmul.f32 %v4554_v31, %v275_v46 }
 0x20d   :  { %416 = vmatprep.mubr.f32.mxu1 %v5840_v1  ;;  %v5551_v39 = vpop.eup %5550  ;;  %v288_v53 = vmul.f32 %v4554_v31, %v276_v40 }
 0x20e   :  { %v299_v52 = vadd.f32 %v4555_v34, %v287_v51  ;;  %v277_v54 = vmul.f32 %v5551_v39, %v6051_v56  ;;  %v6112_v56 = vld [vmem:[%s7722_s7] sm:$0x3] }
 0x20f   :  { %v300_v48 = vadd.f32 %v4555_v34, %v288_v53  ;;  %v315_v60 = vrot.slane %v6112_v56, %v314_v59 }
 0x210   :  { %4558 = vmatmul.mubr.msk.f32.gmra.mxu1 %vm198_vm1, %v298_v50  ;;  %v289_v55 = vmul.f32 %v4554_v31, %v277_v54 }
 0x211   :  { %422 = vmatprep.mubr.f32.mxu1 %v5840_v1 }
 0x212   :  { %v301_v49 = vadd.f32 %v4555_v34, %v289_v55 }
 0x214   :  { %4559 = vmatmul.mubr.msk.f32.gmra.mxu1 %vm198_vm1, %v299_v52 }
 0x215   :  { %428 = vmatprep.mubr.f32.mxu1 %v5840_v1 }
 0x218   :  { %4560 = vmatmul.mubr.msk.f32.gmra.mxu1 %vm198_vm1, %v300_v48 }
 0x219   :  { %434 = vmatprep.mubr.f32.mxu1 %v5840_v1 }
 0x21c   :  { %4561 = vmatmul.mubr.msk.f32.gmra.mxu1 %vm198_vm1, %v301_v49 }
 0x2c8   :  { %v406_v61 = vpop.f32.mrf.mxu1 }
 0x2c9   :  { %v6117_v62 = vadd.f32 %v406_v61, %v315_v60 }
 0x2ca   :  { %v6119_v63 = vpop.f32.mrf.mxu1 }
 0x2cb   :  { %5073 = vmatprep.mubr.msk.f32.mxu0 %vm82_vm0, %v6117_v62 }
 0x2cc   :  { %v412_v0 = vpop.f32.mrf.mxu1 }
 0x2cd   :  { %v6151_v16 = vadd.f32 %v412_v0, %v315_v60 }
 0x2ce   :  { %v6123_v2 = vpop.f32.mrf.mxu1 }
 0x2d0   :  { %v418_v3 = vpop.f32.mrf.mxu1 }
 0x2d1   :  { %v6145_v15 = vadd.f32 %v418_v3, %v315_v60 }
 0x2d2   :  { %v6125_v4 = vpop.f32.mrf.mxu1 }
 0x2d4   :  { %v424_v5 = vpop.f32.mrf.mxu1 }
 0x2d5   :  { %v6127_v6 = vadd.f32 %v424_v5, %v315_v60 }
 0x2d6   :  { %v6129_v7 = vpop.f32.mrf.mxu1 }
 0x2d7   :  { %453 = vrot.lane.b32.xlu0 %v6127_v6, %s5841_s21 }
 0x2d8   :  { %v430_v8 = vpop.f32.mrf.mxu1 }
 0x2d9   :  { %v6133_v9 = vadd.f32 %v430_v8, %v315_v60 }
 0x2da   :  { %v6135_v10 = vpop.f32.mrf.mxu1 }
 0x2db   :  { %455 = vrot.lane.b32.xlu1 %v6133_v9, %s5841_s21 }
 0x2dc   :  { %v436_v12 = vpop.f32.mrf.mxu1 }
 0x2dd   :  { %v6139_v13 = vadd.f32 %v436_v12, %v315_v60 }
 0x2de   :  { %v6271_v61 = vpop.f32.mrf.mxu1 }
 0x2df   :  { %457 = vrot.lane.b32.xlu0 %v6139_v13, %s5841_s21  ;;  %677 = vrot.lane.b32.xlu1 %v6133_v9, %s5842_s1 }
 0x2e3   :  { %451 = vrot.lane.b32.xlu0 %v6145_v15, %s5841_s21  ;;  %679 = vrot.lane.b32.xlu1 %v6139_v13, %s5842_s1 }
 0x2e7   :  { %449 = vrot.lane.b32.xlu0 %v6151_v16, %s5841_s21  ;;  %675 = vrot.lane.b32.xlu1 %v6127_v6, %s5842_s1 }
 0x2eb   :  { %447 = vrot.lane.b32.xlu0 %v6117_v62, %s5841_s21  ;;  %673 = vrot.lane.b32.xlu1 %v6145_v15, %s5842_s1 }
 0x2ef   :  { %657 = vrot.lane.b32.xlu0 %v6117_v62, %s5843_s22  ;;  %671 = vrot.lane.b32.xlu1 %v6151_v16, %s5842_s1 }
 0x2f3   :  { %663 = vrot.lane.b32.xlu0 %v6127_v6, %s5843_s22  ;;  %669 = vrot.lane.b32.xlu1 %v6117_v62, %s5842_s1 }
 0x2f7   :  { %1162 = vrot.lane.b32.xlu0 %v6139_v13, %s5844_s2  ;;  %659 = vrot.lane.b32.xlu1 %v6151_v16, %s5843_s22 }
 0x2fb   :  { %665 = vrot.lane.b32.xlu0 %v6133_v9, %s5843_s22  ;;  %661 = vrot.lane.b32.xlu1 %v6145_v15, %s5843_s22 }
 0x2ff   :  { %1158 = vrot.lane.b32.xlu0 %v6127_v6, %s5844_s2  ;;  %1160 = vrot.lane.b32.xlu1 %v6133_v9, %s5844_s2 }
 0x303   :  { %1154 = vrot.lane.b32.xlu0 %v6151_v16, %s5844_s2  ;;  %667 = vrot.lane.b32.xlu1 %v6139_v13, %s5843_s22 }
 0x307   :  { %1140 = vrot.lane.b32.xlu0 %v6117_v62, %s7747_s14  ;;  %1156 = vrot.lane.b32.xlu1 %v6145_v15, %s5844_s2 }
 0x30b   :  { %1144 = vrot.lane.b32.xlu0 %v6145_v15, %s7747_s14  ;;  %1152 = vrot.lane.b32.xlu1 %v6117_v62, %s5844_s2 }
 0x30f   :  { %1148 = vrot.lane.b32.xlu0 %v6133_v9, %s7747_s14  ;;  %1142 = vrot.lane.b32.xlu1 %v6151_v16, %s7747_s14 }
 0x313   :  { %886 = vrot.lane.b32.xlu0 %v6133_v9, %s7745_s23  ;;  %1146 = vrot.lane.b32.xlu1 %v6127_v6, %s7747_s14 }
 0x317   :  { %884 = vrot.lane.b32.xlu0 %v6127_v6, %s7745_s23  ;;  %1150 = vrot.lane.b32.xlu1 %v6139_v13, %s7747_s14 }
 0x31b   :  { %880 = vrot.lane.b32.xlu0 %v6151_v16, %s7745_s23  ;;  %882 = vrot.lane.b32.xlu1 %v6145_v15, %s7745_s23 }
 0x31f   :  { %878 = vrot.lane.b32.xlu1 %v6117_v62, %s7745_s23 }
 0x323   :  { %888 = vrot.lane.b32.xlu1 %v6139_v13, %s7745_s23 }
 0x349   :  { %v454_v17 = vpop.permute.xlu0 %453 }
 0x34d   :  { %v456_v19 = vpop.permute.xlu1 %455 }
 0x351   :  { %v678_v20 = vpop.permute.xlu1 %677  ;;  %v458_v21 = vpop.permute.xlu0 %457 }
 0x352   :  { %5061 = vmatprep.subr.msk.mxu0 %vm82_vm0, %v458_v21 }
 0x353   :  { %5062 = vmatpush3.xpose.msk.msra.mxu0 %vm82_vm0, %v458_v21 }
 0x354   :  { %5063 = vmatprep.subr.msk.mxu0 %vm82_vm0, %v456_v19 }
 0x355   :  { %v680_v23 = vpop.permute.xlu1 %679  ;;  %v452_v24 = vpop.permute.xlu0 %451 }
 0x356   :  { %5082 = vmatprep.subr.msk.mxu1 %vm82_vm0, %v680_v23 }
 0x357   :  { %5064 = vmatpush3.xpose.msk.msra.mxu0 %vm82_vm0, %v456_v19  ;;  %5083 = vmatpush3.xpose.msk.msra.mxu1 %vm82_vm0, %v680_v23  ;;  %v6276_v19 = vld [vmem:[%s7757_s3 + $0x8] sm:$0xff] }
 0x358   :  { %5065 = vmatprep.subr.msk.mxu0 %vm82_vm0, %v454_v17  ;;  %5084 = vmatprep.subr.msk.mxu1 %vm82_vm0, %v678_v20 }
 0x359   :  { %v676_v25 = vpop.permute.xlu1 %675  ;;  %v450_v28 = vpop.permute.xlu0 %449 }
 0x35b   :  { %5066 = vmatpush3.xpose.msk.msra.mxu0 %vm82_vm0, %v454_v17  ;;  %5085 = vmatpush3.xpose.msk.msra.mxu1 %vm82_vm0, %v678_v20 }
 0x35c   :  { %5067 = vmatprep.subr.msk.mxu0 %vm82_vm0, %v452_v24  ;;  %5086 = vmatprep.subr.msk.mxu1 %vm82_vm0, %v676_v25 }
 0x35d   :  { %v674_v29 = vpop.permute.xlu1 %673  ;;  %v448_v30 = vpop.permute.xlu0 %447 }
 0x35f   :  { %5068 = vmatpush3.xpose.msk.msra.mxu0 %vm82_vm0, %v452_v24  ;;  %5087 = vmatpush3.xpose.msk.msra.mxu1 %vm82_vm0, %v676_v25  ;;  %v6284_v25 = vld [vmem:[%s7757_s3] sm:$0xff] }
 0x360   :  { %5069 = vmatprep.subr.msk.mxu0 %vm82_vm0, %v450_v28  ;;  %5088 = vmatprep.subr.msk.mxu1 %vm82_vm0, %v674_v29 }
 0x361   :  { %v672_v31 = vpop.permute.xlu1 %671  ;;  %v658_v32 = vpop.permute.xlu0 %657 }
 0x362   :  { %5094 = vmatprep.mubr.msk.f32.mxu1 %vm82_vm0, %v658_v32 }
 0x363   :  { %5070 = vmatpush3.xpose.msk.msra.mxu0 %vm82_vm0, %v450_v28  ;;  %5089 = vmatpush3.xpose.msk.msra.mxu1 %vm82_vm0, %v674_v29 }
 0x364   :  { %5071 = vmatprep.subr.msk.mxu0 %vm82_vm0, %v448_v30  ;;  %5090 = vmatprep.subr.msk.mxu1 %vm82_vm0, %v672_v31 }
 0x365   :  { %v670_v34 = vpop.permute.xlu1 %669  ;;  %v664_v35 = vpop.permute.xlu0 %663 }
 0x367   :  { %5072 = vmatpush3.xpose.msk.msra.mxu0 %vm82_vm0, %v448_v30  ;;  %5091 = vmatpush3.xpose.msk.msra.mxu1 %vm82_vm0, %v672_v31 }
 0x368   :  { %5092 = vmatprep.subr.msk.mxu1 %vm82_vm0, %v670_v34 }
 0x369   :  { %v660_v36 = vpop.permute.xlu1 %659  ;;  %v1163_v37 = vpop.permute.xlu0 %1162 }
 0x36a   :  { %5074 = vmatmul.mubr.msk.f32.vlgmr.msra.gmra.mxu0 %vm82_vm0, %v6151_v16  ;;  %5145 = vmatprep.subr.msk.mxu0 %vm82_vm0, %v1163_v37 }
 0x36b   :  { %5076 = vmatprep.mubr.msk.f32.mxu0 %vm82_vm0, %v6145_v15  ;;  %5093 = vmatpush3.xpose.msk.msra.mxu1 %vm82_vm0, %v670_v34 }
 0x36c   :  { %5146 = vmatpush3.xpose.msk.msra.mxu0 %vm82_vm0, %v1163_v37 }
 0x36d   :  { %v662_v38 = vpop.permute.xlu1 %661  ;;  %v666_v41 = vpop.permute.xlu0 %665 }
 0x36e   :  { %5077 = vmatmul.mubr.msk.f32.gmra.mxu0 %vm82_vm0, %v6127_v6  ;;  %5095 = vmatmul.mubr.msk.f32.vlgmr.msra.gmra.mxu1 %vm82_vm0, %v660_v36 }
 0x36f   :  { %5079 = vmatprep.mubr.msk.f32.mxu0 %vm82_vm0, %v6133_v9  ;;  %5097 = vmatprep.mubr.msk.f32.mxu1 %vm82_vm0, %v662_v38 }
 0x371   :  { %v1161_v42 = vpop.permute.xlu1 %1160  ;;  %v1159_v43 = vpop.permute.xlu0 %1158 }
 0x372   :  { %5080 = vmatmul.mubr.msk.f32.gmra.mxu0 %vm82_vm0, %v6139_v13  ;;  %5098 = vmatmul.mubr.msk.f32.gmra.mxu1 %vm82_vm0, %v664_v35  ;;  %v6297_v35 = vld [vmem:[%s7757_s3 + $0x18] sm:$0xff] }
 0x373   :  { %5147 = vmatprep.subr.msk.mxu0 %vm82_vm0, %v1161_v42  ;;  %5100 = vmatprep.mubr.msk.f32.mxu1 %vm82_vm0, %v666_v41 }
 0x374   :  { %5148 = vmatpush3.xpose.msk.msra.mxu0 %vm82_vm0, %v1161_v42 }
 0x375   :  { %5149 = vmatprep.subr.msk.mxu0 %vm82_vm0, %v1159_v43  ;;  %v668_v44 = vpop.permute.xlu1 %667  ;;  %v1155_v45 = vpop.permute.xlu0 %1154 }
 0x376   :  { %5101 = vmatmul.mubr.msk.f32.gmra.mxu1 %vm82_vm0, %v668_v44 }
 0x378   :  { %5150 = vmatpush3.xpose.msk.msra.mxu0 %vm82_vm0, %v1159_v43 }
 0x379   :  { %v1157_v33 = vpop.permute.xlu1 %1156  ;;  %v1141_v46 = vpop.permute.xlu0 %1140 }
 0x37a   :  { %5151 = vmatprep.subr.msk.mxu0 %vm82_vm0, %v1157_v33  ;;  %5157 = vmatprep.mubr.msk.f32.mxu0 %vm82_vm0, %v1141_v46 }
 0x37c   :  { %5152 = vmatpush3.xpose.msk.msra.mxu0 %vm82_vm0, %v1157_v33 }
 0x37d   :  { %5153 = vmatprep.subr.msk.mxu0 %vm82_vm0, %v1155_v45  ;;  %v1153_v47 = vpop.permute.xlu1 %1152  ;;  %v1145_v51 = vpop.permute.xlu0 %1144 }
 0x380   :  { %5154 = vmatpush3.xpose.msk.msra.mxu0 %vm82_vm0, %v1155_v45 }
 0x381   :  { %5155 = vmatprep.subr.msk.mxu0 %vm82_vm0, %v1153_v47  ;;  %v1143_v50 = vpop.permute.xlu1 %1142  ;;  %v1149_v52 = vpop.permute.xlu0 %1148 }
 0x384   :  { %5156 = vmatpush3.xpose.msk.msra.mxu0 %vm82_vm0, %v1153_v47 }
 0x385   :  { %v1147_v40 = vpop.permute.xlu1 %1146  ;;  %v887_v54 = vpop.permute.xlu0 %886 }
 0x387   :  { %5158 = vmatmul.mubr.msk.f32.vlgmr.msra.gmra.mxu0 %vm82_vm0, %v1143_v50  ;;  %v6317_v50 = vld [vmem:[%s7757_s3 + $0x28] sm:$0xff] }
 0x388   :  { %5160 = vmatprep.mubr.msk.f32.mxu0 %vm82_vm0, %v1145_v51 }
 0x389   :  { %v1151_v39 = vpop.permute.xlu1 %1150  ;;  %v885_v49 = vpop.permute.xlu0 %884 }
 0x38b   :  { %5161 = vmatmul.mubr.msk.f32.gmra.mxu0 %vm82_vm0, %v1147_v40 }
 0x38c   :  { %5163 = vmatprep.mubr.msk.f32.mxu0 %vm82_vm0, %v1149_v52  ;;  %v6327_v52 = vld [vmem:[%s7757_s3 + $0x10] sm:$0xff] }
 0x38d   :  { %v883_v53 = vpop.permute.xlu1 %882  ;;  %v881_v57 = vpop.permute.xlu0 %880 }
 0x38f   :  { %5164 = vmatmul.mubr.msk.f32.gmra.mxu0 %vm82_vm0, %v1151_v39 }
 0x391   :  { %v879_v48 = vpop.permute.xlu1 %878 }
 0x395   :  { %v889_v55 = vpop.permute.xlu1 %888 }
 0x396   :  { %5103 = vmatprep.subr.mxu1 %v889_v55 }
 0x397   :  { %5104 = vmatpush3.msra.mxu1 %v889_v55 }
 0x398   :  { %5105 = vmatprep.subr.mxu1 %v887_v54 }
 0x399   :  { %5106 = vmatpush3.msra.mxu1 %v887_v54 }
 0x39a   :  { %5107 = vmatprep.subr.mxu1 %v885_v49 }
 0x39b   :  { %5108 = vmatpush3.msra.mxu1 %v885_v49 }
 0x39c   :  { %5109 = vmatprep.subr.mxu1 %v883_v53 }
 0x39d   :  { %5110 = vmatpush3.msra.mxu1 %v883_v53 }
 0x39e   :  { %5111 = vmatprep.subr.mxu1 %v881_v57 }
 0x39f   :  { %5112 = vmatpush3.msra.mxu1 %v881_v57 }
 0x3a0   :  { %5113 = vmatprep.subr.mxu1 %v879_v48 }
 0x3a1   :  { %5114 = vmatpush3.msra.mxu1 %v879_v48 }
 0x42a   :  { %v5075_v60 = vpop.f32.mrf.mxu0 }
 0x42b   :  { %v579_v5 = vmul.f32 0.35355338, %v5075_v60 }
 0x42c   :  { %v549_v0 = vpop.f32.mrf.mxu0 }
 0x42d   :  { %v578_v20 = vmul.f32 0.35355338, %v549_v0  ;;  %v6292_v31 = vadd.f32 %v579_v5, %v6276_v19 }
 0x42e   :  { %v5096_v3 = vpop.f32.mrf.mxu1  ;;  %v5078_v12 = vpop.f32.mrf.mxu0 }
 0x42f   :  { %v801_v8 = vmul.f32 0.35355338, %v5096_v3  ;;  %v581_v28 = vmul.f32 0.35355338, %v5078_v12  ;;  %v6302_v38 = vadd.f32 %v578_v20, %v6284_v25  ;;  %v594_v43 = vsel %vm590_vm2, %v6292_v31, -inf  ;;  %v6349_v12 = vld [vmem:[%s7757_s3 + $0x20] sm:$0xff] }
 0x430   :  { %v771_v17 = vpop.f32.mrf.mxu1  ;;  %v559_v32 = vpop.f32.mrf.mxu0 }
 0x431   :  { %v800_v21 = vmul.f32 0.35355338, %v771_v17  ;;  %v6279_v23 = vadd.f32 %v801_v8, %v6276_v19  ;;  %v6307_v44 = vadd.f32 %v581_v28, %v6297_v35  ;;  %v591_v46 = vsel %vm590_vm2, %v6302_v38, -inf }
 0x432   :  { %v5099_v24 = vpop.f32.mrf.mxu1  ;;  %v5081_v45 = vpop.f32.mrf.mxu0  ;;  %v580_v53 = vmul.f32 0.35355338, %v559_v32 }
 0x433   :  { %v815_v29 = vsel %vm590_vm2, %v6279_v23, -inf  ;;  %v6289_v30 = vadd.f32 %v800_v21, %v6284_v25  ;;  %v803_v36 = vmul.f32 0.35355338, %v5099_v24  ;;  %v583_v51 = vmul.f32 0.35355338, %v5081_v45 }
 0x434   :  { %v781_v34 = vpop.f32.mrf.mxu1  ;;  %816 = vmax.xlane.f32.xlu1 %v815_v29  ;;  %v600_v40 = vsel %vm590_vm2, %v6307_v44, -inf  ;;  %v6342_v3 = vadd.f32 %v580_v53, %v6327_v52  ;;  %v569_v5 = vpop.f32.mrf.mxu0 }
 0x435   :  { %v812_v37 = vsel %vm590_vm2, %v6289_v30, -inf  ;;  %v802_v33 = vmul.f32 0.35355338, %v781_v34  ;;  %v6312_v47 = vadd.f32 %v803_v36, %v6297_v35  ;;  %v6337_v57 = vadd.f32 %v583_v51, %v6317_v50 }
 0x436   :  { %v5102_v41 = vpop.f32.mrf.mxu1  ;;  %813 = vmax.xlane.f32.xlu0 %v812_v37  ;;  %v582_v17 = vmul.f32 0.35355338, %v569_v5  ;;  %v597_v20 = vsel %vm590_vm2, %v6342_v3, -inf }
 0x437   :  { %v805_v42 = vmul.f32 0.35355338, %v5102_v41  ;;  %v821_v54 = vsel %vm590_vm2, %v6312_v47, -inf  ;;  %v6332_v48 = vadd.f32 %v802_v33, %v6327_v52  ;;  %v606_v8 = vsel %vm590_vm2, %v6337_v57, -inf }
 0x438   :  { %595 = vmax.xlane.f32.xlu1 %v594_v43  ;;  %v791_v55 = vpop.f32.mrf.mxu1  ;;  %v6359_v34 = vadd.f32 %v582_v17, %v6349_v12 }
 0x439   :  { %v6322_v39 = vadd.f32 %v805_v42, %v6317_v50  ;;  %v804_v60 = vmul.f32 0.35355338, %v791_v55  ;;  %v818_v0 = vsel %vm590_vm2, %v6332_v48, -inf }
 0x43a   :  { %592 = vmax.xlane.f32.xlu0 %v591_v46  ;;  %v603_v42 = vsel %vm590_vm2, %v6359_v34, -inf }
 0x43b   :  { %v827_v49 = vsel %vm590_vm2, %v6322_v39, -inf  ;;  %v6354_v21 = vadd.f32 %v804_v60, %v6349_v12 }
 0x43c   :  { %601 = vmax.xlane.f32.xlu1 %v600_v40 }
 0x43d   :  { %v824_v32 = vsel %vm590_vm2, %v6354_v21, -inf }
 0x43e   :  { %822 = vmax.xlane.f32.xlu0 %v821_v54 }
 0x440   :  { %828 = vmax.xlane.f32.xlu1 %v827_v49 }
 0x442   :  { %819 = vmax.xlane.f32.xlu0 %v818_v0 }
 0x444   :  { %607 = vmax.xlane.f32.xlu1 %v606_v8 }
 0x446   :  { %598 = vmax.xlane.f32.xlu0 %v597_v20 }
 0x447   :  { %v5159_v24 = vpop.f32.mrf.mxu0 }
 0x448   :  { %v1284_v28 = vmul.f32 0.35355338, %v5159_v24 }
 0x449   :  { %v1254_v29 = vpop.f32.mrf.mxu0 }
 0x44a   :  { %v1283_v36 = vmul.f32 0.35355338, %v1254_v29  ;;  %825 = vmax.xlane.f32.xlu0 %v824_v32  ;;  %v6362_v37 = vadd.f32 %v1284_v28, %v6276_v19 }
 0x44b   :  { %v5162_v33 = vpop.f32.mrf.mxu0 }
 0x44c   :  { %v1298_v41 = vsel %vm590_vm2, %v6362_v37, -inf  ;;  %v6369_v43 = vadd.f32 %v1283_v36, %v6284_v25  ;;  %v1286_v0 = vmul.f32 0.35355338, %v5162_v33 }
 0x44d   :  { %1299 = vmax.xlane.f32.xlu1 %v1298_v41  ;;  %v1264_v46 = vpop.f32.mrf.mxu0 }
 0x44e   :  { %604 = vmax.xlane.f32.xlu0 %v603_v42  ;;  %v1295_v45 = vsel %vm590_vm2, %v6369_v43, -inf  ;;  %v1285_v40 = vmul.f32 0.35355338, %v1264_v46  ;;  %v6396_v17 = vadd.f32 %v1286_v0, %v6297_v35 }
 0x44f   :  { %v5165_v51 = vpop.f32.mrf.mxu0 }
 0x450   :  { %v6386_v55 = vadd.f32 %v1285_v40, %v6327_v52  ;;  %v1288_v8 = vmul.f32 0.35355338, %v5165_v51  ;;  %v1304_v20 = vsel %vm590_vm2, %v6396_v17, -inf }
 0x451   :  { %v1274_v53 = vpop.f32.mrf.mxu0 }
 0x452   :  { %1296 = vmax.xlane.f32.xlu0 %v1295_v45  ;;  %v1287_v54 = vmul.f32 0.35355338, %v1274_v53  ;;  %v1301_v49 = vsel %vm590_vm2, %v6386_v55, -inf  ;;  %v6401_v24 = vadd.f32 %v1288_v8, %v6317_v50 }
 0x454   :  { %v6391_v60 = vadd.f32 %v1287_v54, %v6349_v12  ;;  %v1310_v28 = vsel %vm590_vm2, %v6401_v24, -inf }
 0x456   :  { %v1307_v5 = vsel %vm590_vm2, %v6391_v60, -inf }
 0x45e   :  { %1017 = vrot.lane.b32.xlu1 %v6133_v9, %s7743_s27 }
 0x462   :  { %1015 = vrot.lane.b32.xlu1 %v6127_v6, %s7743_s27 }
 0x466   :  { %1013 = vrot.lane.b32.xlu1 %v6145_v15, %s7743_s27 }
 0x468   :  { %1019 = vrot.lane.b32.xlu0 %v6139_v13, %s7743_s27 }
 0x46a   :  { %1011 = vrot.lane.b32.xlu1 %v6151_v16, %s7743_s27 }
 0x46e   :  { %1009 = vrot.lane.b32.xlu1 %v6117_v62, %s7743_s27  ;;  %s7762_s27 = smov 72  }
 0x487   :  { %1302 = vmax.xlane.f32.xlu0 %v1301_v49 }
 0x48b   :  { %1308 = vmax.xlane.f32.xlu0 %v1307_v5 }
 0x492   :  { %1305 = vmax.xlane.f32.xlu1 %v1304_v20 }
 0x496   :  { %1311 = vmax.xlane.f32.xlu1 %v1310_v28 }
 0x4bd   :  { %v817_v29 = vpop.xlane.xlu1 %816 }
 0x4be   :  { %v831_v32 = vsub.f32 %v6279_v23, %v817_v29 }
 0x4bf   :  { %v814_v36 = vpop.xlane.xlu0 %813 }
 0x4c0   :  { %v838_v41 = vmul.f32 1.442695, %v831_v32  ;;  %v830_v42 = vsub.f32 %v6289_v30, %v814_v36 }
 0x4c1   :  { %v596_v45 = vpop.xlane.xlu1 %595 }
 0x4c2   :  { %5552 = vpow2.f32 %v838_v41  ;;  %v836_v33 = vmul.f32 1.442695, %v830_v42  ;;  %v610_v46 = vsub.f32 %v6292_v31, %v596_v45 }
 0x4c3   :  { %v593_v51 = vpop.xlane.xlu0 %592 }
 0x4c4   :  { %5554 = vpow2.f32 %v836_v33  ;;  %v617_v40 = vmul.f32 1.442695, %v610_v46  ;;  %v609_v53 = vsub.f32 %v6302_v38, %v593_v51 }
 0x4c5   :  { %v602_v54 = vpop.xlane.xlu1 %601 }
 0x4c6   :  { %5556 = vpow2.f32 %v617_v40  ;;  %v615_v49 = vmul.f32 1.442695, %v609_v53  ;;  %v612_v0 = vsub.f32 %v6307_v44, %v602_v54 }
 0x4c7   :  { %v823_v23 = vpop.xlane.xlu0 %822 }
 0x4c8   :  { %5558 = vpow2.f32 %v615_v49  ;;  %v621_v5 = vmul.f32 1.442695, %v612_v0  ;;  %v833_v30 = vsub.f32 %v6312_v47, %v823_v23 }
 0x4c9   :  { %v829_v8 = vpop.xlane.xlu1 %828 }
 0x4ca   :  { %5560 = vpow2.f32 %v621_v5  ;;  %v842_v20 = vmul.f32 1.442695, %v833_v30  ;;  %v835_v31 = vsub.f32 %v6322_v39, %v829_v8 }
 0x4cb   :  { %v820_v28 = vpop.xlane.xlu0 %819 }
 0x4cc   :  { %5562 = vpow2.f32 %v842_v20  ;;  %v846_v29 = vmul.f32 1.442695, %v835_v31  ;;  %v832_v38 = vsub.f32 %v6332_v48, %v820_v28 }
 0x4cd   :  { %v608_v32 = vpop.xlane.xlu1 %607 }
 0x4ce   :  { %5564 = vpow2.f32 %v846_v29  ;;  %v840_v36 = vmul.f32 1.442695, %v832_v38  ;;  %v614_v44 = vsub.f32 %v6337_v57, %v608_v32 }
 0x4cf   :  { %v6414_v41 = vpop.eup %5552  ;;  %v599_v42 = vpop.xlane.xlu0 %598 }
 0x4d0   :  { %5566 = vpow2.f32 %v840_v36  ;;  %v611_v47 = vsub.f32 %v6342_v3, %v599_v42  ;;  %v851_v45 = vsel %vm590_vm2, %v6414_v41, 0.0  ;;  %v625_v33 = vmul.f32 1.442695, %v614_v44 }
 0x4d1   :  { %v6419_v39 = vpop.eup %5554  ;;  %852 = vadd.xlane.f32.xlu1 %v851_v45 }
 0x4d2   :  { %v619_v46 = vmul.f32 1.442695, %v611_v47  ;;  %v848_v48 = vsel %vm590_vm2, %v6419_v39, 0.0 }
 0x4d3   :  { %v6423_v51 = vpop.eup %5556  ;;  %849 = vadd.xlane.f32.xlu0 %v848_v48  ;;  %v826_v57 = vpop.xlane.xlu0 %825 }
 0x4d4   :  { %5568 = vpow2.f32 %v619_v46  ;;  %v834_v40 = vsub.f32 %v6354_v21, %v826_v57  ;;  %v630_v3 = vsel %vm590_vm2, %v6423_v51, 0.0 }
 0x4d5   :  { %v6428_v53 = vpop.eup %5558  ;;  %631 = vadd.xlane.f32.xlu1 %v630_v3  ;;  %5570 = vpow2.f32 %v625_v33 }
 0x4d6   :  { %v844_v54 = vmul.f32 1.442695, %v834_v40  ;;  %v627_v49 = vsel %vm590_vm2, %v6428_v53, 0.0  ;;  %v1300_v33 = vpop.xlane.xlu1 %1299 }
 0x4d7   :  { %v6432_v0 = vpop.eup %5560  ;;  %628 = vadd.xlane.f32.xlu0 %v627_v49  ;;  %v605_v23 = vpop.xlane.xlu0 %604 }
 0x4d8   :  { %5572 = vpow2.f32 %v844_v54  ;;  %v636_v21 = vsel %vm590_vm2, %v6432_v0, 0.0  ;;  %v613_v46 = vsub.f32 %v6359_v34, %v605_v23  ;;  %v1314_v54 = vsub.f32 %v6362_v37, %v1300_v33 }
 0x4d9   :  { %v6434_v5 = vpop.eup %5562 }
 0x4da   :  { %v857_v30 = vsel %vm590_vm2, %v6434_v5, 0.0  ;;  %v6468_v48 = vpop.permute.xlu1 %1017  ;;  %v623_v57 = vmul.f32 1.442695, %v613_v46 }
 0x4db   :  { %v6440_v8 = vpop.eup %5564  ;;  %637 = vadd.xlane.f32.xlu0 %v636_v21  ;;  %858 = vadd.xlane.f32.xlu1 %v857_v30  ;;  %v1297_v20 = vpop.xlane.xlu0 %1296  ;;  %v1321_v21 = vmul.f32 1.442695, %v1314_v54 }
 0x4dc   :  { %v863_v28 = vsel %vm590_vm2, %v6440_v8, 0.0  ;;  %v1313_v40 = vsub.f32 %v6369_v43, %v1297_v20  ;;  %5574 = vpow2.f32 %v623_v57 }
 0x4dd   :  { %v6442_v31 = vpop.eup %5566 }
 0x4de   :  { %v854_v29 = vsel %vm590_vm2, %v6442_v31, 0.0  ;;  %v6473_v3 = vpop.permute.xlu1 %1015  ;;  %v1319_v49 = vmul.f32 1.442695, %v1313_v40 }
 0x4df   :  { %864 = vadd.xlane.f32.xlu1 %v863_v28  ;;  %855 = vadd.xlane.f32.xlu0 %v854_v29  ;;  %v6448_v38 = vpop.permute.xlu0 %1019 }
 0x4e0   :  { %5124 = vmatprep.subr.mxu1 %v6448_v38  ;;  %5576 = vpow2.f32 %v1319_v49 }
 0x4e1   :  { %v6451_v32 = vpop.eup %5568  ;;  %5578 = vpow2.f32 %v1321_v21 }
 0x4e2   :  { %v633_v36 = vsel %vm590_vm2, %v6451_v32, 0.0  ;;  %v6455_v44 = vpop.eup %5570  ;;  %v6476_v30 = vpop.permute.xlu1 %1013 }
 0x4e3   :  { %634 = vadd.xlane.f32.xlu0 %v633_v36  ;;  %v642_v42 = vsel %vm590_vm2, %v6455_v44, 0.0 }
 0x4e5   :  { %v6459_v47 = vpop.eup %5572 }
 0x4e6   :  { %v860_v45 = vsel %vm590_vm2, %v6459_v47, 0.0  ;;  %v6478_v23 = vpop.permute.xlu1 %1011 }
 0x4e7   :  { %643 = vadd.xlane.f32.xlu0 %v642_v42 }
 0x4e9   :  { %v6481_v36 = vpop.eup %5574 }
 0x4ea   :  { %v6483_v43 = vpop.permute.xlu1 %1009  ;;  %v639_v37 = vsel %vm590_vm2, %v6481_v36, 0.0 }
 0x4eb   :  { %861 = vadd.xlane.f32.xlu0 %v860_v45 }
 0x4ed   :  { %v6487_v20 = vpop.eup %5576 }
 0x4ee   :  { %v1331_v33 = vsel %vm590_vm2, %v6487_v20, 0.0  ;;  %v6491_v46 = vpop.eup %5578 }
 0x4ef   :  { %v1334_v40 = vsel %vm590_vm2, %v6491_v46, 0.0 }
 0x4f0   :  { %1500 = vrot.lane.b32.xlu1 %v6133_v9, %s7741_s28 }
 0x4f4   :  { %1498 = vrot.lane.b32.xlu1 %v6127_v6, %s7741_s28 }
 0x501   :  { %1502 = vrot.lane.b32.xlu0 %v6139_v13, %s7741_s28 }
 0x510   :  { %v1303_v34 = vpop.xlane.xlu0 %1302 }
 0x511   :  { %v1315_v28 = vsub.f32 %v6386_v55, %v1303_v34 }
 0x513   :  { %v1323_v29 = vmul.f32 1.442695, %v1315_v28 }
 0x514   :  { %v1309_v42 = vpop.xlane.xlu0 %1308 }
 0x515   :  { %5580 = vpow2.f32 %v1323_v29  ;;  %v1317_v55 = vsub.f32 %v6391_v60, %v1309_v42 }
 0x517   :  { %v1327_v21 = vmul.f32 1.442695, %v1317_v55 }
 0x518   :  { %640 = vadd.xlane.f32.xlu1 %v639_v37 }
 0x51b   :  { %v1306_v45 = vpop.xlane.xlu1 %1305 }
 0x51c   :  { %1332 = vadd.xlane.f32.xlu1 %v1331_v33  ;;  %v1316_v42 = vsub.f32 %v6396_v17, %v1306_v45 }
 0x51e   :  { %v1325_v33 = vmul.f32 1.442695, %v1316_v42 }
 0x51f   :  { %v1312_v57 = vpop.xlane.xlu1 %1311 }
 0x520   :  { %v1318_v54 = vsub.f32 %v6401_v24, %v1312_v57  ;;  %1335 = vadd.xlane.f32.xlu0 %v1334_v40 }
 0x522   :  { %v6497_v49 = vpop.eup %5580  ;;  %v1329_v34 = vmul.f32 1.442695, %v1318_v54 }
 0x523   :  { %v1337_v28 = vsel %vm590_vm2, %v6497_v49, 0.0 }
 0x524   :  { %5582 = vpow2.f32 %v1329_v34  ;;  %1338 = vadd.xlane.f32.xlu0 %v1337_v28 }
 0x525   :  { %5584 = vpow2.f32 %v1327_v21 }
 0x526   :  { %5586 = vpow2.f32 %v1325_v33 }
 0x52d   :  { %1496 = vrot.lane.b32.xlu1 %v6145_v15, %s7741_s28 }
 0x531   :  { %v6503_v60 = vpop.eup %5582 }
 0x532   :  { %v1346_v29 = vsel %vm590_vm2, %v6503_v60, 0.0  ;;  %v6507_v24 = vpop.eup %5584 }
 0x533   :  { %1347 = vadd.xlane.f32.xlu0 %v1346_v29  ;;  %v1343_v37 = vsel %vm590_vm2, %v6507_v24, 0.0  ;;  %v6512_v55 = vpop.eup %5586 }
 0x534   :  { %v1340_v57 = vsel %vm590_vm2, %v6512_v55, 0.0 }
 0x537   :  { %1344 = vadd.xlane.f32.xlu0 %v1343_v37 }
 0x54d   :  { %1494 = vrot.lane.b32.xlu0 %v6151_v16, %s7741_s28 }
 0x551   :  { %1480 = vrot.lane.b32.xlu0 %v6117_v62, %s7739_s29  ;;  %1341 = vadd.xlane.f32.xlu1 %v1340_v57 }
 0x555   :  { %1484 = vrot.lane.b32.xlu0 %v6145_v15, %s7739_s29 }
 0x559   :  { %1488 = vrot.lane.b32.xlu0 %v6133_v9, %s7739_s29 }
 0x55a   :  { %v853_v17 = vpop.xlane.xlu1 %852 }
 0x55b   :  { %5588 = vrcp.f32 %v853_v17 }
 0x55c   :  { %v850_v45 = vpop.xlane.xlu0 %849 }
 0x55d   :  { %5590 = vrcp.f32 %v850_v45 }
 0x55e   :  { %v632_v54 = vpop.xlane.xlu1 %631 }
 0x560   :  { %v629_v40 = vpop.xlane.xlu0 %628 }
 0x562   :  { %1492 = vrot.lane.b32.xlu1 %v6117_v62, %s7741_s28  ;;  %s7758_s28 = sld [smem:[#allocation9_spill]] }
 0x564   :  { %v638_v21 = vpop.xlane.xlu0 %637  ;;  %v859_v34 = vpop.xlane.xlu1 %858 }
 0x565   :  { %5592 = vrcp.f32 %v859_v34 }
 0x566   :  { %1482 = vrot.lane.b32.xlu1 %v6151_v16, %s7739_s29 }
 0x568   :  { %v856_v28 = vpop.xlane.xlu0 %855  ;;  %v5589_v29 = vpop.eup %5588 }
 0x569   :  { %5594 = vrcp.f32 %v856_v28  ;;  %v873_v37 = vmul.f32 %v5589_v29, %v6414_v41  ;;  %v865_v16 = vpop.xlane.xlu1 %864 }
 0x56a   :  { %v5591_v15 = vpop.eup %5590  ;;  %1486 = vrot.lane.b32.xlu1 %v6127_v6, %s7739_s29  ;;  %v318_v6 = vsub.s32 1, %v6106_v58  ;;  %5596 = vrcp.f32 %v629_v40 }
 0x56b   :  { %v872_v9 = vmul.f32 %v5591_v15, %v6419_v39  ;;  %5598 = vrcp.f32 %v865_v16 }
 0x56c   :  { %v635_v42 = vpop.xlane.xlu0 %634  ;;  %v319_v39 = vrot.slane %v6112_v56, %v318_v6 }
 0x56d   :  { %5115 = vmatprep.mubr.msk.f32.mxu1 %vm590_vm2, %v872_v9 }
 0x56e   :  { %1490 = vrot.lane.b32.xlu1 %v6139_v13, %s7739_s29  ;;  %5116 = vmatmul.mubr.msk.f32.vlgmr.msra.gmra.mxu1 %vm590_vm2, %v873_v37 }
 0x56f   :  { %5125 = vmatpush3.msra.mxu1 %v6448_v38 }
 0x570   :  { %5126 = vmatprep.subr.mxu1 %v6468_v48  ;;  %v6538_v62 = vpop.xlane.xlu0 %643 }
 0x571   :  { %5127 = vmatpush3.msra.mxu1 %v6468_v48  ;;  %v6552_v48 = vadd.f32 %v6271_v61, %v319_v39 }
 0x572   :  { %5128 = vmatprep.subr.mxu1 %v6473_v3  ;;  %v5593_v41 = vpop.eup %5592 }
 0x573   :  { %5129 = vmatpush3.msra.mxu1 %v6473_v3 }
 0x574   :  { %5130 = vmatprep.subr.mxu1 %v6476_v30  ;;  %v862_v13 = vpop.xlane.xlu0 %861 }
 0x575   :  { %5131 = vmatpush3.msra.mxu1 %v6476_v30  ;;  %5600 = vrcp.f32 %v862_v13  ;;  %v875_v30 = vmul.f32 %v5593_v41, %v6434_v5 }
 0x576   :  { %5132 = vmatprep.subr.mxu1 %v6478_v23  ;;  %v5595_v38 = vpop.eup %5594  ;;  %5602 = vrcp.f32 %v632_v54  ;;  %v6570_v54 = vadd.f32 %v6135_v10, %v319_v39  ;;  %v6588_v10 = vadd.f32 %v6123_v2, %v319_v39  ;;  %v1501_v2 = vpop.permute.xlu1 %1500 }
 0x577   :  { %5133 = vmatpush3.msra.mxu1 %v6478_v23  ;;  %v874_v3 = vmul.f32 %v5595_v38, %v6442_v31  ;;  %5604 = vrcp.f32 %v635_v42  ;;  %v5597_v56 = vpop.eup %5596 }
 0x578   :  { %5134 = vmatprep.subr.mxu1 %v6483_v43  ;;  %5606 = vrcp.f32 %v638_v21  ;;  %v5599_v61 = vpop.eup %5598 }
 0x579   :  { %5135 = vmatpush3.msra.mxu1 %v6483_v43  ;;  %5118 = vmatprep.mubr.msk.f32.mxu1 %vm590_vm2, %v874_v3  ;;  %v877_v57 = vmul.f32 %v5599_v61, %v6440_v8  ;;  %v651_v43 = vmul.f32 %v5597_v56, %v6428_v53  ;;  %v6576_v53 = vadd.f32 %v6129_v7, %v319_v39  ;;  %5608 = vrcp.f32 %v6538_v62 }
 0x57a   :  { %5166 = vmatprep.subr.mxu1 %v6552_v48  ;;  %5119 = vmatmul.mubr.msk.f32.gmra.mxu1 %vm590_vm2, %v875_v30  ;;  %v6593_v7 = vadd.f32 %v6119_v63, %v319_v39 }
 0x582   :  { %v5601_v23 = vpop.eup %5600 }
 0x583   :  { %v876_v33 = vmul.f32 %v5601_v23, %v6459_v47  ;;  %v5603_v31 = vpop.eup %5602 }
 0x584   :  { %v5605_v5 = vpop.eup %5604  ;;  %v652_v17 = vmul.f32 %v5603_v31, %v6423_v51  ;;  %v6582_v51 = vadd.f32 %v6125_v4, %v319_v39  ;;  %v1503_v4 = vpop.permute.xlu0 %1502 }
 0x585   :  { %5121 = vmatprep.mubr.msk.f32.mxu1 %vm590_vm2, %v876_v33  ;;  %v5607_v45 = vpop.eup %5606  ;;  %v653_v40 = vmul.f32 %v5605_v5, %v6451_v32 }
 0x586   :  { %5122 = vmatmul.mubr.msk.f32.gmra.mxu1 %vm590_vm2, %v877_v57  ;;  %v654_v8 = vmul.f32 %v5607_v45, %v6432_v0  ;;  %v1499_v0 = vpop.permute.xlu1 %1498  ;;  %v5609_v34 = vpop.eup %5608 }
 0x587   :  { %5136 = vmatprep.mubr.msk.f32.mxu1 %vm590_vm2, %v651_v43  ;;  %v656_v15 = vmul.f32 %v5609_v34, %v6455_v44 }
 0x58a   :  { %5137 = vmatmul.mubr.msk.f32.vlgmr.msra.gmra.mxu1 %vm590_vm2, %v652_v17 }
 0x58b   :  { %5167 = vmatpush3.msra.mxu1 %v6552_v48  ;;  %5139 = vmatprep.mubr.msk.f32.mxu1 %vm590_vm2, %v653_v40 }
 0x58c   :  { %5168 = vmatprep.subr.mxu1 %v6570_v54 }
 0x58d   :  { %5169 = vmatpush3.msra.mxu1 %v6570_v54 }
 0x58e   :  { %5170 = vmatprep.subr.mxu1 %v6576_v53  ;;  %5140 = vmatmul.mubr.msk.f32.gmra.mxu1 %vm590_vm2, %v654_v8 }
 0x58f   :  { %5171 = vmatpush3.msra.mxu1 %v6576_v53 }
 0x590   :  { %5172 = vmatprep.subr.mxu1 %v6582_v51 }
 0x591   :  { %5173 = vmatpush3.msra.mxu1 %v6582_v51 }
 0x592   :  { %5174 = vmatprep.subr.mxu1 %v6588_v10 }
 0x593   :  { %5175 = vmatpush3.msra.mxu1 %v6588_v10 }
 0x594   :  { %5176 = vmatprep.subr.mxu1 %v6593_v7 }
 0x595   :  { %5177 = vmatpush3.msra.mxu1 %v6593_v7 }
 0x596   :  { %5187 = vmatprep.subr.msk.mxu1 %vm82_vm0, %v1503_v4 }
 0x5a1   :  { %v641_v32 = vpop.xlane.xlu1 %640 }
 0x5a2   :  { %5610 = vrcp.f32 %v641_v32 }
 0x5a5   :  { %v1333_v47 = vpop.xlane.xlu1 %1332 }
 0x5a6   :  { %5612 = vrcp.f32 %v1333_v47 }
 0x5a9   :  { %v1336_v63 = vpop.xlane.xlu0 %1335  ;;  %v1497_v13 = vpop.permute.xlu1 %1496 }
 0x5aa   :  { %5614 = vrcp.f32 %v1336_v63 }
 0x5ad   :  { %v1339_v21 = vpop.xlane.xlu0 %1338 }
 0x5ae   :  { %5616 = vrcp.f32 %v1339_v21 }
 0x5af   :  { %v5611_v28 = vpop.eup %5610 }
 0x5b0   :  { %v655_v29 = vmul.f32 %v5611_v28, %v6481_v36 }
 0x5b2   :  { %5142 = vmatprep.mubr.msk.f32.mxu1 %vm590_vm2, %v655_v29 }
 0x5b3   :  { %v5613_v9 = vpop.eup %5612  ;;  %5143 = vmatmul.mubr.msk.f32.gmra.mxu1 %vm590_vm2, %v656_v15 }
 0x5b4   :  { %v1355_v37 = vmul.f32 %v5613_v9, %v6487_v20 }
 0x5b6   :  { %5178 = vmatprep.mubr.msk.f32.mxu1 %vm590_vm2, %v1355_v37 }
 0x5b7   :  { %v5615_v42 = vpop.eup %5614 }
 0x5b8   :  { %v1356_v62 = vmul.f32 %v5615_v42, %v6491_v46 }
 0x5ba   :  { %5179 = vmatmul.mubr.msk.f32.vlgmr.msra.gmra.mxu1 %vm590_vm2, %v1356_v62 }
 0x5bb   :  { %v5617_v16 = vpop.eup %5616  ;;  %5188 = vmatpush3.xpose.msk.msra.mxu1 %vm82_vm0, %v1503_v4 }
 0x5bc   :  { %5189 = vmatprep.subr.msk.mxu1 %vm82_vm0, %v1501_v2  ;;  %v1348_v44 = vpop.xlane.xlu0 %1347  ;;  %v1357_v36 = vmul.f32 %v5617_v16, %v6497_v49 }
 0x5be   :  { %5181 = vmatprep.mubr.msk.f32.mxu1 %vm590_vm2, %v1357_v36 }
 0x5bf   :  { %5190 = vmatpush3.xpose.msk.msra.mxu1 %vm82_vm0, %v1501_v2 }
 0x5c0   :  { %5191 = vmatprep.subr.msk.mxu1 %vm82_vm0, %v1499_v0  ;;  %v1345_v20 = vpop.xlane.xlu0 %1344 }
 0x5c1   :  { %5618 = vrcp.f32 %v1345_v20 }
 0x5c3   :  { %5192 = vmatpush3.xpose.msk.msra.mxu1 %vm82_vm0, %v1499_v0 }
 0x5c4   :  { %5193 = vmatprep.subr.msk.mxu1 %vm82_vm0, %v1497_v13  ;;  %v1495_v46 = vpop.permute.xlu0 %1494 }
 0x5c7   :  { %5194 = vmatpush3.xpose.msk.msra.mxu1 %vm82_vm0, %v1497_v13 }
 0x5c8   :  { %5195 = vmatprep.subr.msk.mxu1 %vm82_vm0, %v1495_v46  ;;  %v1481_v61 = vpop.permute.xlu0 %1480 }
 0x5cb   :  { %5196 = vmatpush3.xpose.msk.msra.mxu1 %vm82_vm0, %v1495_v46 }
 0x5cc   :  { %v1485_v57 = vpop.permute.xlu0 %1484 }
 0x5ce   :  { %v5619_v39 = vpop.eup %5618 }
 0x5cf   :  { %v1359_v56 = vmul.f32 %v5619_v39, %v6507_v24 }
 0x5da   :  { %v1342_v49 = vpop.xlane.xlu1 %1341 }
 0x5db   :  { %5620 = vrcp.f32 %v1342_v49 }
 0x5dc   :  { %5622 = vrcp.f32 %v1348_v44 }
 0x5de   :  { %v1493_v41 = vpop.permute.xlu1 %1492 }
 0x5df   :  { %5197 = vmatprep.subr.msk.mxu1 %vm82_vm0, %v1493_v41 }
 0x5e0   :  { %5198 = vmatpush3.xpose.msk.msra.mxu1 %vm82_vm0, %v1493_v41 }
 0x5e2   :  { %v1483_v33 = vpop.permute.xlu1 %1482 }
 0x5e6   :  { %v1487_v31 = vpop.permute.xlu1 %1486 }
 0x5e8   :  { %v5621_v38 = vpop.eup %5620 }
 0x5e9   :  { %v1358_v3 = vmul.f32 %v5621_v38, %v6512_v55  ;;  %v5623_v30 = vpop.eup %5622  ;;  %v1489_v55 = vpop.permute.xlu0 %1488 }
 0x5ea   :  { %v1360_v23 = vmul.f32 %v5623_v30, %v6503_v60  ;;  %v1491_v24 = vpop.permute.xlu1 %1490 }
 0x5eb   :  { %5182 = vmatmul.mubr.msk.f32.gmra.mxu1 %vm590_vm2, %v1358_v3 }
 0x5ec   :  { %5184 = vmatprep.mubr.msk.f32.mxu1 %vm590_vm2, %v1359_v56 }
 0x5ef   :  { %5185 = vmatmul.mubr.msk.f32.gmra.mxu1 %vm590_vm2, %v1360_v23 }
 0x5f0   :  { %5199 = vmatprep.mubr.msk.f32.mxu1 %vm82_vm0, %v1481_v61 }
 0x5f3   :  { %5200 = vmatmul.mubr.msk.f32.vlgmr.msra.gmra.mxu1 %vm82_vm0, %v1483_v33 }
 0x5f4   :  { %5202 = vmatprep.mubr.msk.f32.mxu1 %vm82_vm0, %v1485_v57 }
 0x5f7   :  { %5203 = vmatmul.mubr.msk.f32.gmra.mxu1 %vm82_vm0, %v1487_v31 }
 0x5f8   :  { %5205 = vmatprep.mubr.msk.f32.mxu1 %vm82_vm0, %v1489_v55 }
 0x5fb   :  { %5206 = vmatmul.mubr.msk.f32.gmra.mxu1 %vm82_vm0, %v1491_v24 }
 0x62e   :  { %v5117_v60 = vpop.f32.mrf.mxu1 }
 0x630   :  { %v980_v43 = vpop.f32.mrf.mxu1 }
 0x63a   :  { %v5120_v5 = vpop.f32.mrf.mxu1 }
 0x63c   :  { %v990_v17 = vpop.f32.mrf.mxu1 }
 0x646   :  { %v5123_v45 = vpop.f32.mrf.mxu1 }
 0x648   :  { %v1000_v40 = vpop.f32.mrf.mxu1 }
 0x64a   :  { %v5138_v8 = vpop.f32.mrf.mxu1 }
 0x64b   :  { %v1117_v4 = vadd.f32 %v5138_v8, %v5117_v60 }
 0x64c   :  { %v1111_v2 = vpop.f32.mrf.mxu1 }
 0x64d   :  { %v1112_v0 = vadd.f32 %v1111_v2, %v980_v43 }
 0x64e   :  { %v5141_v32 = vpop.f32.mrf.mxu1 }
 0x64f   :  { %v1127_v47 = vadd.f32 %v5141_v32, %v5120_v5 }
 0x650   :  { %v1121_v63 = vpop.f32.mrf.mxu1 }
 0x651   :  { %v1122_v21 = vadd.f32 %v1121_v63, %v990_v17 }
 0x673   :  { %v5144_v34 = vpop.f32.mrf.mxu1 }
 0x674   :  { %v1137_v28 = vadd.f32 %v5144_v34, %v5123_v45 }
 0x675   :  { %v1131_v29 = vpop.f32.mrf.mxu1 }
 0x676   :  { %v1132_v15 = vadd.f32 %v1131_v29, %v1000_v40 }
 0x67a   :  { %v5180_v9 = vpop.f32.mrf.mxu1 }
 0x67b   :  { %v6634_v37 = vadd.f32 %v5180_v9, %v1117_v4 }
 0x67c   :  { %v1445_v42 = vpop.f32.mrf.mxu1 }
 0x67d   :  { %v6636_v62 = vadd.f32 %v1445_v42, %v1112_v0 }
 0x6ab   :  { %v5183_v16 = vpop.f32.mrf.mxu1 }
 0x6ac   :  { %v6638_v44 = vadd.f32 %v5183_v16, %v1127_v47 }
 0x6ad   :  { %v1455_v36 = vpop.f32.mrf.mxu1 }
 0x6ae   :  { %v6640_v20 = vadd.f32 %v1455_v36, %v1122_v21 }
 0x6af   :  { %v5186_v13 = vpop.f32.mrf.mxu1 }
 0x6b0   :  { %v6642_v46 = vadd.f32 %v5186_v13, %v1137_v28 }
 0x6b1   :  { %v1465_v49 = vpop.f32.mrf.mxu1 }
 0x6b2   :  { %v6644_v41 = vadd.f32 %v1465_v49, %v1132_v15 }
 0x6b3   :  { %v5201_v39 = vpop.f32.mrf.mxu1 }
 0x6b4   :  { %v1624_v38 = vmul.f32 0.35355338, %v5201_v39 }
 0x6b5   :  { %v1594_v3 = vpop.f32.mrf.mxu1 }
 0x6b6   :  { %v1630_v30 = vadd.f32 %v1624_v38, %v6276_v19  ;;  %v1623_v56 = vmul.f32 0.35355338, %v1594_v3 }
 0x6b7   :  { %v5204_v61 = vpop.f32.mrf.mxu1 }
 0x6b8   :  { %v1629_v23 = vadd.f32 %v1623_v56, %v6284_v25  ;;  %v1638_v33 = vsel %vm590_vm2, %v1630_v30, -inf  ;;  %v1626_v31 = vmul.f32 0.35355338, %v5204_v61 }
 0x6b9   :  { %1639 = vmax.xlane.f32.xlu1 %v1638_v33  ;;  %v1604_v57 = vpop.f32.mrf.mxu1 }
 0x6ba   :  { %v1625_v55 = vmul.f32 0.35355338, %v1604_v57  ;;  %v1635_v24 = vsel %vm590_vm2, %v1629_v23, -inf  ;;  %v1632_v19 = vadd.f32 %v1626_v31, %v6297_v35 }
 0x6bb   :  { %1636 = vmax.xlane.f32.xlu0 %v1635_v24  ;;  %v5207_v60 = vpop.f32.mrf.mxu1 }
 0x6bc   :  { %v1631_v43 = vadd.f32 %v1625_v55, %v6327_v52  ;;  %v1628_v5 = vmul.f32 0.35355338, %v5207_v60  ;;  %v1644_v2 = vsel %vm590_vm2, %v1632_v19, -inf }
 0x6bd   :  { %v1614_v17 = vpop.f32.mrf.mxu1 }
 0x6be   :  { %v1634_v45 = vadd.f32 %v1628_v5, %v6317_v50  ;;  %v1627_v40 = vmul.f32 0.35355338, %v1614_v17  ;;  %v1641_v25 = vsel %vm590_vm2, %v1631_v43, -inf }
 0x6bf   :  { %1642 = vmax.xlane.f32.xlu0 %v1641_v25 }
 0x6c0   :  { %v1650_v8 = vsel %vm590_vm2, %v1634_v45, -inf  ;;  %v1633_v4 = vadd.f32 %v1627_v40, %v6349_v12 }
 0x6c1   :  { %1651 = vmax.xlane.f32.xlu1 %v1650_v8 }
 0x6c2   :  { %v1647_v52 = vsel %vm590_vm2, %v1633_v4, -inf }
 0x6c3   :  { %1645 = vmax.xlane.f32.xlu0 %v1644_v2 }
 0x6c7   :  { %1648 = vmax.xlane.f32.xlu0 %v1647_v52 }
 0x6d2   :  { %1715 = vrot.lane.b32.xlu1 %v6570_v54, %s5841_s21 }
 0x6d6   :  { %1713 = vrot.lane.b32.xlu1 %v6576_v53, %s5841_s21 }
 0x6da   :  { %1711 = vrot.lane.b32.xlu1 %v6582_v51, %s5841_s21 }
 0x6dd   :  { %1717 = vrot.lane.b32.xlu0 %v6552_v48, %s5841_s21 }
 0x742   :  { %v1640_v35 = vpop.xlane.xlu1 %1639 }
 0x743   :  { %v1654_v50 = vsub.f32 %v1630_v30, %v1640_v35 }
 0x744   :  { %v1637_v12 = vpop.xlane.xlu0 %1636 }
 0x745   :  { %v1661_v0 = vmul.f32 1.442695, %v1654_v50  ;;  %v1653_v32 = vsub.f32 %v1629_v23, %v1637_v12 }
 0x747   :  { %5624 = vpow2.f32 %v1661_v0  ;;  %v1659_v47 = vmul.f32 1.442695, %v1653_v32 }
 0x748   :  { %v1643_v63 = vpop.xlane.xlu0 %1642 }
 0x749   :  { %5626 = vpow2.f32 %v1659_v47  ;;  %v1655_v21 = vsub.f32 %v1631_v43, %v1643_v63 }
 0x74a   :  { %v1652_v54 = vpop.xlane.xlu1 %1651 }
 0x74b   :  { %v1663_v34 = vmul.f32 1.442695, %v1655_v21  ;;  %v1658_v28 = vsub.f32 %v1634_v45, %v1652_v54  ;;  %v4634_v54 = vld [vmem:[%s7723_s8] ss:$0 sm:$0xff] }
 0x74c   :  { %v1646_v53 = vpop.xlane.xlu0 %1645 }
 0x74d   :  { %5628 = vpow2.f32 %v1663_v34  ;;  %v1656_v29 = vsub.f32 %v1632_v19, %v1646_v53  ;;  %v1669_v15 = vmul.f32 1.442695, %v1658_v28 }
 0x74e   :  { %v1716_v51 = vpop.permute.xlu1 %1715 }
 0x74f   :  { %v1665_v9 = vmul.f32 1.442695, %v1656_v29 }
 0x750   :  { %v1649_v48 = vpop.xlane.xlu0 %1648 }
 0x751   :  { %5630 = vpow2.f32 %v1665_v9  ;;  %v1657_v42 = vsub.f32 %v1633_v4, %v1649_v48 }
 0x752   :  { %5632 = vpow2.f32 %v1669_v15  ;;  %v1714_v13 = vpop.permute.xlu1 %1713 }
 0x753   :  { %v1667_v16 = vmul.f32 1.442695, %v1657_v42 }
 0x754   :  { %v5625_v36 = vpop.eup %5624  ;;  %v1718_v49 = vpop.permute.xlu0 %1717 }
 0x755   :  { %5634 = vpow2.f32 %v1667_v16  ;;  %5208 = vmatprep.subr.mxu0 %v1718_v49  ;;  %v1674_v39 = vsel %vm590_vm2, %v5625_v36, 0.0 }
 0x756   :  { %v5627_v38 = vpop.eup %5626  ;;  %1675 = vadd.xlane.f32.xlu1 %v1674_v39  ;;  %5209 = vmatpush3.msra.mxu0 %v1718_v49  ;;  %v1712_v56 = vpop.permute.xlu1 %1711 }
 0x757   :  { %5210 = vmatprep.subr.mxu0 %v1716_v51  ;;  %v1671_v3 = vsel %vm590_vm2, %v5627_v38, 0.0 }
 0x758   :  { %1672 = vadd.xlane.f32.xlu0 %v1671_v3  ;;  %5211 = vmatpush3.msra.mxu0 %v1716_v51 }
 0x759   :  { %5212 = vmatprep.subr.mxu0 %v1714_v13 }
 0x75a   :  { %v5629_v30 = vpop.eup %5628  ;;  %5213 = vmatpush3.msra.mxu0 %v1714_v13 }
 0x75b   :  { %5214 = vmatprep.subr.mxu0 %v1712_v56  ;;  %v1677_v61 = vsel %vm590_vm2, %v5629_v30, 0.0 }
 0x75c   :  { %1678 = vadd.xlane.f32.xlu0 %v1677_v61  ;;  %5215 = vmatpush3.msra.mxu0 %v1712_v56 }
 0x75e   :  { %v5631_v23 = vpop.eup %5630 }
 0x75f   :  { %v1680_v33 = vsel %vm590_vm2, %v5631_v23, 0.0  ;;  %v5633_v57 = vpop.eup %5632 }
 0x760   :  { %1681 = vadd.xlane.f32.xlu1 %v1680_v33  ;;  %v1686_v55 = vsel %vm590_vm2, %v5633_v57, 0.0 }
 0x762   :  { %v5635_v31 = vpop.eup %5634 }
 0x763   :  { %v1683_v24 = vsel %vm590_vm2, %v5635_v31, 0.0 }
 0x764   :  { %1687 = vadd.xlane.f32.xlu1 %v1686_v55  ;;  %1684 = vadd.xlane.f32.xlu0 %v1683_v24 }
 0x775   :  { %1707 = vrot.lane.b32.xlu1 %v6593_v7, %s5841_s21 }
 0x77a   :  { %1709 = vrot.lane.b32.xlu0 %v6588_v10, %s5841_s21 }
 0x7df   :  { %v1676_v60 = vpop.xlane.xlu1 %1675 }
 0x7e1   :  { %v1673_v43 = vpop.xlane.xlu0 %1672 }
 0x7e2   :  { %5636 = vrcp.f32 %v1673_v43 }
 0x7e3   :  { %5638 = vrcp.f32 %v1676_v60 }
 0x7e5   :  { %v1679_v5 = vpop.xlane.xlu0 %1678 }
 0x7e6   :  { %5640 = vrcp.f32 %v1679_v5 }
 0x7e9   :  { %v1682_v17 = vpop.xlane.xlu1 %1681 }
 0x7ea   :  { %5642 = vrcp.f32 %v1682_v17 }
 0x7ed   :  { %v1688_v19 = vpop.xlane.xlu1 %1687  ;;  %v1685_v45 = vpop.xlane.xlu0 %1684 }
 0x7ee   :  { %5644 = vrcp.f32 %v1688_v19 }
 0x7ef   :  { %v5637_v40 = vpop.eup %5636  ;;  %5646 = vrcp.f32 %v1685_v45 }
 0x7f0   :  { %v1695_v25 = vmul.f32 %v5637_v40, %v5627_v38  ;;  %v5639_v8 = vpop.eup %5638 }
 0x7f1   :  { %v1710_v4 = vpop.permute.xlu0 %1709  ;;  %v1708_v7 = vpop.permute.xlu1 %1707  ;;  %v1696_v2 = vmul.f32 %v5639_v8, %v5625_v36 }
 0x7f2   :  { %5216 = vmatprep.subr.mxu0 %v1710_v4  ;;  %5220 = vmatprep.mubr.msk.f32.mxu0 %vm590_vm2, %v1695_v25 }
 0x7f3   :  { %v5641_v10 = vpop.eup %5640  ;;  %5217 = vmatpush3.msra.mxu0 %v1710_v4 }
 0x7f4   :  { %5218 = vmatprep.subr.mxu0 %v1708_v7  ;;  %v1697_v52 = vmul.f32 %v5641_v10, %v5629_v30 }
 0x7f5   :  { %5219 = vmatpush3.msra.mxu0 %v1708_v7 }
 0x7f6   :  { %5221 = vmatmul.mubr.msk.f32.vlgmr.msra.gmra.mxu0 %vm590_vm2, %v1696_v2 }
 0x7f7   :  { %v5643_v35 = vpop.eup %5642  ;;  %5223 = vmatprep.mubr.msk.f32.mxu0 %vm590_vm2, %v1697_v52 }
 0x7f8   :  { %v1698_v50 = vmul.f32 %v5643_v35, %v5631_v23 }
 0x7fa   :  { %5224 = vmatmul.mubr.msk.f32.gmra.mxu0 %vm590_vm2, %v1698_v50 }
 0x7fb   :  { %v5645_v12 = vpop.eup %5644 }
 0x7fc   :  { %v5647_v0 = vpop.eup %5646  ;;  %v1700_v32 = vmul.f32 %v5645_v12, %v5633_v57 }
 0x7fd   :  { %v1699_v47 = vmul.f32 %v5647_v0, %v5635_v31 }
 0x7ff   :  { %5226 = vmatprep.mubr.msk.f32.mxu0 %vm590_vm2, %v1699_v47 }
 0x800   :  { %5227 = vmatmul.mubr.msk.f32.gmra.mxu0 %vm590_vm2, %v1700_v32 }
 0x8b6   :  { %v5222_v63 = vpop.f32.mrf.mxu0 }
 0x8b7   :  { %v1839_v21 = vadd.f32 %v5222_v63, %v6634_v37 }
 0x8b8   :  { %v1809_v34 = vpop.f32.mrf.mxu0 }
 0x8b9   :  { %v1845_v28 = vadd.f32 %v1839_v21, %v5991_v14  ;;  %v1838_v53 = vadd.f32 %v1809_v34, %v6636_v62  ;;  %v1970_v21 = vld [vmem:[%s7726_s11 + $0x18] sm:$0xff]  ;;  %v1968_v34 = vld [vmem:[%s7726_s11 + $0x8] sm:$0xff] }
 0x8ba   :  { %v5225_v29 = vpop.f32.mrf.mxu0  ;;  %5229 = vmatprep.subr.mxu0 %v1970_v21 }
 0x8bb   :  { %v6688_v51 = vadd.f32 %v4634_v54, %v1845_v28  ;;  %v1844_v15 = vadd.f32 %v1838_v53, %v5986_v11  ;;  %v1841_v9 = vadd.f32 %v5225_v29, %v6638_v44  ;;  %5230 = vmatpush3.msra.mxu0 %v1970_v21  ;;  %v1967_v28 = vld [vmem:[%s7726_s11] sm:$0xff]  ;;  %v2154_v21 = vld [vmem:[%s7728_s13 + $0x48] sm:$0xff] }
 0x8bc   :  { %v1819_v48 = vpop.f32.mrf.mxu0 }
 0x8bd   :  { %v6692_v42 = vadd.f32 %v4634_v54, %v1844_v15  ;;  %v1840_v37 = vadd.f32 %v1819_v48, %v6640_v20  ;;  %v1868_v16 = vsel %vm198_vm1, %v6688_v51, 0.0  ;;  %v1847_v14 = vadd.f32 %v1841_v9, %v6006_v22 }
 0x8be   :  { %1869 = vadd.xlane.f32.xlu1 %v1868_v16 }
 0x8bf   :  { %v1846_v62 = vadd.f32 %v1840_v37, %v5998_v18  ;;  %v1865_v36 = vsel %vm198_vm1, %v6692_v42, 0.0  ;;  %v6704_v39 = vadd.f32 %v4634_v54, %v1847_v14 }
 0x8c0   :  { %v5228_v13 = vpop.f32.mrf.mxu0  ;;  %1866 = vadd.xlane.f32.xlu0 %v1865_v36 }
 0x8c1   :  { %v6701_v11 = vadd.f32 %v4634_v54, %v1846_v62  ;;  %v1843_v44 = vadd.f32 %v5228_v13, %v6642_v46  ;;  %v1874_v56 = vsel %vm198_vm1, %v6704_v39, 0.0 }
 0x8c2   :  { %v1829_v49 = vpop.f32.mrf.mxu0 }
 0x8c3   :  { %v1849_v20 = vadd.f32 %v1843_v44, %v6012_v26  ;;  %v1842_v38 = vadd.f32 %v1829_v49, %v6644_v41  ;;  %v1871_v22 = vsel %vm198_vm1, %v6701_v11, 0.0 }
 0x8c4   :  { %1872 = vadd.xlane.f32.xlu0 %v1871_v22 }
 0x8c5   :  { %v6710_v18 = vadd.f32 %v4634_v54, %v1849_v20  ;;  %v1848_v3 = vadd.f32 %v1842_v38, %v6014_v27 }
 0x8c7   :  { %v6713_v30 = vadd.f32 %v4634_v54, %v1848_v3  ;;  %v1880_v46 = vsel %vm198_vm1, %v6710_v18, 0.0  ;;  %v1969_v54 = vld [vmem:[%s7726_s11 + $0x10] sm:$0xff] }
 0x8c8   :  { %1881 = vadd.xlane.f32.xlu1 %v1880_v46  ;;  %1875 = vadd.xlane.f32.xlu0 %v1874_v56 }
 0x8c9   :  { %v1877_v26 = vsel %vm198_vm1, %v6713_v30, 0.0  ;;  %5231 = vmatprep.subr.mxu0 %v1969_v54 }
 0x8ca   :  { %5232 = vmatpush3.msra.mxu0 %v1969_v54  ;;  %v2153_v54 = vld [vmem:[%s7728_s13 + $0x40] sm:$0xff] }
 0x8cb   :  { %5233 = vmatprep.subr.mxu0 %v1968_v34 }
 0x8cc   :  { %1878 = vadd.xlane.f32.xlu0 %v1877_v26  ;;  %5234 = vmatpush3.msra.mxu0 %v1968_v34  ;;  %v2152_v34 = vld [vmem:[%s7728_s13 + $0x38] sm:$0xff] }
 0x8cd   :  { %5235 = vmatprep.subr.mxu0 %v1967_v28 }
 0x8ce   :  { %5236 = vmatpush3.msra.mxu0 %v1967_v28  ;;  %v2151_v28 = vld [vmem:[%s7728_s13 + $0x30] sm:$0xff] }
 0x947   :  { %v1870_v41 = vpop.xlane.xlu1 %1869 }
 0x948   :  { %v1884_v61 = vmul.f32 0.03125, %v1870_v41  ;;  %v4635_v41 = vld [vmem:[%s7724_s9] ss:$0 sm:$0xff] }
 0x949   :  { %v1867_v23 = vpop.xlane.xlu0 %1866 }
 0x94a   :  { %v6722_v33 = vsub.f32 %v6688_v51, %v1884_v61  ;;  %v1883_v27 = vmul.f32 0.03125, %v1867_v23 }
 0x94c   :  { %v6725_v57 = vsub.f32 %v6692_v42, %v1883_v27  ;;  %v1896_v31 = vmul.f32 %v6722_v33, %v6722_v33 }
 0x94d   :  { %v1873_v55 = vpop.xlane.xlu0 %1872 }
 0x94e   :  { %v1885_v24 = vmul.f32 0.03125, %v1873_v55  ;;  %v1904_v60 = vsel %vm198_vm1, %v1896_v31, 0.0  ;;  %v1895_v43 = vmul.f32 %v6725_v57, %v6725_v57  ;;  %v4636_v31 = vld [vmem:[%s7725_s10] ss:$0 sm:$0xff] }
 0x94f   :  { %1905 = vadd.xlane.f32.xlu1 %v1904_v60 }
 0x950   :  { %v6733_v5 = vsub.f32 %v6701_v11, %v1885_v24  ;;  %v1901_v17 = vsel %vm198_vm1, %v1895_v43, 0.0 }
 0x951   :  { %v1882_v19 = vpop.xlane.xlu1 %1881  ;;  %v1876_v45 = vpop.xlane.xlu0 %1875  ;;  %1902 = vadd.xlane.f32.xlu0 %v1901_v17 }
 0x952   :  { %v1888_v40 = vmul.f32 0.03125, %v1882_v19  ;;  %v1886_v25 = vmul.f32 0.03125, %v1876_v45  ;;  %v1897_v8 = vmul.f32 %v6733_v5, %v6733_v5 }
 0x954   :  { %v6739_v4 = vsub.f32 %v6710_v18, %v1888_v40  ;;  %v6742_v10 = vsub.f32 %v6704_v39, %v1886_v25  ;;  %v1907_v7 = vsel %vm198_vm1, %v1897_v8, 0.0 }
 0x955   :  { %1908 = vadd.xlane.f32.xlu0 %v1907_v7  ;;  %v1879_v2 = vpop.xlane.xlu0 %1878 }
 0x956   :  { %v1887_v52 = vmul.f32 0.03125, %v1879_v2  ;;  %v1898_v35 = vmul.f32 %v6742_v10, %v6742_v10  ;;  %v1900_v0 = vmul.f32 %v6739_v4, %v6739_v4 }
 0x958   :  { %v6748_v50 = vsub.f32 %v6713_v30, %v1887_v52  ;;  %v1910_v12 = vsel %vm198_vm1, %v1898_v35, 0.0  ;;  %v1916_v47 = vsel %vm198_vm1, %v1900_v0, 0.0 }
 0x959   :  { %1911 = vadd.xlane.f32.xlu1 %v1910_v12 }
 0x95a   :  { %v1899_v32 = vmul.f32 %v6748_v50, %v6748_v50 }
 0x95c   :  { %v1913_v63 = vsel %vm198_vm1, %v1899_v32, 0.0  ;;  %v2157_v32 = vld [vmem:[%s7728_s13 + $0x60] sm:$0xff] }
 0x95d   :  { %1917 = vadd.xlane.f32.xlu1 %v1916_v47  ;;  %1914 = vadd.xlane.f32.xlu0 %v1913_v63  ;;  %v2156_v47 = vld [vmem:[%s7728_s13 + $0x58] sm:$0xff]  ;;  %v2155_v63 = vld [vmem:[%s7728_s13 + $0x50] sm:$0xff] }
 0x9d8   :  { %v1906_v53 = vpop.xlane.xlu1 %1905 }
 0x9d9   :  { %v1920_v29 = vmul.f32 0.03125, %v1906_v53  ;;  %v2150_v53 = vld [vmem:[%s7728_s13 + $0x28] sm:$0xff] }
 0x9da   :  { %v1903_v15 = vpop.xlane.xlu0 %1902 }
 0x9db   :  { %v1926_v9 = vadd.f32 1e-05, %v1920_v29  ;;  %v1919_v48 = vmul.f32 0.03125, %v1903_v15  ;;  %v2149_v29 = vld [vmem:[%s7728_s13 + $0x20] sm:$0xff]  ;;  %v2148_v15 = vld [vmem:[%s7728_s13 + $0x18] sm:$0xff] }
 0x9dd   :  { %5648 = vrsqrt.f32 %v1926_v9  ;;  %v1925_v37 = vadd.f32 1e-05, %v1919_v48  ;;  %v2147_v9 = vld [vmem:[%s7728_s13 + $0x10] sm:$0xff]  ;;  %v2146_v48 = vld [vmem:[%s7728_s13 + $0x8] sm:$0xff] }
 0x9de   :  { %v1909_v16 = vpop.xlane.xlu0 %1908 }
 0x9df   :  { %5650 = vrsqrt.f32 %v1925_v37  ;;  %v1921_v14 = vmul.f32 0.03125, %v1909_v16  ;;  %v2145_v37 = vld [vmem:[%s7728_s13] sm:$0xff] }
 0x9e0   :  { %v4637_v16 = vld [vmem:[%s7727_s12] ss:$0 sm:$0xff] }
 0x9e1   :  { %v1927_v62 = vadd.f32 1e-05, %v1921_v14 }
 0x9e2   :  { %v1912_v36 = vpop.xlane.xlu1 %1911 }
 0x9e3   :  { %5652 = vrsqrt.f32 %v1927_v62  ;;  %v1922_v13 = vmul.f32 0.03125, %v1912_v36 }
 0x9e5   :  { %v1928_v44 = vadd.f32 1e-05, %v1922_v13 }
 0x9e6   :  { %v1918_v49 = vpop.xlane.xlu1 %1917  ;;  %v1915_v20 = vpop.xlane.xlu0 %1914 }
 0x9e7   :  { %5654 = vrsqrt.f32 %v1928_v44  ;;  %v1924_v38 = vmul.f32 0.03125, %v1918_v49  ;;  %v1923_v22 = vmul.f32 0.03125, %v1915_v20 }
 0x9e9   :  { %v1930_v3 = vadd.f32 1e-05, %v1924_v38  ;;  %v1929_v46 = vadd.f32 1e-05, %v1923_v22 }
 0x9ea   :  { %v5649_v56 = vpop.eup %5648 }
 0x9eb   :  { %v1938_v26 = vmul.f32 %v5649_v56, %v6722_v33  ;;  %5656 = vrsqrt.f32 %v1930_v3 }
 0x9ec   :  { %v5651_v61 = vpop.eup %5650  ;;  %5658 = vrsqrt.f32 %v1929_v46 }
 0x9ed   :  { %v1937_v23 = vmul.f32 %v5651_v61, %v6725_v57  ;;  %v1950_v27 = vmul.f32 %v4635_v41, %v1938_v26 }
 0x9ef   :  { %v1949_v55 = vmul.f32 %v4635_v41, %v1937_v23  ;;  %v1962_v33 = vadd.f32 %v4636_v31, %v1950_v27 }
 0x9f0   :  { %v5653_v24 = vpop.eup %5652 }
 0x9f1   :  { %v1961_v60 = vadd.f32 %v4636_v31, %v1949_v55  ;;  %v1939_v43 = vmul.f32 %v5653_v24, %v6733_v5 }
 0x9f3   :  { %5237 = vmatprep.mubr.msk.f32.mxu0 %vm198_vm1, %v1961_v60  ;;  %v1951_v17 = vmul.f32 %v4635_v41, %v1939_v43 }
 0x9f4   :  { %v5655_v19 = vpop.eup %5654  ;;  %5238 = vmatmul.mubr.msk.f32.vlgmr.msra.gmra.mxu0 %vm198_vm1, %v1962_v33 }
 0x9f5   :  { %v1963_v45 = vadd.f32 %v4636_v31, %v1951_v17  ;;  %v1940_v57 = vmul.f32 %v5655_v19, %v6742_v10  ;;  %v2160_v10 = vld [vmem:[%s7728_s13 + $0x78] sm:$0xff] }
 0x9f6   :  { %5246 = vmatprep.subr.mxu1 %v2160_v10 }
 0x9f7   :  { %5240 = vmatprep.mubr.msk.f32.mxu0 %vm198_vm1, %v1963_v45  ;;  %v1952_v40 = vmul.f32 %v4635_v41, %v1940_v57  ;;  %5247 = vmatpush3.msra.mxu1 %v2160_v10 }
 0x9f8   :  { %v5657_v25 = vpop.eup %5656 }
 0x9f9   :  { %v5659_v8 = vpop.eup %5658  ;;  %v1964_v7 = vadd.f32 %v4636_v31, %v1952_v40  ;;  %v1942_v2 = vmul.f32 %v5657_v25, %v6739_v4  ;;  %v2159_v4 = vld [vmem:[%s7728_s13 + $0x70] sm:$0xff] }
 0x9fa   :  { %v1941_v5 = vmul.f32 %v5659_v8, %v6748_v50  ;;  %5248 = vmatprep.subr.mxu1 %v2159_v4  ;;  %v2158_v50 = vld [vmem:[%s7728_s13 + $0x68] sm:$0xff] }
 0x9fb   :  { %5241 = vmatmul.mubr.msk.f32.gmra.mxu0 %vm198_vm1, %v1964_v7  ;;  %v1954_v52 = vmul.f32 %v4635_v41, %v1942_v2  ;;  %5249 = vmatpush3.msra.mxu1 %v2159_v4 }
 0x9fc   :  { %v1953_v35 = vmul.f32 %v4635_v41, %v1941_v5  ;;  %5250 = vmatprep.subr.mxu1 %v2158_v50 }
 0x9fd   :  { %v1966_v12 = vadd.f32 %v4636_v31, %v1954_v52  ;;  %5251 = vmatpush3.msra.mxu1 %v2158_v50 }
 0x9fe   :  { %v1965_v0 = vadd.f32 %v4636_v31, %v1953_v35  ;;  %5252 = vmatprep.subr.mxu1 %v2157_v32 }
 0x9ff   :  { %5253 = vmatpush3.msra.mxu1 %v2157_v32 }
 0xa00   :  { %5243 = vmatprep.mubr.msk.f32.mxu0 %vm198_vm1, %v1965_v0  ;;  %5254 = vmatprep.subr.mxu1 %v2156_v47 }
 0xa01   :  { %5244 = vmatmul.mubr.msk.f32.gmra.mxu0 %vm198_vm1, %v1966_v12  ;;  %5255 = vmatpush3.msra.mxu1 %v2156_v47 }
 0xa02   :  { %2479 = vmatprep.mubr.f32.mxu0 %v5840_v1  ;;  %5256 = vmatprep.subr.mxu1 %v2155_v63 }
 0xa03   :  { %5257 = vmatpush3.msra.mxu1 %v2155_v63 }
 0xa04   :  { %5258 = vmatprep.subr.mxu1 %v2154_v21 }
 0xa05   :  { %5259 = vmatpush3.msra.mxu1 %v2154_v21 }
 0xa06   :  { %5260 = vmatprep.subr.mxu1 %v2153_v54 }
 0xa07   :  { %5261 = vmatpush3.msra.mxu1 %v2153_v54 }
 0xa08   :  { %5262 = vmatprep.subr.mxu1 %v2152_v34 }
 0xa09   :  { %5263 = vmatpush3.msra.mxu1 %v2152_v34 }
 0xa0a   :  { %5264 = vmatprep.subr.mxu1 %v2151_v28 }
 0xa0b   :  { %5265 = vmatpush3.msra.mxu1 %v2151_v28 }
 0xa0c   :  { %5266 = vmatprep.subr.mxu1 %v2150_v53 }
 0xa0d   :  { %5267 = vmatpush3.msra.mxu1 %v2150_v53 }
 0xa0e   :  { %5268 = vmatprep.subr.mxu1 %v2149_v29 }
 0xa0f   :  { %5269 = vmatpush3.msra.mxu1 %v2149_v29 }
 0xa10   :  { %5270 = vmatprep.subr.mxu1 %v2148_v15 }
 0xa11   :  { %5271 = vmatpush3.msra.mxu1 %v2148_v15 }
 0xa12   :  { %5272 = vmatprep.subr.mxu1 %v2147_v9 }
 0xa13   :  { %5273 = vmatpush3.msra.mxu1 %v2147_v9 }
 0xa14   :  { %5274 = vmatprep.subr.mxu1 %v2146_v48 }
 0xa15   :  { %5275 = vmatpush3.msra.mxu1 %v2146_v48 }
 0xa16   :  { %5276 = vmatprep.subr.mxu1 %v2145_v37 }
 0xa17   :  { %5277 = vmatpush3.msra.mxu1 %v2145_v37 }
 0xab4   :  { %v5239_v14 = vpop.f32.mrf.mxu0 }
 0xab5   :  { %v2068_v62 = vadd.f32 %v5239_v14, %v4637_v16 }
 0xab6   :  { %v2062_v36 = vpop.f32.mrf.mxu0 }
 0xab7   :  { %v2092_v13 = vmul.f32 %v2068_v62, %v2068_v62  ;;  %v2063_v44 = vadd.f32 %v4637_v16, %v2062_v36 }
 0xab9   :  { %v2098_v49 = vmul.f32 %v2092_v13, %v2068_v62  ;;  %v2091_v20 = vmul.f32 %v2063_v44, %v2063_v44 }
 0xabb   :  { %v2104_v38 = vmul.f32 0.044715, %v2098_v49  ;;  %v2097_v22 = vmul.f32 %v2091_v20, %v2063_v44  ;;  %v5242_v3 = vpop.f32.mrf.mxu0 }
 0xabc   :  { %v2078_v46 = vadd.f32 %v5242_v3, %v4637_v16 }
 0xabd   :  { %v2110_v56 = vadd.f32 %v2104_v38, %v2068_v62  ;;  %v2103_v26 = vmul.f32 0.044715, %v2097_v22  ;;  %v2072_v41 = vpop.f32.mrf.mxu0 }
 0xabe   :  { %v2094_v61 = vmul.f32 %v2078_v46, %v2078_v46  ;;  %v2073_v23 = vadd.f32 %v4637_v16, %v2072_v41 }
 0xabf   :  { %v2116_v27 = vmul.f32 0.7978846, %v2110_v56  ;;  %v2109_v31 = vadd.f32 %v2103_v26, %v2063_v44 }
 0xac0   :  { %v2100_v55 = vmul.f32 %v2094_v61, %v2078_v46  ;;  %v2093_v24 = vmul.f32 %v2073_v23, %v2073_v23 }
 0xac1   :  { %5660 = vtanh.f32 %v2116_v27  ;;  %v2115_v60 = vmul.f32 0.7978846, %v2109_v31  ;;  %v5245_v43 = vpop.f32.mrf.mxu0 }
 0xac2   :  { %v2106_v33 = vmul.f32 0.044715, %v2100_v55  ;;  %v2099_v17 = vmul.f32 %v2093_v24, %v2073_v23  ;;  %v2088_v19 = vadd.f32 %v5245_v43, %v4637_v16 }
 0xac3   :  { %5662 = vtanh.f32 %v2115_v60  ;;  %v2082_v45 = vpop.f32.mrf.mxu0 }
 0xac4   :  { %v2112_v57 = vadd.f32 %v2106_v33, %v2078_v46  ;;  %v2105_v40 = vmul.f32 0.044715, %v2099_v17  ;;  %v2096_v25 = vmul.f32 %v2088_v19, %v2088_v19  ;;  %v2083_v8 = vadd.f32 %v4637_v16, %v2082_v45 }
 0xac6   :  { %v2118_v7 = vmul.f32 0.7978846, %v2112_v57  ;;  %v2111_v2 = vadd.f32 %v2105_v40, %v2073_v23  ;;  %v2102_v5 = vmul.f32 %v2096_v25, %v2088_v19  ;;  %v2095_v52 = vmul.f32 %v2083_v8, %v2083_v8 }
 0xac8   :  { %5664 = vtanh.f32 %v2118_v7  ;;  %v2117_v35 = vmul.f32 0.7978846, %v2111_v2  ;;  %v2108_v12 = vmul.f32 0.044715, %v2102_v5  ;;  %v2101_v0 = vmul.f32 %v2095_v52, %v2083_v8 }
 0xaca   :  { %5666 = vtanh.f32 %v2117_v35  ;;  %v2114_v10 = vadd.f32 %v2108_v12, %v2088_v19  ;;  %v2107_v4 = vmul.f32 0.044715, %v2101_v0 }
 0xacc   :  { %v2120_v50 = vmul.f32 0.7978846, %v2114_v10  ;;  %v2113_v32 = vadd.f32 %v2107_v4, %v2083_v8 }
 0xace   :  { %v5661_v47 = vpop.eup %5660  ;;  %5668 = vtanh.f32 %v2120_v50  ;;  %v2119_v63 = vmul.f32 0.7978846, %v2113_v32 }
 0xacf   :  { %v2128_v21 = vadd.f32 1.0, %v5661_v47 }
 0xad0   :  { %v5663_v54 = vpop.eup %5662  ;;  %5670 = vtanh.f32 %v2119_v63 }
 0xad1   :  { %v2127_v34 = vadd.f32 1.0, %v5663_v54  ;;  %v2134_v28 = vmul.f32 0.5, %v2128_v21 }
 0xad3   :  { %v2133_v53 = vmul.f32 0.5, %v2127_v34  ;;  %v2140_v9 = vmul.f32 %v2134_v28, %v2068_v62  ;;  %v4644_v62 = vld [vmem:[%s7758_s28] ss:$0 sm:$0xff] }
 0xad5   :  { %v5665_v29 = vpop.eup %5664  ;;  %v2139_v15 = vmul.f32 %v2133_v53, %v2063_v44 }
 0xad6   :  { %v2130_v48 = vadd.f32 1.0, %v5665_v29 }
 0xad7   :  { %v5667_v37 = vpop.eup %5666  ;;  %5278 = vmatprep.mubr.f32.mxu1 %v2139_v15 }
 0xad8   :  { %5279 = vmatmul.mubr.f32.vlgmr.msra.gmra.mxu1 %v2140_v9  ;;  %v2129_v16 = vadd.f32 1.0, %v5667_v37  ;;  %v2136_v14 = vmul.f32 0.5, %v2130_v48 }
 0xada   :  { %v2135_v36 = vmul.f32 0.5, %v2129_v16  ;;  %v2142_v22 = vmul.f32 %v2136_v14, %v2078_v46 }
 0xadb   :  { %v5669_v13 = vpop.eup %5668 }
 0xadc   :  { %v2141_v49 = vmul.f32 %v2135_v36, %v2073_v23  ;;  %v2132_v20 = vadd.f32 1.0, %v5669_v13 }
 0xadd   :  { %v5671_v38 = vpop.eup %5670 }
 0xade   :  { %5281 = vmatprep.mubr.f32.mxu1 %v2141_v49  ;;  %v2131_v3 = vadd.f32 1.0, %v5671_v38  ;;  %v2138_v56 = vmul.f32 0.5, %v2132_v20 }
 0xadf   :  { %5282 = vmatmul.mubr.f32.gmra.mxu1 %v2142_v22 }
 0xae0   :  { %v2137_v26 = vmul.f32 0.5, %v2131_v3  ;;  %v2144_v44 = vmul.f32 %v2138_v56, %v2088_v19  ;;  %v4656_v3 = vld [vmem:[%s7721_s6 + $0x78] sm:$0xff]  ;;  %v4655_v56 = vld [vmem:[%s7721_s6 + $0x70] sm:$0xff] }
 0xae1   :  { %2439 = vmatprep.subr.mxu0 %v4656_v3 }
 0xae2   :  { %v2143_v41 = vmul.f32 %v2137_v26, %v2083_v8  ;;  %2440 = vmatpush1.msra.mxu0 %v4655_v56  ;;  %v4654_v26 = vld [vmem:[%s7721_s6 + $0x68] sm:$0xff] }
 0xae3   :  { %2441 = vmatprep.subr.mxu0 %v4654_v26 }
 0xae4   :  { %5284 = vmatprep.mubr.f32.mxu1 %v2143_v41  ;;  %v4653_v41 = vld [vmem:[%s7721_s6 + $0x60] sm:$0xff] }
 0xae5   :  { %5285 = vmatmul.mubr.f32.gmra.mxu1 %v2144_v44  ;;  %2442 = vmatpush1.msra.mxu0 %v4653_v41  ;;  %v4652_v44 = vld [vmem:[%s7721_s6 + $0x58] sm:$0xff] }
 0xae6   :  { %2443 = vmatprep.subr.mxu0 %v4652_v44 }
 0xb98   :  { %v5280_v61 = vpop.f32.mrf.mxu1 }
 0xb99   :  { %v2240_v27 = vadd.f32 %v5280_v61, %v4644_v62  ;;  %v4650_v61 = vld [vmem:[%s7721_s6 + $0x48] sm:$0xff] }
 0xb9a   :  { %v2234_v31 = vpop.f32.mrf.mxu1 }
 0xb9b   :  { %v6843_v23 = vadd.f32 %v2240_v27, %v6688_v51  ;;  %v2235_v46 = vadd.f32 %v4644_v62, %v2234_v31  ;;  %v4649_v27 = vld [vmem:[%s7721_s6 + $0x40] sm:$0xff] }
 0xb9d   :  { %v6846_v55 = vadd.f32 %v2235_v46, %v6692_v42  ;;  %v2276_v24 = vsel %vm198_vm1, %v6843_v23, 0.0 }
 0xb9e   :  { %2277 = vadd.xlane.f32.xlu1 %v2276_v24 }
 0xb9f   :  { %v5283_v60 = vpop.f32.mrf.mxu1  ;;  %v2273_v43 = vsel %vm198_vm1, %v6846_v55, 0.0 }
 0xba0   :  { %v2250_v33 = vadd.f32 %v5283_v60, %v4644_v62  ;;  %2274 = vadd.xlane.f32.xlu0 %v2273_v43 }
 0xba1   :  { %v2244_v17 = vpop.f32.mrf.mxu1 }
 0xba2   :  { %v6853_v19 = vadd.f32 %v2250_v33, %v6704_v39  ;;  %v2245_v51 = vadd.f32 %v4644_v62, %v2244_v17 }
 0xba4   :  { %v6856_v45 = vadd.f32 %v2245_v51, %v6701_v11  ;;  %v2282_v42 = vsel %vm198_vm1, %v6853_v19, 0.0 }
 0xba5   :  { %v5286_v57 = vpop.f32.mrf.mxu1  ;;  %2283 = vadd.xlane.f32.xlu1 %v2282_v42 }
 0xba6   :  { %v2260_v40 = vadd.f32 %v5286_v57, %v4644_v62  ;;  %v2279_v25 = vsel %vm198_vm1, %v6856_v45, 0.0 }
 0xba7   :  { %v2254_v8 = vpop.f32.mrf.mxu1  ;;  %2280 = vadd.xlane.f32.xlu0 %v2279_v25 }
 0xba8   :  { %v6863_v7 = vadd.f32 %v2260_v40, %v6710_v18  ;;  %v2255_v39 = vadd.f32 %v4644_v62, %v2254_v8  ;;  %v4651_v62 = vld [vmem:[%s7721_s6 + $0x50] sm:$0xff] }
 0xba9   :  { %2444 = vmatpush1.msra.mxu0 %v4651_v62 }
 0xbaa   :  { %v6866_v2 = vadd.f32 %v2255_v39, %v6713_v30  ;;  %v2288_v11 = vsel %vm198_vm1, %v6863_v7, 0.0  ;;  %2445 = vmatprep.subr.mxu0 %v4650_v61 }
 0xbab   :  { %2289 = vadd.xlane.f32.xlu1 %v2288_v11  ;;  %2446 = vmatpush1.msra.mxu0 %v4649_v27 }
 0xbac   :  { %v2285_v5 = vsel %vm198_vm1, %v6866_v2, 0.0 }
 0xbad   :  { %2286 = vadd.xlane.f32.xlu0 %v2285_v5 }
 0xc27   :  { %v2278_v52 = vpop.xlane.xlu1 %2277 }
 0xc28   :  { %v2292_v35 = vmul.f32 0.03125, %v2278_v52 }
 0xc29   :  { %v2275_v12 = vpop.xlane.xlu0 %2274 }
 0xc2a   :  { %v6873_v0 = vsub.f32 %v6843_v23, %v2292_v35  ;;  %v2291_v18 = vmul.f32 0.03125, %v2275_v12 }
 0xc2c   :  { %v6876_v10 = vsub.f32 %v6846_v55, %v2291_v18  ;;  %v2304_v30 = vmul.f32 %v6873_v0, %v6873_v0 }
 0xc2e   :  { %v2284_v4 = vpop.xlane.xlu1 %2283  ;;  %v2312_v50 = vsel %vm198_vm1, %v2304_v30, 0.0  ;;  %v2303_v32 = vmul.f32 %v6876_v10, %v6876_v10 }
 0xc2f   :  { %v2294_v47 = vmul.f32 0.03125, %v2284_v4  ;;  %2313 = vadd.xlane.f32.xlu1 %v2312_v50  ;;  %v4647_v50 = vld [vmem:[%s7719_s4 + $0x1] ss:$0 sm:$0xff]  ;;  %s7763_s4 = smov 104  }
 0xc30   :  { %v2281_v63 = vpop.xlane.xlu0 %2280  ;;  %v2309_v21 = vsel %vm198_vm1, %v2303_v32, 0.0 }
 0xc31   :  { %v6885_v54 = vsub.f32 %v6853_v19, %v2294_v47  ;;  %v2293_v34 = vmul.f32 0.03125, %v2281_v63  ;;  %2310 = vadd.xlane.f32.xlu0 %v2309_v21  ;;  %v4648_v47 = vld [vmem:[%s7720_s5 + $0x1] ss:$0 sm:$0xff] }
 0xc33   :  { %v6888_v28 = vsub.f32 %v6856_v45, %v2293_v34  ;;  %v2306_v53 = vmul.f32 %v6885_v54, %v6885_v54 }
 0xc34   :  { %v2290_v29 = vpop.xlane.xlu1 %2289 }
 0xc35   :  { %v2296_v15 = vmul.f32 0.03125, %v2290_v29  ;;  %v2318_v9 = vsel %vm198_vm1, %v2306_v53, 0.0  ;;  %v2305_v48 = vmul.f32 %v6888_v28, %v6888_v28 }
 0xc36   :  { %v2287_v37 = vpop.xlane.xlu0 %2286  ;;  %2319 = vadd.xlane.f32.xlu1 %v2318_v9 }
 0xc37   :  { %v6896_v16 = vsub.f32 %v6863_v7, %v2296_v15  ;;  %v2295_v14 = vmul.f32 0.03125, %v2287_v37  ;;  %v2315_v36 = vsel %vm198_vm1, %v2305_v48, 0.0 }
 0xc38   :  { %2316 = vadd.xlane.f32.xlu0 %v2315_v36 }
 0xc39   :  { %v6900_v13 = vsub.f32 %v6866_v2, %v2295_v14  ;;  %v2308_v49 = vmul.f32 %v6896_v16, %v6896_v16 }
 0xc3b   :  { %v2324_v20 = vsel %vm198_vm1, %v2308_v49, 0.0  ;;  %v2307_v38 = vmul.f32 %v6900_v13, %v6900_v13 }
 0xc3c   :  { %2325 = vadd.xlane.f32.xlu1 %v2324_v20 }
 0xc3d   :  { %v2321_v22 = vsel %vm198_vm1, %v2307_v38, 0.0 }
 0xc3e   :  { %2322 = vadd.xlane.f32.xlu0 %v2321_v22 }
 0xcb8   :  { %v2314_v31 = vpop.xlane.xlu1 %2313 }
 0xcb9   :  { %v2328_v46 = vmul.f32 0.03125, %v2314_v31 }
 0xcba   :  { %v2311_v24 = vpop.xlane.xlu0 %2310 }
 0xcbb   :  { %v2334_v60 = vadd.f32 1e-05, %v2328_v46  ;;  %v2327_v43 = vmul.f32 0.03125, %v2311_v24 }
 0xcbd   :  { %5672 = vrsqrt.f32 %v2334_v60  ;;  %v2333_v33 = vadd.f32 1e-05, %v2327_v43 }
 0xcbf   :  { %5674 = vrsqrt.f32 %v2333_v33  ;;  %v2320_v17 = vpop.xlane.xlu1 %2319 }
 0xcc0   :  { %v2330_v51 = vmul.f32 0.03125, %v2320_v17 }
 0xcc1   :  { %v2317_v42 = vpop.xlane.xlu0 %2316 }
 0xcc2   :  { %v2336_v57 = vadd.f32 1e-05, %v2330_v51  ;;  %v2329_v40 = vmul.f32 0.03125, %v2317_v42 }
 0xcc4   :  { %v2335_v25 = vadd.f32 1e-05, %v2329_v40  ;;  %5676 = vrsqrt.f32 %v2336_v57 }
 0xcc5   :  { %v2326_v8 = vpop.xlane.xlu1 %2325 }
 0xcc6   :  { %5678 = vrsqrt.f32 %v2335_v25  ;;  %v2332_v39 = vmul.f32 0.03125, %v2326_v8 }
 0xcc7   :  { %v2323_v11 = vpop.xlane.xlu0 %2322 }
 0xcc8   :  { %v2331_v5 = vmul.f32 0.03125, %v2323_v11  ;;  %v2338_v52 = vadd.f32 1e-05, %v2332_v39 }
 0xcca   :  { %v5673_v35 = vpop.eup %5672  ;;  %v2337_v12 = vadd.f32 1e-05, %v2331_v5 }
 0xccb   :  { %v2346_v4 = vmul.f32 %v5673_v35, %v6873_v0 }
 0xccc   :  { %v5675_v18 = vpop.eup %5674  ;;  %5680 = vrsqrt.f32 %v2337_v12 }
 0xccd   :  { %v2345_v30 = vmul.f32 %v5675_v18, %v6876_v10  ;;  %5682 = vrsqrt.f32 %v2338_v52  ;;  %v2358_v21 = vmul.f32 %v4647_v50, %v2346_v4 }
 0xccf   :  { %v2357_v32 = vmul.f32 %v4647_v50, %v2345_v30  ;;  %v2370_v0 = vadd.f32 %v4648_v47, %v2358_v21 }
 0xcd1   :  { %v2369_v63 = vadd.f32 %v4648_v47, %v2357_v32  ;;  %v5677_v34 = vpop.eup %5676 }
 0xcd2   :  { %v2348_v29 = vmul.f32 %v5677_v34, %v6885_v54 }
 0xcd3   :  { %v5679_v53 = vpop.eup %5678  ;;  %4658 = vmatmul.mubr.msk.f32.vlgmr.msra.gmra.mxu0 %vm198_vm1, %v2369_v63 }
 0xcd4   :  { %2485 = vmatprep.mubr.f32.mxu0 %v5840_v1  ;;  %v2347_v10 = vmul.f32 %v5679_v53, %v6888_v28  ;;  %v2360_v37 = vmul.f32 %v4647_v50, %v2348_v29 }
 0xcd6   :  { %v2359_v15 = vmul.f32 %v4647_v50, %v2347_v10  ;;  %v2372_v49 = vadd.f32 %v4648_v47, %v2360_v37 }
 0xcd7   :  { %4659 = vmatmul.mubr.msk.f32.gmra.mxu0 %vm198_vm1, %v2370_v0 }
 0xcd8   :  { %2491 = vmatprep.mubr.f32.mxu0 %v5840_v1  ;;  %v2371_v9 = vadd.f32 %v4648_v47, %v2359_v15 }
 0xcd9   :  { %v5681_v48 = vpop.eup %5680 }
 0xcda   :  { %v5683_v14 = vpop.eup %5682  ;;  %v2349_v36 = vmul.f32 %v5681_v48, %v6900_v13  ;;  %v6958_v13 = vld [vmem:[%s7722_s7 + $0x2] sm:$0x3]  ;;  %s7759_s7 = smov 112  }
 0xcdb   :  { %4660 = vmatmul.mubr.msk.f32.gmra.mxu0 %vm198_vm1, %v2371_v9  ;;  %v2350_v20 = vmul.f32 %v5683_v14, %v6896_v16  ;;  %v2390_v16 = vrot.slane %v6958_v13, %v314_v59 }
 0xcdc   :  { %2497 = vmatprep.mubr.f32.mxu0 %v5840_v1  ;;  %v2361_v28 = vmul.f32 %v4647_v50, %v2349_v36 }
 0xcdd   :  { %v2362_v38 = vmul.f32 %v4647_v50, %v2350_v20 }
 0xcde   :  { %v2373_v54 = vadd.f32 %v4648_v47, %v2361_v28 }
 0xcdf   :  { %4661 = vmatmul.mubr.msk.f32.gmra.mxu0 %vm198_vm1, %v2372_v49  ;;  %v2374_v22 = vadd.f32 %v4648_v47, %v2362_v38 }
 0xce0   :  { %2503 = vmatprep.mubr.f32.mxu0 %v5840_v1 }
 0xce3   :  { %4662 = vmatmul.mubr.msk.f32.gmra.mxu0 %vm198_vm1, %v2373_v54 }
 0xce4   :  { %2509 = vmatprep.mubr.f32.mxu0 %v5840_v1 }
 0xce7   :  { %4663 = vmatmul.mubr.msk.f32.gmra.mxu0 %vm198_vm1, %v2374_v22 }
 0xd93   :  { %v2481_v3 = vpop.f32.mrf.mxu0 }
 0xd94   :  { %v6963_v56 = vadd.f32 %v2481_v3, %v2390_v16 }
 0xd95   :  { %v6965_v26 = vpop.f32.mrf.mxu0 }
 0xd96   :  { %5299 = vmatprep.mubr.msk.f32.mxu0 %vm82_vm0, %v6963_v56 }
 0xd97   :  { %v2487_v1 = vpop.f32.mrf.mxu0 }
 0xd98   :  { %v6995_v17 = vadd.f32 %v2487_v1, %v2390_v16  ;;  %v7120_v1 = vld [vmem:[%s7757_s3 + $0x8] sm:$0xff] }
 0xd99   :  { %v6969_v41 = vpop.f32.mrf.mxu0 }
 0xd9b   :  { %v2493_v44 = vpop.f32.mrf.mxu0 }
 0xd9c   :  { %v6971_v62 = vadd.f32 %v2493_v44, %v2390_v16 }
 0xd9d   :  { %v6973_v61 = vpop.f32.mrf.mxu0 }
 0xd9e   :  { %2747 = vrot.lane.b32.xlu0 %v6971_v62, %s5842_s1 }
 0xd9f   :  { %v2499_v59 = vpop.f32.mrf.mxu0 }
 0xda0   :  { %v6977_v27 = vadd.f32 %v2499_v59, %v2390_v16 }
 0xda1   :  { %v6979_v31 = vpop.f32.mrf.mxu0 }
 0xda2   :  { %2749 = vrot.lane.b32.xlu1 %v6977_v27, %s5842_s1 }
 0xda3   :  { %v2505_v46 = vpop.f32.mrf.mxu0 }
 0xda4   :  { %v6983_v24 = vadd.f32 %v2505_v46, %v2390_v16  ;;  %v7128_v46 = vld [vmem:[%s7757_s3] sm:$0xff] }
 0xda5   :  { %v6985_v60 = vpop.f32.mrf.mxu0 }
 0xda6   :  { %2751 = vrot.lane.b32.xlu1 %v6983_v24, %s5842_s1 }
 0xda7   :  { %v2511_v43 = vpop.f32.mrf.mxu0 }
 0xda8   :  { %v6989_v33 = vadd.f32 %v2511_v43, %v2390_v16 }
 0xdaa   :  { %2753 = vrot.lane.b32.xlu0 %v6989_v33, %s5842_s1  ;;  %2530 = vrot.lane.b32.xlu1 %v6983_v24, %s5841_s21 }
 0xdae   :  { %2745 = vrot.lane.b32.xlu0 %v6995_v17, %s5842_s1  ;;  %2528 = vrot.lane.b32.xlu1 %v6977_v27, %s5841_s21 }
 0xdb2   :  { %2743 = vrot.lane.b32.xlu0 %v6963_v56, %s5842_s1  ;;  %2731 = vrot.lane.b32.xlu1 %v6963_v56, %s5843_s22  ;;  %s7760_s1 = smov 32  }
 0xdb6   :  { %2526 = vrot.lane.b32.xlu0 %v6971_v62, %s5841_s21  ;;  %2532 = vrot.lane.b32.xlu1 %v6989_v33, %s5841_s21 }
 0xdba   :  { %2524 = vrot.lane.b32.xlu0 %v6995_v17, %s5841_s21  ;;  %2733 = vrot.lane.b32.xlu1 %v6995_v17, %s5843_s22 }
 0xdbe   :  { %3234 = vrot.lane.b32.xlu0 %v6983_v24, %s5844_s2  ;;  %2735 = vrot.lane.b32.xlu1 %v6971_v62, %s5843_s22 }
 0xdc2   :  { %3236 = vrot.lane.b32.xlu0 %v6989_v33, %s5844_s2  ;;  %2737 = vrot.lane.b32.xlu1 %v6977_v27, %s5843_s22 }
 0xdc6   :  { %2522 = vrot.lane.b32.xlu0 %v6963_v56, %s5841_s21  ;;  %2739 = vrot.lane.b32.xlu1 %v6983_v24, %s5843_s22 }
 0xdca   :  { %3232 = vrot.lane.b32.xlu0 %v6977_v27, %s5844_s2  ;;  %2741 = vrot.lane.b32.xlu1 %v6989_v33, %s5843_s22 }
 0xdce   :  { %3228 = vrot.lane.b32.xlu0 %v6995_v17, %s5844_s2  ;;  %3230 = vrot.lane.b32.xlu1 %v6971_v62, %s5844_s2 }
 0xdd2   :  { %3214 = vrot.lane.b32.xlu0 %v6963_v56, %s7759_s7  ;;  %3226 = vrot.lane.b32.xlu1 %v6963_v56, %s5844_s2 }
 0xdd6   :  { %3218 = vrot.lane.b32.xlu0 %v6971_v62, %s7759_s7  ;;  %3216 = vrot.lane.b32.xlu1 %v6995_v17, %s7759_s7 }
 0xdda   :  { %3222 = vrot.lane.b32.xlu0 %v6983_v24, %s7759_s7  ;;  %3220 = vrot.lane.b32.xlu1 %v6977_v27, %s7759_s7 }
 0xdde   :  { %2960 = vrot.lane.b32.xlu0 %v6983_v24, %s7760_s1  ;;  %3224 = vrot.lane.b32.xlu1 %v6989_v33, %s7759_s7 }
 0xde2   :  { %2958 = vrot.lane.b32.xlu0 %v6977_v27, %s7760_s1  ;;  %2956 = vrot.lane.b32.xlu1 %v6971_v62, %s7760_s1 }
 0xde6   :  { %2954 = vrot.lane.b32.xlu0 %v6995_v17, %s7760_s1  ;;  %2952 = vrot.lane.b32.xlu1 %v6963_v56, %s7760_s1 }
 0xdea   :  { %2962 = vrot.lane.b32.xlu1 %v6989_v33, %s7760_s1 }
 0xe10   :  { %v2748_v42 = vpop.permute.xlu0 %2747 }
 0xe14   :  { %v2750_v51 = vpop.permute.xlu1 %2749 }
 0xe18   :  { %v2752_v57 = vpop.permute.xlu1 %2751 }
 0xe1c   :  { %v2531_v40 = vpop.permute.xlu1 %2530  ;;  %v2754_v25 = vpop.permute.xlu0 %2753 }
 0xe1d   :  { %5308 = vmatprep.subr.msk.mxu1 %vm82_vm0, %v2754_v25 }
 0xe1e   :  { %5309 = vmatpush3.xpose.msk.msra.mxu1 %vm82_vm0, %v2754_v25 }
 0xe1f   :  { %5310 = vmatprep.subr.msk.mxu1 %vm82_vm0, %v2752_v57 }
 0xe20   :  { %v2529_v8 = vpop.permute.xlu1 %2528  ;;  %v2746_v39 = vpop.permute.xlu0 %2745 }
 0xe22   :  { %5311 = vmatpush3.xpose.msk.msra.mxu1 %vm82_vm0, %v2752_v57 }
 0xe23   :  { %5312 = vmatprep.subr.msk.mxu1 %vm82_vm0, %v2750_v51 }
 0xe24   :  { %v2732_v11 = vpop.permute.xlu1 %2731  ;;  %v2744_v5 = vpop.permute.xlu0 %2743 }
 0xe25   :  { %5320 = vmatprep.mubr.msk.f32.mxu1 %vm82_vm0, %v2732_v11 }
 0xe26   :  { %5313 = vmatpush3.xpose.msk.msra.mxu1 %vm82_vm0, %v2750_v51 }
 0xe27   :  { %5314 = vmatprep.subr.msk.mxu1 %vm82_vm0, %v2748_v42 }
 0xe28   :  { %v2533_v52 = vpop.permute.xlu1 %2532  ;;  %v2527_v35 = vpop.permute.xlu0 %2526 }
 0xe29   :  { %5287 = vmatprep.subr.msk.mxu0 %vm82_vm0, %v2533_v52 }
 0xe2a   :  { %5288 = vmatpush3.xpose.msk.msra.mxu0 %vm82_vm0, %v2533_v52  ;;  %5315 = vmatpush3.xpose.msk.msra.mxu1 %vm82_vm0, %v2748_v42 }
 0xe2b   :  { %5289 = vmatprep.subr.msk.mxu0 %vm82_vm0, %v2531_v40  ;;  %5316 = vmatprep.subr.msk.mxu1 %vm82_vm0, %v2746_v39 }
 0xe2c   :  { %v2734_v12 = vpop.permute.xlu1 %2733  ;;  %v2525_v18 = vpop.permute.xlu0 %2524 }
 0xe2e   :  { %5290 = vmatpush3.xpose.msk.msra.mxu0 %vm82_vm0, %v2531_v40  ;;  %5317 = vmatpush3.xpose.msk.msra.mxu1 %vm82_vm0, %v2746_v39  ;;  %v7137_v40 = vpop.f32.mrf.mxu0 }
 0xe2f   :  { %5291 = vmatprep.subr.msk.mxu0 %vm82_vm0, %v2529_v8  ;;  %5318 = vmatprep.subr.msk.mxu1 %vm82_vm0, %v2744_v5 }
 0xe30   :  { %v2736_v30 = vpop.permute.xlu1 %2735  ;;  %v3235_v4 = vpop.permute.xlu0 %3234 }
 0xe32   :  { %5292 = vmatpush3.xpose.msk.msra.mxu0 %vm82_vm0, %v2529_v8  ;;  %5319 = vmatpush3.xpose.msk.msra.mxu1 %vm82_vm0, %v2744_v5 }
 0xe33   :  { %5293 = vmatprep.subr.msk.mxu0 %vm82_vm0, %v2527_v35 }
 0xe34   :  { %v2738_v50 = vpop.permute.xlu1 %2737  ;;  %v3237_v32 = vpop.permute.xlu0 %3236 }
 0xe35   :  { %5321 = vmatmul.mubr.msk.f32.vlgmr.msra.gmra.mxu1 %vm82_vm0, %v2734_v12  ;;  %5371 = vmatprep.subr.msk.mxu1 %vm82_vm0, %v3237_v32 }
 0xe36   :  { %5294 = vmatpush3.xpose.msk.msra.mxu0 %vm82_vm0, %v2527_v35  ;;  %5323 = vmatprep.mubr.msk.f32.mxu1 %vm82_vm0, %v2736_v30 }
 0xe37   :  { %5372 = vmatpush3.xpose.msk.msra.mxu1 %vm82_vm0, %v3237_v32  ;;  %5295 = vmatprep.subr.msk.mxu0 %vm82_vm0, %v2525_v18 }
 0xe38   :  { %5373 = vmatprep.subr.msk.mxu1 %vm82_vm0, %v3235_v4  ;;  %v2740_v47 = vpop.permute.xlu1 %2739  ;;  %v2523_v63 = vpop.permute.xlu0 %2522 }
 0xe39   :  { %5324 = vmatmul.mubr.msk.f32.gmra.mxu1 %vm82_vm0, %v2738_v50 }
 0xe3a   :  { %5296 = vmatpush3.xpose.msk.msra.mxu0 %vm82_vm0, %v2525_v18  ;;  %5326 = vmatprep.mubr.msk.f32.mxu1 %vm82_vm0, %v2740_v47 }
 0xe3b   :  { %5374 = vmatpush3.xpose.msk.msra.mxu1 %vm82_vm0, %v3235_v4  ;;  %5297 = vmatprep.subr.msk.mxu0 %vm82_vm0, %v2523_v63 }
 0xe3c   :  { %v2742_v21 = vpop.permute.xlu1 %2741  ;;  %v3233_v34 = vpop.permute.xlu0 %3232 }
 0xe3d   :  { %5327 = vmatmul.mubr.msk.f32.gmra.mxu1 %vm82_vm0, %v2742_v21  ;;  %5375 = vmatprep.subr.msk.mxu1 %vm82_vm0, %v3233_v34 }
 0xe3e   :  { %5298 = vmatpush3.xpose.msk.msra.mxu0 %vm82_vm0, %v2523_v63  ;;  %v7150_v63 = vld [vmem:[%s7757_s3 + $0x18] sm:$0xff] }
 0xe3f   :  { %5376 = vmatpush3.xpose.msk.msra.mxu1 %vm82_vm0, %v3233_v34 }
 0xe40   :  { %v3231_v53 = vpop.permute.xlu1 %3230  ;;  %v3229_v10 = vpop.permute.xlu0 %3228 }
 0xe41   :  { %5300 = vmatmul.mubr.msk.f32.vlgmr.msra.gmra.mxu0 %vm82_vm0, %v6995_v17  ;;  %5377 = vmatprep.subr.msk.mxu1 %vm82_vm0, %v3231_v53 }
 0xe42   :  { %5302 = vmatprep.mubr.msk.f32.mxu0 %vm82_vm0, %v6971_v62 }
 0xe43   :  { %5378 = vmatpush3.xpose.msk.msra.mxu1 %vm82_vm0, %v3231_v53 }
 0xe44   :  { %5379 = vmatprep.subr.msk.mxu1 %vm82_vm0, %v3229_v10  ;;  %v3227_v0 = vpop.permute.xlu1 %3226  ;;  %v3215_v29 = vpop.permute.xlu0 %3214 }
 0xe45   :  { %5303 = vmatmul.mubr.msk.f32.gmra.mxu0 %vm82_vm0, %v6977_v27  ;;  %5383 = vmatprep.mubr.msk.f32.mxu1 %vm82_vm0, %v3215_v29  ;;  %v7163_v29 = vld [vmem:[%s7757_s3 + $0x28] sm:$0xff] }
 0xe46   :  { %5305 = vmatprep.mubr.msk.f32.mxu0 %vm82_vm0, %v6983_v24 }
 0xe47   :  { %5380 = vmatpush3.xpose.msk.msra.mxu1 %vm82_vm0, %v3229_v10 }
 0xe48   :  { %5381 = vmatprep.subr.msk.mxu1 %vm82_vm0, %v3227_v0  ;;  %v3217_v15 = vpop.permute.xlu1 %3216  ;;  %v3219_v9 = vpop.permute.xlu0 %3218 }
 0xe49   :  { %5306 = vmatmul.mubr.msk.f32.gmra.mxu0 %vm82_vm0, %v6989_v33 }
 0xe4b   :  { %5382 = vmatpush3.xpose.msk.msra.mxu1 %vm82_vm0, %v3227_v0 }
 0xe4c   :  { %v3221_v48 = vpop.permute.xlu1 %3220  ;;  %v3223_v14 = vpop.permute.xlu0 %3222 }
 0xe4e   :  { %5384 = vmatmul.mubr.msk.f32.vlgmr.msra.gmra.mxu1 %vm82_vm0, %v3217_v15 }
 0xe4f   :  { %5386 = vmatprep.mubr.msk.f32.mxu1 %vm82_vm0, %v3219_v9 }
 0xe50   :  { %v3225_v37 = vpop.permute.xlu1 %3224  ;;  %v2961_v49 = vpop.permute.xlu0 %2960 }
 0xe52   :  { %5387 = vmatmul.mubr.msk.f32.gmra.mxu1 %vm82_vm0, %v3221_v48 }
 0xe53   :  { %5389 = vmatprep.mubr.msk.f32.mxu1 %vm82_vm0, %v3223_v14 }
 0xe54   :  { %v2957_v36 = vpop.permute.xlu1 %2956  ;;  %v2959_v54 = vpop.permute.xlu0 %2958 }
 0xe56   :  { %5390 = vmatmul.mubr.msk.f32.gmra.mxu1 %vm82_vm0, %v3225_v37  ;;  %v7173_v37 = vld [vmem:[%s7757_s3 + $0x10] sm:$0xff] }
 0xe58   :  { %v2953_v28 = vpop.permute.xlu1 %2952  ;;  %v2955_v38 = vpop.permute.xlu0 %2954 }
 0xe5c   :  { %v2963_v20 = vpop.permute.xlu1 %2962 }
 0xe5d   :  { %5329 = vmatprep.subr.mxu0 %v2963_v20 }
 0xe5e   :  { %5330 = vmatpush3.msra.mxu0 %v2963_v20 }
 0xe5f   :  { %5331 = vmatprep.subr.mxu0 %v2961_v49 }
 0xe60   :  { %5332 = vmatpush3.msra.mxu0 %v2961_v49 }
 0xe61   :  { %5333 = vmatprep.subr.mxu0 %v2959_v54 }
 0xe62   :  { %5334 = vmatpush3.msra.mxu0 %v2959_v54 }
 0xe63   :  { %5335 = vmatprep.subr.mxu0 %v2957_v36 }
 0xe64   :  { %5336 = vmatpush3.msra.mxu0 %v2957_v36 }
 0xe65   :  { %5337 = vmatprep.subr.mxu0 %v2955_v38 }
 0xe66   :  { %5338 = vmatpush3.msra.mxu0 %v2955_v38 }
 0xe67   :  { %5339 = vmatprep.subr.mxu0 %v2953_v28 }
 0xe68   :  { %5340 = vmatpush3.msra.mxu0 %v2953_v28 }
 0xef5   :  { %v5322_v22 = vpop.f32.mrf.mxu1 }
 0xef6   :  { %v2875_v16 = vmul.f32 0.35355338, %v5322_v22 }
 0xef7   :  { %v2845_v3 = vpop.f32.mrf.mxu1 }
 0xef8   :  { %v7123_v44 = vadd.f32 %v7120_v1, %v2875_v16  ;;  %v2874_v59 = vmul.f32 0.35355338, %v2845_v3 }
 0xef9   :  { %v5325_v42 = vpop.f32.mrf.mxu1 }
 0xefa   :  { %v7131_v43 = vadd.f32 %v7128_v46, %v2874_v59  ;;  %v2889_v51 = vsel %vm590_vm2, %v7123_v44, -inf  ;;  %v2877_v52 = vmul.f32 0.35355338, %v5325_v42 }
 0xefb   :  { %2890 = vmax.xlane.f32.xlu1 %v2889_v51  ;;  %v2855_v25 = vpop.f32.mrf.mxu1 }
 0xefc   :  { %v2886_v57 = vsel %vm590_vm2, %v7131_v43, -inf  ;;  %v7153_v21 = vadd.f32 %v7150_v63, %v2877_v52  ;;  %v2876_v34 = vmul.f32 0.35355338, %v2855_v25  ;;  %v7198_v25 = vld [vmem:[%s7757_s3 + $0x20] sm:$0xff]  ;;  %s7761_s3 = smov 64  }
 0xefd   :  { %2887 = vmax.xlane.f32.xlu0 %v2886_v57  ;;  %v5328_v11 = vpop.f32.mrf.mxu1 }
 0xefe   :  { %v2879_v30 = vmul.f32 0.35355338, %v5328_v11  ;;  %v7176_v14 = vadd.f32 %v7173_v37, %v2876_v34  ;;  %v2895_v28 = vsel %vm590_vm2, %v7153_v21, -inf }
 0xeff   :  { %v2865_v36 = vpop.f32.mrf.mxu1 }
 0xf00   :  { %v7166_v15 = vadd.f32 %v7163_v29, %v2879_v30  ;;  %v2878_v16 = vmul.f32 0.35355338, %v2865_v36  ;;  %v2892_v59 = vsel %vm590_vm2, %v7176_v14, -inf }
 0xf01   :  { %v5301_v8 = vpop.f32.mrf.mxu0 }
 0xf02   :  { %v2654_v39 = vmul.f32 0.35355338, %v5301_v8  ;;  %v2901_v38 = vsel %vm590_vm2, %v7166_v15, -inf  ;;  %v7201_v8 = vadd.f32 %v7198_v25, %v2878_v16 }
 0xf03   :  { %v2624_v5 = vpop.f32.mrf.mxu0 }
 0xf04   :  { %v7140_v35 = vadd.f32 %v7120_v1, %v2654_v39  ;;  %v2653_v12 = vmul.f32 0.35355338, %v2624_v5  ;;  %v2898_v30 = vsel %vm590_vm2, %v7201_v8, -inf }
 0xf05   :  { %v5304_v18 = vpop.f32.mrf.mxu0 }
 0xf06   :  { %v7143_v4 = vadd.f32 %v7128_v46, %v2653_v12  ;;  %v2656_v50 = vmul.f32 0.35355338, %v5304_v18  ;;  %v2668_v32 = vsel %vm590_vm2, %v7140_v35, -inf }
 0xf07   :  { %2669 = vmax.xlane.f32.xlu1 %v2668_v32  ;;  %v2634_v47 = vpop.f32.mrf.mxu0 }
 0xf08   :  { %v7156_v53 = vadd.f32 %v7150_v63, %v2656_v50  ;;  %v2665_v10 = vsel %vm590_vm2, %v7143_v4, -inf  ;;  %v2655_v49 = vmul.f32 0.35355338, %v2634_v47 }
 0xf09   :  { %2666 = vmax.xlane.f32.xlu0 %v2665_v10  ;;  %v5307_v0 = vpop.f32.mrf.mxu0 }
 0xf0a   :  { %v2658_v9 = vmul.f32 0.35355338, %v5307_v0  ;;  %v2674_v48 = vsel %vm590_vm2, %v7156_v53, -inf  ;;  %v7186_v3 = vadd.f32 %v7173_v37, %v2655_v49 }
 0xf0b   :  { %2675 = vmax.xlane.f32.xlu1 %v2674_v48  ;;  %v2644_v51 = vpop.f32.mrf.mxu0 }
 0xf0c   :  { %v7181_v20 = vadd.f32 %v7163_v29, %v2658_v9  ;;  %v2657_v39 = vmul.f32 0.35355338, %v2644_v51  ;;  %v2671_v11 = vsel %vm590_vm2, %v7186_v3, -inf }
 0xf0d   :  { %2896 = vmax.xlane.f32.xlu0 %v2895_v28 }
 0xf0e   :  { %v5385_v54 = vpop.f32.mrf.mxu1  ;;  %v2680_v57 = vsel %vm590_vm2, %v7181_v20, -inf  ;;  %v7208_v12 = vadd.f32 %v7198_v25, %v2657_v39 }
 0xf0f   :  { %v3358_v22 = vmul.f32 0.35355338, %v5385_v54  ;;  %2902 = vmax.xlane.f32.xlu1 %v2901_v38 }
 0xf10   :  { %v3328_v5 = vpop.f32.mrf.mxu1  ;;  %v2677_v32 = vsel %vm590_vm2, %v7208_v12, -inf }
 0xf11   :  { %2893 = vmax.xlane.f32.xlu0 %v2892_v59  ;;  %v7191_v42 = vadd.f32 %v7120_v1, %v3358_v22  ;;  %v3357_v18 = vmul.f32 0.35355338, %v3328_v5 }
 0xf12   :  { %v5388_v34 = vpop.f32.mrf.mxu1 }
 0xf13   :  { %2681 = vmax.xlane.f32.xlu1 %v2680_v57  ;;  %v3372_v52 = vsel %vm590_vm2, %v7191_v42, -inf  ;;  %v7213_v50 = vadd.f32 %v7128_v46, %v3357_v18  ;;  %v3360_v28 = vmul.f32 0.35355338, %v5388_v34 }
 0xf14   :  { %v3338_v10 = vpop.f32.mrf.mxu1 }
 0xf15   :  { %2672 = vmax.xlane.f32.xlu0 %v2671_v11  ;;  %v3369_v47 = vsel %vm590_vm2, %v7213_v50, -inf  ;;  %v3359_v9 = vmul.f32 0.35355338, %v3338_v10  ;;  %v7240_v22 = vadd.f32 %v7150_v63, %v3360_v28 }
 0xf16   :  { %v5391_v0 = vpop.f32.mrf.mxu1 }
 0xf17   :  { %3373 = vmax.xlane.f32.xlu1 %v3372_v52  ;;  %v7232_v36 = vadd.f32 %v7173_v37, %v3359_v9  ;;  %v3362_v16 = vmul.f32 0.35355338, %v5391_v0  ;;  %v3378_v57 = vsel %vm590_vm2, %v7240_v22, -inf }
 0xf18   :  { %v3348_v48 = vpop.f32.mrf.mxu1 }
 0xf19   :  { %2899 = vmax.xlane.f32.xlu0 %v2898_v30  ;;  %v3361_v49 = vmul.f32 0.35355338, %v3348_v48  ;;  %v3375_v38 = vsel %vm590_vm2, %v7232_v36, -inf  ;;  %v7245_v51 = vadd.f32 %v7163_v29, %v3362_v16 }
 0xf1b   :  { %v7235_v54 = vadd.f32 %v7198_v25, %v3361_v49  ;;  %v3384_v39 = vsel %vm590_vm2, %v7245_v51, -inf }
 0xf1d   :  { %2678 = vmax.xlane.f32.xlu0 %v2677_v32  ;;  %v3381_v59 = vsel %vm590_vm2, %v7235_v54, -inf }
 0xf21   :  { %3370 = vmax.xlane.f32.xlu0 %v3369_v47 }
 0xf28   :  { %3091 = vrot.lane.b32.xlu1 %v6983_v24, %s7761_s3 }
 0xf2c   :  { %3089 = vrot.lane.b32.xlu1 %v6977_v27, %s7761_s3 }
 0xf30   :  { %3087 = vrot.lane.b32.xlu1 %v6971_v62, %s7761_s3 }
 0xf34   :  { %3085 = vrot.lane.b32.xlu1 %v6995_v17, %s7761_s3 }
 0xf37   :  { %3093 = vrot.lane.b32.xlu0 %v6989_v33, %s7761_s3 }
 0xf38   :  { %3083 = vrot.lane.b32.xlu1 %v6963_v56, %s7761_s3 }
 0xf56   :  { %3376 = vmax.xlane.f32.xlu0 %v3375_v38 }
 0xf5a   :  { %3382 = vmax.xlane.f32.xlu0 %v3381_v59 }
 0xf5c   :  { %3379 = vmax.xlane.f32.xlu1 %v3378_v57 }
 0xf60   :  { %3385 = vmax.xlane.f32.xlu1 %v3384_v39 }
 0xf84   :  { %v2891_v11 = vpop.xlane.xlu1 %2890 }
 0xf85   :  { %v2905_v5 = vsub.f32 %v7123_v44, %v2891_v11 }
 0xf86   :  { %v2888_v52 = vpop.xlane.xlu0 %2887 }
 0xf87   :  { %v2912_v18 = vmul.f32 1.442695, %v2905_v5  ;;  %v2904_v30 = vsub.f32 %v7131_v43, %v2888_v52 }
 0xf89   :  { %5684 = vpow2.f32 %v2912_v18  ;;  %v2910_v32 = vmul.f32 1.442695, %v2904_v30 }
 0xf8b   :  { %5686 = vpow2.f32 %v2910_v32 }
 0xf90   :  { %v2670_v47 = vpop.xlane.xlu1 %2669 }
 0xf91   :  { %v2684_v34 = vsub.f32 %v7140_v35, %v2670_v47 }
 0xf92   :  { %v2667_v10 = vpop.xlane.xlu0 %2666 }
 0xf93   :  { %v2691_v0 = vmul.f32 1.442695, %v2684_v34  ;;  %v2683_v9 = vsub.f32 %v7143_v4, %v2667_v10 }
 0xf94   :  { %v2676_v48 = vpop.xlane.xlu1 %2675 }
 0xf95   :  { %5688 = vpow2.f32 %v2691_v0  ;;  %v2689_v49 = vmul.f32 1.442695, %v2683_v9  ;;  %v2686_v28 = vsub.f32 %v7156_v53, %v2676_v48 }
 0xf96   :  { %v7256_v44 = vpop.eup %5684  ;;  %v2897_v38 = vpop.xlane.xlu0 %2896 }
 0xf97   :  { %5690 = vpow2.f32 %v2689_v49  ;;  %v2695_v43 = vmul.f32 1.442695, %v2686_v28  ;;  %v2907_v16 = vsub.f32 %v7153_v21, %v2897_v38  ;;  %v2925_v59 = vsel %vm590_vm2, %v7256_v44, 0.0 }
 0xf98   :  { %v7261_v35 = vpop.eup %5686  ;;  %v2903_v57 = vpop.xlane.xlu1 %2902  ;;  %2926 = vadd.xlane.f32.xlu1 %v2925_v59 }
 0xf99   :  { %5692 = vpow2.f32 %v2695_v43  ;;  %v2916_v4 = vmul.f32 1.442695, %v2907_v16  ;;  %v2909_v39 = vsub.f32 %v7166_v15, %v2903_v57  ;;  %v2922_v53 = vsel %vm590_vm2, %v7261_v35, 0.0 }
 0xf9a   :  { %2923 = vadd.xlane.f32.xlu0 %v2922_v53  ;;  %v2894_v11 = vpop.xlane.xlu0 %2893 }
 0xf9b   :  { %5694 = vpow2.f32 %v2916_v4  ;;  %v2920_v5 = vmul.f32 1.442695, %v2909_v39  ;;  %v2906_v21 = vsub.f32 %v7176_v14, %v2894_v11 }
 0xf9c   :  { %v2682_v52 = vpop.xlane.xlu1 %2681 }
 0xf9d   :  { %5696 = vpow2.f32 %v2920_v5  ;;  %v2914_v18 = vmul.f32 1.442695, %v2906_v21  ;;  %v2688_v30 = vsub.f32 %v7181_v20, %v2682_v52 }
 0xf9e   :  { %v2673_v32 = vpop.xlane.xlu0 %2672 }
 0xf9f   :  { %5698 = vpow2.f32 %v2914_v18  ;;  %v2685_v47 = vsub.f32 %v7186_v3, %v2673_v32  ;;  %v2699_v34 = vmul.f32 1.442695, %v2688_v30 }
 0xfa0   :  { %v3374_v32 = vpop.xlane.xlu1 %3373 }
 0xfa1   :  { %v2693_v15 = vmul.f32 1.442695, %v2685_v47 }
 0xfa2   :  { %v7269_v10 = vpop.eup %5688  ;;  %v2900_v0 = vpop.xlane.xlu0 %2899 }
 0xfa3   :  { %5700 = vpow2.f32 %v2693_v15  ;;  %v2908_v9 = vsub.f32 %v7201_v8, %v2900_v0  ;;  %v2704_v14 = vsel %vm590_vm2, %v7269_v10, 0.0 }
 0xfa4   :  { %v7274_v48 = vpop.eup %5690  ;;  %2705 = vadd.xlane.f32.xlu1 %v2704_v14  ;;  %5702 = vpow2.f32 %v2699_v34  ;;  %v7313_v47 = vpop.permute.xlu1 %3091 }
 0xfa5   :  { %v2918_v20 = vmul.f32 1.442695, %v2908_v9  ;;  %v2701_v49 = vsel %vm590_vm2, %v7274_v48, 0.0 }
 0xfa6   :  { %v7278_v3 = vpop.eup %5692  ;;  %2702 = vadd.xlane.f32.xlu0 %v2701_v49  ;;  %v2679_v28 = vpop.xlane.xlu0 %2678 }
 0xfa7   :  { %5704 = vpow2.f32 %v2918_v20  ;;  %v2710_v8 = vsel %vm590_vm2, %v7278_v3, 0.0  ;;  %v2687_v34 = vsub.f32 %v7208_v12, %v2679_v28  ;;  %v3388_v20 = vsub.f32 %v7191_v42, %v3374_v32 }
 0xfa8   :  { %v7280_v38 = vpop.eup %5694  ;;  %v7316_v15 = vpop.permute.xlu1 %3089 }
 0xfa9   :  { %v2931_v43 = vsel %vm590_vm2, %v7280_v38, 0.0  ;;  %v2697_v0 = vmul.f32 1.442695, %v2687_v34 }
 0xfaa   :  { %v7286_v16 = vpop.eup %5696  ;;  %2711 = vadd.xlane.f32.xlu0 %v2710_v8  ;;  %2932 = vadd.xlane.f32.xlu1 %v2931_v43  ;;  %v3371_v59 = vpop.xlane.xlu0 %3370  ;;  %v3395_v8 = vmul.f32 1.442695, %v3388_v20 }
 0xfab   :  { %v2937_v4 = vsel %vm590_vm2, %v7286_v16, 0.0  ;;  %v3387_v9 = vsub.f32 %v7213_v50, %v3371_v59  ;;  %5706 = vpow2.f32 %v2697_v0 }
 0xfac   :  { %v7288_v57 = vpop.eup %5698  ;;  %v7321_v14 = vpop.permute.xlu1 %3087 }
 0xfad   :  { %v2928_v39 = vsel %vm590_vm2, %v7288_v57, 0.0  ;;  %v3393_v49 = vmul.f32 1.442695, %v3387_v9 }
 0xfae   :  { %2938 = vadd.xlane.f32.xlu1 %v2937_v4  ;;  %2929 = vadd.xlane.f32.xlu0 %v2928_v39  ;;  %v7294_v53 = vpop.permute.xlu0 %3093 }
 0xfaf   :  { %5350 = vmatprep.subr.mxu0 %v7294_v53  ;;  %5708 = vpow2.f32 %v3393_v49 }
 0xfb0   :  { %v7297_v11 = vpop.eup %5700  ;;  %v7324_v43 = vpop.permute.xlu1 %3085  ;;  %5710 = vpow2.f32 %v3395_v8 }
 0xfb1   :  { %v2707_v5 = vsel %vm590_vm2, %v7297_v11, 0.0  ;;  %v7301_v21 = vpop.eup %5702 }
 0xfb2   :  { %2708 = vadd.xlane.f32.xlu0 %v2707_v5  ;;  %v2716_v52 = vsel %vm590_vm2, %v7301_v21, 0.0 }
 0xfb4   :  { %v7305_v18 = vpop.eup %5704  ;;  %v7327_v4 = vpop.permute.xlu1 %3083 }
 0xfb5   :  { %v2934_v30 = vsel %vm590_vm2, %v7305_v18, 0.0 }
 0xfb6   :  { %2717 = vadd.xlane.f32.xlu0 %v2716_v52 }
 0xfb8   :  { %v7329_v5 = vpop.eup %5706 }
 0xfb9   :  { %v2713_v42 = vsel %vm590_vm2, %v7329_v5, 0.0 }
 0xfba   :  { %2935 = vadd.xlane.f32.xlu0 %v2934_v30 }
 0xfbc   :  { %v7333_v52 = vpop.eup %5708 }
 0xfbd   :  { %v7339_v0 = vpop.eup %5710 }
 0xfbe   :  { %v3408_v49 = vsel %vm590_vm2, %v7339_v0, 0.0 }
 0xfbf   :  { %3574 = vrot.lane.b32.xlu1 %v6983_v24, %s7762_s27 }
 0xfc3   :  { %3572 = vrot.lane.b32.xlu1 %v6977_v27, %s7762_s27 }
 0xfd0   :  { %3576 = vrot.lane.b32.xlu0 %v6989_v33, %s7762_s27 }
 0xfdf   :  { %v3377_v12 = vpop.xlane.xlu0 %3376 }
 0xfe0   :  { %v3389_v28 = vsub.f32 %v7232_v36, %v3377_v12  ;;  %v3405_v36 = vsel %vm590_vm2, %v7333_v52, 0.0 }
 0xfe2   :  { %v3397_v39 = vmul.f32 1.442695, %v3389_v28 }
 0xfe3   :  { %v3383_v50 = vpop.xlane.xlu0 %3382 }
 0xfe4   :  { %5712 = vpow2.f32 %v3397_v39  ;;  %v3391_v30 = vsub.f32 %v7235_v54, %v3383_v50 }
 0xfe5   :  { %v3380_v59 = vpop.xlane.xlu1 %3379 }
 0xfe6   :  { %v3401_v9 = vmul.f32 1.442695, %v3391_v30  ;;  %v3390_v50 = vsub.f32 %v7240_v22, %v3380_v59 }
 0xfe7   :  { %2714 = vadd.xlane.f32.xlu1 %v2713_v42 }
 0xfe8   :  { %v3399_v42 = vmul.f32 1.442695, %v3390_v50 }
 0xfe9   :  { %v3386_v32 = vpop.xlane.xlu1 %3385 }
 0xfea   :  { %v3392_v34 = vsub.f32 %v7245_v51, %v3386_v32 }
 0xfeb   :  { %3406 = vadd.xlane.f32.xlu1 %v3405_v36 }
 0xfec   :  { %v3403_v20 = vmul.f32 1.442695, %v3392_v34 }
 0xfee   :  { %5714 = vpow2.f32 %v3403_v20 }
 0xfef   :  { %3409 = vadd.xlane.f32.xlu0 %v3408_v49  ;;  %5716 = vpow2.f32 %v3401_v9 }
 0xff0   :  { %5718 = vpow2.f32 %v3399_v42 }
 0xff1   :  { %v7343_v8 = vpop.eup %5712 }
 0xff2   :  { %v3411_v54 = vsel %vm590_vm2, %v7343_v8, 0.0 }
 0xff3   :  { %3412 = vadd.xlane.f32.xlu0 %v3411_v54 }
 0xffb   :  { %v7347_v51 = vpop.eup %5714 }
 0xffc   :  { %3570 = vrot.lane.b32.xlu1 %v6971_v62, %s7762_s27  ;;  %v3420_v12 = vsel %vm590_vm2, %v7347_v51, 0.0  ;;  %v7353_v28 = vpop.eup %5716 }
 0xffd   :  { %3421 = vadd.xlane.f32.xlu0 %v3420_v12  ;;  %v3417_v39 = vsel %vm590_vm2, %v7353_v28, 0.0  ;;  %v7362_v30 = vpop.eup %5718 }
 0xffe   :  { %v3414_v32 = vsel %vm590_vm2, %v7362_v30, 0.0 }
0x1001   :  { %3418 = vadd.xlane.f32.xlu0 %v3417_v39 }
0x1017   :  { %3568 = vrot.lane.b32.xlu0 %v6995_v17, %s7762_s27 }
0x101b   :  { %3554 = vrot.lane.b32.xlu0 %v6963_v56, %s7763_s4 }
0x101f   :  { %3558 = vrot.lane.b32.xlu0 %v6971_v62, %s7763_s4 }
0x1020   :  { %3415 = vadd.xlane.f32.xlu1 %v3414_v32 }
0x1021   :  { %v2927_v34 = vpop.xlane.xlu1 %2926 }
0x1022   :  { %5720 = vrcp.f32 %v2927_v34 }
0x1023   :  { %3562 = vrot.lane.b32.xlu0 %v6983_v24, %s7763_s4  ;;  %v2924_v22 = vpop.xlane.xlu0 %2923 }
0x1024   :  { %5722 = vrcp.f32 %v2924_v22 }
0x102d   :  { %v2706_v20 = vpop.xlane.xlu1 %2705 }
0x102f   :  { %v2703_v59 = vpop.xlane.xlu0 %2702  ;;  %v5721_v36 = vpop.eup %5720 }
0x1030   :  { %v2947_v49 = vmul.f32 %v5721_v36, %v7256_v44 }
0x1031   :  { %v5723_v9 = vpop.eup %5722  ;;  %3566 = vrot.lane.b32.xlu1 %v6963_v56, %s7762_s27 }
0x1032   :  { %v2946_v62 = vmul.f32 %v5723_v9, %v7261_v35 }
0x1033   :  { %v2712_v54 = vpop.xlane.xlu0 %2711  ;;  %v2933_v12 = vpop.xlane.xlu1 %2932 }
0x1034   :  { %5341 = vmatprep.mubr.msk.f32.mxu0 %vm590_vm2, %v2946_v62  ;;  %5724 = vrcp.f32 %v2933_v12 }
0x1035   :  { %3556 = vrot.lane.b32.xlu1 %v6995_v17, %s7763_s4  ;;  %5342 = vmatmul.mubr.msk.f32.vlgmr.msra.gmra.mxu0 %vm590_vm2, %v2947_v49  ;;  %v2394_v17 = vrot.slane %v6958_v13, %v318_v6 }
0x1036   :  { %5351 = vmatpush3.msra.mxu0 %v7294_v53 }
0x1037   :  { %5352 = vmatprep.subr.mxu0 %v7313_v47  ;;  %v2930_v24 = vpop.xlane.xlu0 %2929  ;;  %v2939_v35 = vpop.xlane.xlu1 %2938  ;;  %v7413_v32 = vadd.f32 %v6985_v60, %v2394_v17  ;;  %v7431_v60 = vadd.f32 %v6969_v41, %v2394_v17 }
0x1038   :  { %5353 = vmatpush3.msra.mxu0 %v7313_v47  ;;  %5726 = vrcp.f32 %v2930_v24 }
0x1039   :  { %5354 = vmatprep.subr.mxu0 %v7316_v15  ;;  %3560 = vrot.lane.b32.xlu1 %v6977_v27, %s7763_s4  ;;  %v7395_v27 = vadd.f32 %v7137_v40, %v2394_v17  ;;  %5728 = vrcp.f32 %v2703_v59 }
0x103a   :  { %5355 = vmatpush3.msra.mxu0 %v7316_v15  ;;  %5730 = vrcp.f32 %v2939_v35 }
0x103b   :  { %5356 = vmatprep.subr.mxu0 %v7321_v14  ;;  %v2709_v56 = vpop.xlane.xlu0 %2708  ;;  %v3575_v41 = vpop.permute.xlu1 %3574 }
0x103c   :  { %5357 = vmatpush3.msra.mxu0 %v7321_v14 }
0x103d   :  { %5358 = vmatprep.subr.mxu0 %v7324_v43  ;;  %3564 = vrot.lane.b32.xlu1 %v6989_v33, %s7763_s4 }
0x103e   :  { %5359 = vmatpush3.msra.mxu0 %v7324_v43 }
0x103f   :  { %5360 = vmatprep.subr.mxu0 %v7327_v4  ;;  %v2718_v44 = vpop.xlane.xlu0 %2717 }
0x1040   :  { %5361 = vmatpush3.msra.mxu0 %v7327_v4 }
0x1041   :  { %5392 = vmatprep.subr.mxu0 %v7395_v27  ;;  %v5725_v6 = vpop.eup %5724 }
0x1042   :  { %v2949_v40 = vmul.f32 %v5725_v6, %v7280_v38 }
0x1043   :  { %v2936_v58 = vpop.xlane.xlu0 %2935 }
0x1044   :  { %5732 = vrcp.f32 %v2936_v58 }
0x1045   :  { %v5727_v13 = vpop.eup %5726  ;;  %5734 = vrcp.f32 %v2706_v20 }
0x1046   :  { %v2948_v33 = vmul.f32 %v5727_v13, %v7288_v57  ;;  %5736 = vrcp.f32 %v2709_v56  ;;  %v5729_v53 = vpop.eup %5728 }
0x1047   :  { %5738 = vrcp.f32 %v2712_v54  ;;  %v5731_v47 = vpop.eup %5730  ;;  %v2725_v57 = vmul.f32 %v5729_v53, %v7274_v48  ;;  %v7419_v48 = vadd.f32 %v6979_v31, %v2394_v17  ;;  %v7436_v31 = vadd.f32 %v6965_v26, %v2394_v17 }
0x1048   :  { %5344 = vmatprep.mubr.msk.f32.mxu0 %vm590_vm2, %v2948_v33  ;;  %v2951_v43 = vmul.f32 %v5731_v47, %v7286_v16  ;;  %5740 = vrcp.f32 %v2718_v44 }
0x1049   :  { %5345 = vmatmul.mubr.msk.f32.gmra.mxu0 %vm590_vm2, %v2949_v40 }
0x1051   :  { %v5733_v15 = vpop.eup %5732 }
0x1052   :  { %v2950_v14 = vmul.f32 %v5733_v15, %v7305_v18  ;;  %v5735_v4 = vpop.eup %5734 }
0x1053   :  { %v5737_v39 = vpop.eup %5736  ;;  %v2726_v38 = vmul.f32 %v5735_v4, %v7269_v10  ;;  %v7425_v10 = vadd.f32 %v6973_v61, %v2394_v17  ;;  %v3577_v61 = vpop.permute.xlu0 %3576 }
0x1054   :  { %5347 = vmatprep.mubr.msk.f32.mxu0 %vm590_vm2, %v2950_v14  ;;  %v5739_v50 = vpop.eup %5738  ;;  %v2727_v42 = vmul.f32 %v5737_v39, %v7297_v11 }
0x1055   :  { %5348 = vmatmul.mubr.msk.f32.gmra.mxu0 %vm590_vm2, %v2951_v43  ;;  %v2728_v16 = vmul.f32 %v5739_v50, %v7278_v3  ;;  %v3573_v3 = vpop.permute.xlu1 %3572  ;;  %v5741_v22 = vpop.eup %5740 }
0x1056   :  { %5362 = vmatprep.mubr.msk.f32.mxu0 %vm590_vm2, %v2725_v57  ;;  %v2730_v9 = vmul.f32 %v5741_v22, %v7301_v21 }
0x1059   :  { %5363 = vmatmul.mubr.msk.f32.vlgmr.msra.gmra.mxu0 %vm590_vm2, %v2726_v38 }
0x105a   :  { %5393 = vmatpush3.msra.mxu0 %v7395_v27  ;;  %5365 = vmatprep.mubr.msk.f32.mxu0 %vm590_vm2, %v2727_v42 }
0x105b   :  { %5394 = vmatprep.subr.mxu0 %v7413_v32 }
0x105c   :  { %5395 = vmatpush3.msra.mxu0 %v7413_v32 }
0x105d   :  { %5396 = vmatprep.subr.mxu0 %v7419_v48  ;;  %5366 = vmatmul.mubr.msk.f32.gmra.mxu0 %vm590_vm2, %v2728_v16 }
0x105e   :  { %5397 = vmatpush3.msra.mxu0 %v7419_v48 }
0x105f   :  { %5398 = vmatprep.subr.mxu0 %v7425_v10 }
0x1060   :  { %5399 = vmatpush3.msra.mxu0 %v7425_v10 }
0x1061   :  { %5400 = vmatprep.subr.mxu0 %v7431_v60 }
0x1062   :  { %5401 = vmatpush3.msra.mxu0 %v7431_v60 }
0x1063   :  { %5402 = vmatprep.subr.mxu0 %v7436_v31 }
0x1064   :  { %5403 = vmatpush3.msra.mxu0 %v7436_v31 }
0x1065   :  { %5413 = vmatprep.subr.msk.mxu0 %vm82_vm0, %v3577_v61 }
0x1070   :  { %v2715_v11 = vpop.xlane.xlu1 %2714 }
0x1071   :  { %5742 = vrcp.f32 %v2715_v11 }
0x1074   :  { %v3407_v18 = vpop.xlane.xlu1 %3406 }
0x1075   :  { %5744 = vrcp.f32 %v3407_v18 }
0x1078   :  { %v3410_v26 = vpop.xlane.xlu0 %3409 }
0x1079   :  { %5746 = vrcp.f32 %v3410_v26 }
0x107c   :  { %v3413_v34 = vpop.xlane.xlu0 %3412 }
0x107d   :  { %5748 = vrcp.f32 %v3413_v34 }
0x107e   :  { %v5743_v59 = vpop.eup %5742 }
0x107f   :  { %v2729_v36 = vmul.f32 %v5743_v59, %v7329_v5 }
0x1081   :  { %5368 = vmatprep.mubr.msk.f32.mxu0 %vm590_vm2, %v2729_v36 }
0x1082   :  { %v5745_v20 = vpop.eup %5744  ;;  %5369 = vmatmul.mubr.msk.f32.gmra.mxu0 %vm590_vm2, %v2730_v9 }
0x1083   :  { %v3429_v62 = vmul.f32 %v5745_v20, %v7333_v52  ;;  %v3571_v52 = vpop.permute.xlu1 %3570 }
0x1085   :  { %5404 = vmatprep.mubr.msk.f32.mxu0 %vm590_vm2, %v3429_v62 }
0x1086   :  { %v5747_v49 = vpop.eup %5746  ;;  %v3422_v24 = vpop.xlane.xlu0 %3421 }
0x1087   :  { %v3430_v54 = vmul.f32 %v5747_v49, %v7339_v0 }
0x1089   :  { %5405 = vmatmul.mubr.msk.f32.vlgmr.msra.gmra.mxu0 %vm590_vm2, %v3430_v54 }
0x108a   :  { %v5749_v12 = vpop.eup %5748  ;;  %5414 = vmatpush3.xpose.msk.msra.mxu0 %vm82_vm0, %v3577_v61  ;;  %v3419_v5 = vpop.xlane.xlu0 %3418 }
0x108b   :  { %5415 = vmatprep.subr.msk.mxu0 %vm82_vm0, %v3575_v41  ;;  %v3431_v21 = vmul.f32 %v5749_v12, %v7343_v8  ;;  %5750 = vrcp.f32 %v3419_v5 }
0x108d   :  { %5407 = vmatprep.mubr.msk.f32.mxu0 %vm590_vm2, %v3431_v21 }
0x108e   :  { %5416 = vmatpush3.xpose.msk.msra.mxu0 %vm82_vm0, %v3575_v41  ;;  %v3569_v0 = vpop.permute.xlu0 %3568 }
0x108f   :  { %5417 = vmatprep.subr.msk.mxu0 %vm82_vm0, %v3573_v3 }
0x1092   :  { %5418 = vmatpush3.xpose.msk.msra.mxu0 %vm82_vm0, %v3573_v3  ;;  %v3555_v13 = vpop.permute.xlu0 %3554 }
0x1093   :  { %5419 = vmatprep.subr.msk.mxu0 %vm82_vm0, %v3571_v52 }
0x1096   :  { %5420 = vmatpush3.xpose.msk.msra.mxu0 %vm82_vm0, %v3571_v52  ;;  %v3559_v53 = vpop.permute.xlu0 %3558 }
0x1097   :  { %5421 = vmatprep.subr.msk.mxu0 %vm82_vm0, %v3569_v0 }
0x1098   :  { %v5751_v17 = vpop.eup %5750 }
0x1099   :  { %v3433_v6 = vmul.f32 %v5751_v17, %v7353_v28 }
0x109a   :  { %5422 = vmatpush3.xpose.msk.msra.mxu0 %vm82_vm0, %v3569_v0 }
0x10a9   :  { %v3416_v8 = vpop.xlane.xlu1 %3415 }
0x10aa   :  { %5752 = vrcp.f32 %v3416_v8 }
0x10ab   :  { %5754 = vrcp.f32 %v3422_v24 }
0x10ad   :  { %v3567_v56 = vpop.permute.xlu1 %3566 }
0x10ae   :  { %5423 = vmatprep.subr.msk.mxu0 %vm82_vm0, %v3567_v56 }
0x10af   :  { %5424 = vmatpush3.xpose.msk.msra.mxu0 %vm82_vm0, %v3567_v56 }
0x10b1   :  { %v3557_v40 = vpop.permute.xlu1 %3556 }
0x10b5   :  { %v3561_v47 = vpop.permute.xlu1 %3560 }
0x10b7   :  { %v5753_v44 = vpop.eup %5752 }
0x10b8   :  { %v3432_v35 = vmul.f32 %v5753_v44, %v7362_v30  ;;  %v5755_v58 = vpop.eup %5754  ;;  %v3563_v30 = vpop.permute.xlu0 %3562 }
0x10b9   :  { %v3434_v33 = vmul.f32 %v5755_v58, %v7347_v51  ;;  %v3565_v28 = vpop.permute.xlu1 %3564 }
0x10ba   :  { %5408 = vmatmul.mubr.msk.f32.gmra.mxu0 %vm590_vm2, %v3432_v35 }
0x10bb   :  { %5410 = vmatprep.mubr.msk.f32.mxu0 %vm590_vm2, %v3433_v6 }
0x10be   :  { %5411 = vmatmul.mubr.msk.f32.gmra.mxu0 %vm590_vm2, %v3434_v33 }
0x10bf   :  { %5425 = vmatprep.mubr.msk.f32.mxu0 %vm82_vm0, %v3555_v13 }
0x10c2   :  { %5426 = vmatmul.mubr.msk.f32.vlgmr.msra.gmra.mxu0 %vm82_vm0, %v3557_v40 }
0x10c3   :  { %5428 = vmatprep.mubr.msk.f32.mxu0 %vm82_vm0, %v3559_v53 }
0x10c6   :  { %5429 = vmatmul.mubr.msk.f32.gmra.mxu0 %vm82_vm0, %v3561_v47 }
0x10c7   :  { %5431 = vmatprep.mubr.msk.f32.mxu0 %vm82_vm0, %v3563_v30 }
0x10ca   :  { %5432 = vmatmul.mubr.msk.f32.gmra.mxu0 %vm82_vm0, %v3565_v28 }
0x10f5   :  { %v5343_v51 = vpop.f32.mrf.mxu0 }
0x10f7   :  { %v3054_v15 = vpop.f32.mrf.mxu0 }
0x1109   :  { %v5346_v14 = vpop.f32.mrf.mxu0 }
0x110b   :  { %v3064_v43 = vpop.f32.mrf.mxu0 }
0x1115   :  { %v5349_v4 = vpop.f32.mrf.mxu0 }
0x1117   :  { %v3074_v57 = vpop.f32.mrf.mxu0 }
0x1119   :  { %v5364_v39 = vpop.f32.mrf.mxu0 }
0x111a   :  { %v3191_v38 = vadd.f32 %v5364_v39, %v5343_v51 }
0x111b   :  { %v3185_v50 = vpop.f32.mrf.mxu0 }
0x111c   :  { %v3186_v42 = vadd.f32 %v3185_v50, %v3054_v15 }
0x111d   :  { %v5367_v16 = vpop.f32.mrf.mxu0 }
0x111e   :  { %v3201_v61 = vadd.f32 %v5367_v16, %v5346_v14 }
0x111f   :  { %v3195_v41 = vpop.f32.mrf.mxu0 }
0x1120   :  { %v3196_v3 = vadd.f32 %v3195_v41, %v3064_v43 }
0x1142   :  { %v5370_v11 = vpop.f32.mrf.mxu0 }
0x1143   :  { %v3211_v18 = vadd.f32 %v5370_v11, %v5349_v4 }
0x1144   :  { %v3205_v26 = vpop.f32.mrf.mxu0 }
0x1145   :  { %v3206_v34 = vadd.f32 %v3205_v26, %v3074_v57 }
0x1149   :  { %v5406_v22 = vpop.f32.mrf.mxu0 }
0x114a   :  { %v7476_v59 = vadd.f32 %v5406_v22, %v3191_v38 }
0x114b   :  { %v3519_v36 = vpop.f32.mrf.mxu0 }
0x114c   :  { %v7478_v9 = vadd.f32 %v3519_v36, %v3186_v42 }
0x117a   :  { %v5409_v20 = vpop.f32.mrf.mxu0 }
0x117b   :  { %v7480_v62 = vadd.f32 %v5409_v20, %v3201_v61 }
0x117c   :  { %v3529_v49 = vpop.f32.mrf.mxu0 }
0x117d   :  { %v7482_v54 = vadd.f32 %v3529_v49, %v3196_v3 }
0x117e   :  { %v5412_v12 = vpop.f32.mrf.mxu0 }
0x117f   :  { %v7484_v24 = vadd.f32 %v5412_v12, %v3211_v18 }
0x1180   :  { %v3539_v21 = vpop.f32.mrf.mxu0 }
0x1181   :  { %v7486_v5 = vadd.f32 %v3539_v21, %v3206_v34 }
0x1182   :  { %v5427_v52 = vpop.f32.mrf.mxu0 }
0x1183   :  { %v3698_v0 = vmul.f32 0.35355338, %v5427_v52 }
0x1184   :  { %v3668_v8 = vpop.f32.mrf.mxu0 }
0x1185   :  { %v3704_v56 = vadd.f32 %v7120_v1, %v3698_v0  ;;  %v3697_v17 = vmul.f32 0.35355338, %v3668_v8 }
0x1186   :  { %v5430_v44 = vpop.f32.mrf.mxu0 }
0x1187   :  { %v3703_v35 = vadd.f32 %v7128_v46, %v3697_v17  ;;  %v3700_v58 = vmul.f32 0.35355338, %v5430_v44  ;;  %v3712_v6 = vsel %vm590_vm2, %v3704_v56, -inf }
0x1188   :  { %3713 = vmax.xlane.f32.xlu1 %v3712_v6  ;;  %v3678_v13 = vpop.f32.mrf.mxu0 }
0x1189   :  { %v3706_v33 = vadd.f32 %v7150_v63, %v3700_v58  ;;  %v3699_v40 = vmul.f32 0.35355338, %v3678_v13  ;;  %v3709_v53 = vsel %vm590_vm2, %v3703_v35, -inf }
0x118a   :  { %3710 = vmax.xlane.f32.xlu0 %v3709_v53  ;;  %v5433_v47 = vpop.f32.mrf.mxu0 }
0x118b   :  { %v3702_v30 = vmul.f32 0.35355338, %v5433_v47  ;;  %v3705_v1 = vadd.f32 %v7173_v37, %v3699_v40  ;;  %v3718_v46 = vsel %vm590_vm2, %v3706_v33, -inf }
0x118c   :  { %v3688_v28 = vpop.f32.mrf.mxu0 }
0x118d   :  { %v3708_v51 = vadd.f32 %v7163_v29, %v3702_v30  ;;  %v3701_v15 = vmul.f32 0.35355338, %v3688_v28  ;;  %v3715_v43 = vsel %vm590_vm2, %v3705_v1, -inf }
0x118e   :  { %3719 = vmax.xlane.f32.xlu0 %v3718_v46 }
0x118f   :  { %v3724_v14 = vsel %vm590_vm2, %v3708_v51, -inf  ;;  %v3707_v63 = vadd.f32 %v7198_v25, %v3701_v15 }
0x1190   :  { %3725 = vmax.xlane.f32.xlu1 %v3724_v14 }
0x1191   :  { %v3721_v4 = vsel %vm590_vm2, %v3707_v63, -inf }
0x1192   :  { %3716 = vmax.xlane.f32.xlu0 %v3715_v43 }
0x1196   :  { %3722 = vmax.xlane.f32.xlu0 %v3721_v4 }
0x11a1   :  { %3789 = vrot.lane.b32.xlu1 %v7413_v32, %s5841_s21 }
0x11a5   :  { %3787 = vrot.lane.b32.xlu1 %v7419_v48, %s5841_s21 }
0x11a9   :  { %3785 = vrot.lane.b32.xlu1 %v7425_v10, %s5841_s21 }
0x11ac   :  { %3791 = vrot.lane.b32.xlu0 %v7395_v27, %s5841_s21 }
0x1211   :  { %v3714_v29 = vpop.xlane.xlu1 %3713 }
0x1212   :  { %v3728_v37 = vsub.f32 %v3704_v56, %v3714_v29 }
0x1213   :  { %v3711_v25 = vpop.xlane.xlu0 %3710 }
0x1214   :  { %v3735_v57 = vmul.f32 1.442695, %v3728_v37  ;;  %v3727_v39 = vsub.f32 %v3703_v35, %v3711_v25 }
0x1216   :  { %5756 = vpow2.f32 %v3735_v57  ;;  %v3733_v38 = vmul.f32 1.442695, %v3727_v39 }
0x1217   :  { %v3720_v50 = vpop.xlane.xlu0 %3719 }
0x1218   :  { %5758 = vpow2.f32 %v3733_v38  ;;  %v3730_v42 = vsub.f32 %v3706_v33, %v3720_v50  ;;  %v4737_v38 = vld [vmem:[%s7723_s8 + $0x1] ss:$0 sm:$0xff] }
0x1219   :  { %v3726_v32 = vpop.xlane.xlu1 %3725 }
0x121a   :  { %v3739_v16 = vmul.f32 1.442695, %v3730_v42  ;;  %v3732_v61 = vsub.f32 %v3708_v51, %v3726_v32 }
0x121b   :  { %v3717_v48 = vpop.xlane.xlu0 %3716 }
0x121c   :  { %5760 = vpow2.f32 %v3739_v16  ;;  %v3743_v41 = vmul.f32 1.442695, %v3732_v61  ;;  %v3729_v10 = vsub.f32 %v3705_v1, %v3717_v48 }
0x121d   :  { %v3790_v3 = vpop.permute.xlu1 %3789 }
0x121e   :  { %5762 = vpow2.f32 %v3743_v41  ;;  %v3737_v27 = vmul.f32 1.442695, %v3729_v10 }
0x121f   :  { %v3723_v11 = vpop.xlane.xlu0 %3722 }
0x1220   :  { %5764 = vpow2.f32 %v3737_v27  ;;  %v3731_v18 = vsub.f32 %v3707_v63, %v3723_v11 }
0x1221   :  { %v3788_v22 = vpop.permute.xlu1 %3787 }
0x1222   :  { %v3741_v26 = vmul.f32 1.442695, %v3731_v18 }
0x1223   :  { %v5757_v34 = vpop.eup %5756  ;;  %v3792_v36 = vpop.permute.xlu0 %3791 }
0x1224   :  { %5766 = vpow2.f32 %v3741_v26  ;;  %5434 = vmatprep.subr.mxu1 %v3792_v36  ;;  %v3748_v20 = vsel %vm590_vm2, %v5757_v34, 0.0 }
0x1225   :  { %v5759_v49 = vpop.eup %5758  ;;  %3749 = vadd.xlane.f32.xlu1 %v3748_v20  ;;  %5435 = vmatpush3.msra.mxu1 %v3792_v36  ;;  %v3786_v52 = vpop.permute.xlu1 %3785 }
0x1226   :  { %5436 = vmatprep.subr.mxu1 %v3790_v3  ;;  %v3745_v12 = vsel %vm590_vm2, %v5759_v49, 0.0 }
0x1227   :  { %3746 = vadd.xlane.f32.xlu0 %v3745_v12  ;;  %5437 = vmatpush3.msra.mxu1 %v3790_v3 }
0x1228   :  { %5438 = vmatprep.subr.mxu1 %v3788_v22 }
0x1229   :  { %v5761_v21 = vpop.eup %5760  ;;  %5439 = vmatpush3.msra.mxu1 %v3788_v22 }
0x122a   :  { %5440 = vmatprep.subr.mxu1 %v3786_v52  ;;  %v3754_v0 = vsel %vm590_vm2, %v5761_v21, 0.0 }
0x122b   :  { %v5763_v8 = vpop.eup %5762  ;;  %3755 = vadd.xlane.f32.xlu1 %v3754_v0  ;;  %5441 = vmatpush3.msra.mxu1 %v3786_v52 }
0x122c   :  { %v3760_v17 = vsel %vm590_vm2, %v5763_v8, 0.0 }
0x122d   :  { %v5765_v56 = vpop.eup %5764 }
0x122e   :  { %v3751_v44 = vsel %vm590_vm2, %v5765_v56, 0.0 }
0x122f   :  { %3761 = vadd.xlane.f32.xlu1 %v3760_v17  ;;  %3752 = vadd.xlane.f32.xlu0 %v3751_v44 }
0x1231   :  { %v5767_v35 = vpop.eup %5766 }
0x1232   :  { %v3757_v58 = vsel %vm590_vm2, %v5767_v35, 0.0 }
0x1233   :  { %3758 = vadd.xlane.f32.xlu0 %v3757_v58 }
0x1240   :  { %3781 = vrot.lane.b32.xlu1 %v7436_v31, %s5841_s21 }
0x1249   :  { %3783 = vrot.lane.b32.xlu0 %v7431_v60, %s5841_s21 }
0x12ae   :  { %v3750_v6 = vpop.xlane.xlu1 %3749 }
0x12b0   :  { %v3747_v13 = vpop.xlane.xlu0 %3746 }
0x12b1   :  { %5768 = vrcp.f32 %v3747_v13 }
0x12b2   :  { %5770 = vrcp.f32 %v3750_v6 }
0x12b4   :  { %v3756_v33 = vpop.xlane.xlu1 %3755 }
0x12b5   :  { %5772 = vrcp.f32 %v3756_v33 }
0x12b8   :  { %v3753_v40 = vpop.xlane.xlu0 %3752  ;;  %v3762_v53 = vpop.xlane.xlu1 %3761 }
0x12b9   :  { %5774 = vrcp.f32 %v3753_v40 }
0x12ba   :  { %5776 = vrcp.f32 %v3762_v53 }
0x12bc   :  { %v3759_v47 = vpop.xlane.xlu0 %3758  ;;  %v3782_v60 = vpop.permute.xlu1 %3781 }
0x12bd   :  { %5778 = vrcp.f32 %v3759_v47 }
0x12be   :  { %v5769_v30 = vpop.eup %5768 }
0x12bf   :  { %v3769_v28 = vmul.f32 %v5769_v30, %v5759_v49  ;;  %v5771_v1 = vpop.eup %5770 }
0x12c0   :  { %v3784_v51 = vpop.permute.xlu0 %3783  ;;  %v3770_v31 = vmul.f32 %v5771_v1, %v5757_v34 }
0x12c1   :  { %5442 = vmatprep.subr.mxu1 %v3784_v51  ;;  %5446 = vmatprep.mubr.msk.f32.mxu1 %vm590_vm2, %v3769_v28 }
0x12c2   :  { %5443 = vmatpush3.msra.mxu1 %v3784_v51  ;;  %v5773_v15 = vpop.eup %5772 }
0x12c3   :  { %5444 = vmatprep.subr.mxu1 %v3782_v60  ;;  %v3772_v43 = vmul.f32 %v5773_v15, %v5761_v21 }
0x12c4   :  { %5445 = vmatpush3.msra.mxu1 %v3782_v60 }
0x12c5   :  { %5447 = vmatmul.mubr.msk.f32.vlgmr.msra.gmra.mxu1 %vm590_vm2, %v3770_v31 }
0x12c6   :  { %v5775_v46 = vpop.eup %5774 }
0x12c7   :  { %v3771_v14 = vmul.f32 %v5775_v46, %v5765_v56  ;;  %v5777_v63 = vpop.eup %5776 }
0x12c8   :  { %v3774_v37 = vmul.f32 %v5777_v63, %v5763_v8 }
0x12c9   :  { %5449 = vmatprep.mubr.msk.f32.mxu1 %vm590_vm2, %v3771_v14 }
0x12ca   :  { %v5779_v4 = vpop.eup %5778  ;;  %5450 = vmatmul.mubr.msk.f32.gmra.mxu1 %vm590_vm2, %v3772_v43 }
0x12cb   :  { %v3773_v29 = vmul.f32 %v5779_v4, %v5767_v35  ;;  %v4745_v4 = vld [vmem:[%s7726_s11 + $0x38] sm:$0xff] }
0x12cc   :  { %5455 = vmatprep.subr.mxu1 %v4745_v4 }
0x12cd   :  { %5452 = vmatprep.mubr.msk.f32.mxu1 %vm590_vm2, %v3773_v29  ;;  %v4744_v29 = vld [vmem:[%s7726_s11 + $0x30] sm:$0xff]  ;;  %5456 = vmatpush3.msra.mxu1 %v4745_v4  ;;  %v4757_v4 = vld [vmem:[%s7728_s13 + $0x98] sm:$0xff] }
0x12ce   :  { %5453 = vmatmul.mubr.msk.f32.gmra.mxu1 %vm590_vm2, %v3774_v37  ;;  %v4743_v37 = vld [vmem:[%s7726_s11 + $0x28] sm:$0xff]  ;;  %5457 = vmatprep.subr.mxu1 %v4744_v29 }
0x12cf   :  { %5458 = vmatpush3.msra.mxu1 %v4744_v29  ;;  %v4756_v29 = vld [vmem:[%s7728_s13 + $0x90] sm:$0xff] }
0x12d0   :  { %5459 = vmatprep.subr.mxu1 %v4743_v37 }
0x12d1   :  { %5460 = vmatpush3.msra.mxu1 %v4743_v37  ;;  %v4755_v37 = vld [vmem:[%s7728_s13 + $0x88] sm:$0xff] }
0x1385   :  { %v5448_v25 = vpop.f32.mrf.mxu1 }
0x1386   :  { %v3913_v57 = vadd.f32 %v5448_v25, %v7476_v59  ;;  %v4742_v25 = vld [vmem:[%s7726_s11 + $0x20] sm:$0xff] }
0x1387   :  { %v3883_v39 = vpop.f32.mrf.mxu1  ;;  %5461 = vmatprep.subr.mxu1 %v4742_v25 }
0x1388   :  { %v3919_v50 = vadd.f32 %v3913_v57, %v6843_v23  ;;  %v3912_v42 = vadd.f32 %v3883_v39, %v7478_v9  ;;  %5462 = vmatpush3.msra.mxu1 %v4742_v25  ;;  %v4754_v25 = vld [vmem:[%s7728_s13 + $0x80] sm:$0xff] }
0x138a   :  { %v3918_v32 = vadd.f32 %v3912_v42, %v6846_v55  ;;  %v3933_v16 = vadd.f32 %v4737_v38, %v3919_v50  ;;  %v5451_v61 = vpop.f32.mrf.mxu1 }
0x138b   :  { %v3915_v48 = vadd.f32 %v5451_v61, %v7480_v62 }
0x138c   :  { %v3945_v41 = vsel %vm198_vm1, %v3933_v16, 0.0  ;;  %v3932_v10 = vadd.f32 %v4737_v38, %v3918_v32  ;;  %v3893_v3 = vpop.f32.mrf.mxu1 }
0x138d   :  { %3946 = vadd.xlane.f32.xlu1 %v3945_v41  ;;  %v3921_v59 = vadd.f32 %v3915_v48, %v6853_v19  ;;  %v3914_v27 = vadd.f32 %v3893_v3, %v7482_v54 }
0x138e   :  { %v3942_v11 = vsel %vm198_vm1, %v3932_v10, 0.0  ;;  %v5454_v23 = vpop.f32.mrf.mxu1 }
0x138f   :  { %3943 = vadd.xlane.f32.xlu0 %v3942_v11  ;;  %v7536_v9 = vadd.f32 %v4737_v38, %v3921_v59  ;;  %v3920_v55 = vadd.f32 %v3914_v27, %v6856_v45  ;;  %v3917_v18 = vadd.f32 %v5454_v23, %v7484_v24 }
0x1390   :  { %v3903_v62 = vpop.f32.mrf.mxu1 }
0x1391   :  { %v7540_v26 = vadd.f32 %v4737_v38, %v3920_v55  ;;  %v3923_v34 = vadd.f32 %v3917_v18, %v6863_v7  ;;  %v3916_v22 = vadd.f32 %v3903_v62, %v7486_v5  ;;  %v3951_v19 = vsel %vm198_vm1, %v7536_v9, 0.0 }
0x1393   :  { %3952 = vadd.xlane.f32.xlu0 %v3951_v19  ;;  %v7546_v54 = vadd.f32 %v4737_v38, %v3923_v34  ;;  %v3922_v36 = vadd.f32 %v3916_v22, %v6866_v2  ;;  %v3948_v24 = vsel %vm198_vm1, %v7540_v26, 0.0  ;;  %v4740_v34 = vld [vmem:[%s7724_s9 + $0x1] ss:$0 sm:$0xff]  ;;  %s5818_s9 = scalar_lea.vmem %s4538_s26, 512 }
0x1394   :  { %p5819_p0 = scmp.ne.s32.totalorder %s4538_s26, %s5818_s9  ;;  %p5824_p2 = scmp.lt.s32.totalorder %s5818_s9, %s5818_s9 }
0x1395   :  { %v7549_v20 = vadd.f32 %v4737_v38, %v3922_v36  ;;  %v3957_v45 = vsel %vm198_vm1, %v7546_v54, 0.0 }
0x1396   :  { %3958 = vadd.xlane.f32.xlu1 %v3957_v45  ;;  %p5825_p3 = por %p5824_p2, %p5823_p1 }
0x1397   :  { %3949 = vadd.xlane.f32.xlu0 %v3948_v24  ;;  %v3954_v7 = vsel %vm198_vm1, %v7549_v20, 0.0  ;;  %v4741_v24 = vld [vmem:[%s7725_s10 + $0x1] ss:$0 sm:$0xff] }
0x1398   :  { %p5826_p4 = pnand %p5825_p3, %p5819_p0 }
0x139b   :  { %3955 = vadd.xlane.f32.xlu0 %v3954_v7 }
0x1416   :  { %v3947_v5 = vpop.xlane.xlu1 %3946 }
0x1417   :  { %v3961_v49 = vmul.f32 0.03125, %v3947_v5 }
0x1418   :  { %v3944_v12 = vpop.xlane.xlu0 %3943 }
0x1419   :  { %v7557_v21 = vsub.f32 %v3933_v16, %v3961_v49  ;;  %v3960_v2 = vmul.f32 0.03125, %v3944_v12 }
0x141b   :  { %v7559_v52 = vsub.f32 %v3932_v10, %v3960_v2  ;;  %v3973_v0 = vmul.f32 %v7557_v21, %v7557_v21 }
0x141c   :  { %v3953_v8 = vpop.xlane.xlu0 %3952 }
0x141d   :  { %v3963_v56 = vmul.f32 0.03125, %v3953_v8  ;;  %v3981_v17 = vsel %vm198_vm1, %v3973_v0, 0.0  ;;  %v3972_v44 = vmul.f32 %v7559_v52, %v7559_v52 }
0x141e   :  { %3982 = vadd.xlane.f32.xlu1 %v3981_v17 }
0x141f   :  { %v7567_v35 = vsub.f32 %v7536_v9, %v3963_v56  ;;  %v3978_v58 = vsel %vm198_vm1, %v3972_v44, 0.0  ;;  %v3959_v6 = vpop.xlane.xlu1 %3958 }
0x1420   :  { %v3950_v13 = vpop.xlane.xlu0 %3949  ;;  %3979 = vadd.xlane.f32.xlu0 %v3978_v58  ;;  %v3965_v33 = vmul.f32 0.03125, %v3959_v6 }
0x1421   :  { %v3962_v40 = vmul.f32 0.03125, %v3950_v13  ;;  %v3975_v53 = vmul.f32 %v7567_v35, %v7567_v35 }
0x1422   :  { %v7573_v47 = vsub.f32 %v7546_v54, %v3965_v33 }
0x1423   :  { %v7576_v30 = vsub.f32 %v7540_v26, %v3962_v40  ;;  %v3987_v28 = vsel %vm198_vm1, %v3975_v53, 0.0 }
0x1424   :  { %3988 = vadd.xlane.f32.xlu1 %v3987_v28  ;;  %v3956_v1 = vpop.xlane.xlu0 %3955  ;;  %v3977_v60 = vmul.f32 %v7573_v47, %v7573_v47  ;;  %v4767_v28 = vld [vmem:[%s7728_s13 + $0xe8] sm:$0xff] }
0x1425   :  { %v3964_v51 = vmul.f32 0.03125, %v3956_v1  ;;  %v3974_v31 = vmul.f32 %v7576_v30, %v7576_v30  ;;  %v4766_v1 = vld [vmem:[%s7728_s13 + $0xe0] sm:$0xff] }
0x1426   :  { %v3993_v46 = vsel %vm198_vm1, %v3977_v60, 0.0  ;;  %v4764_v60 = vld [vmem:[%s7728_s13 + $0xd0] sm:$0xff] }
0x1427   :  { %v7584_v15 = vsub.f32 %v7549_v20, %v3964_v51  ;;  %v3984_v14 = vsel %vm198_vm1, %v3974_v31, 0.0  ;;  %v4765_v51 = vld [vmem:[%s7728_s13 + $0xd8] sm:$0xff]  ;;  %v4763_v31 = vld [vmem:[%s7728_s13 + $0xc8] sm:$0xff] }
0x1428   :  { %3994 = vadd.xlane.f32.xlu1 %v3993_v46  ;;  %3985 = vadd.xlane.f32.xlu0 %v3984_v14  ;;  %v4761_v46 = vld [vmem:[%s7728_s13 + $0xb8] sm:$0xff]  ;;  %v4760_v14 = vld [vmem:[%s7728_s13 + $0xb0] sm:$0xff] }
0x1429   :  { %v3976_v63 = vmul.f32 %v7584_v15, %v7584_v15 }
0x142b   :  { %v3990_v43 = vsel %vm198_vm1, %v3976_v63, 0.0  ;;  %v4759_v63 = vld [vmem:[%s7728_s13 + $0xa8] sm:$0xff] }
0x142c   :  { %3991 = vadd.xlane.f32.xlu0 %v3990_v43  ;;  %v4758_v43 = vld [vmem:[%s7728_s13 + $0xa0] sm:$0xff] }
0x14a7   :  { %v3983_v57 = vpop.xlane.xlu1 %3982 }
0x14a8   :  { %v3997_v39 = vmul.f32 0.03125, %v3983_v57  ;;  %v4747_v57 = vld [vmem:[%s7727_s12 + $0x1] ss:$0 sm:$0xff] }
0x14a9   :  { %v3980_v38 = vpop.xlane.xlu0 %3979 }
0x14aa   :  { %v4003_v50 = vadd.f32 1e-05, %v3997_v39  ;;  %v3996_v42 = vmul.f32 0.03125, %v3980_v38 }
0x14ac   :  { %5780 = vrsqrt.f32 %v4003_v50  ;;  %v4002_v32 = vadd.f32 1e-05, %v3996_v42 }
0x14ad   :  { %v3989_v16 = vpop.xlane.xlu1 %3988 }
0x14ae   :  { %5782 = vrsqrt.f32 %v4002_v32  ;;  %v3999_v61 = vmul.f32 0.03125, %v3989_v16 }
0x14b0   :  { %v4005_v48 = vadd.f32 1e-05, %v3999_v61 }
0x14b1   :  { %v3995_v41 = vpop.xlane.xlu1 %3994  ;;  %v3986_v10 = vpop.xlane.xlu0 %3985 }
0x14b2   :  { %5784 = vrsqrt.f32 %v4005_v48  ;;  %v4001_v3 = vmul.f32 0.03125, %v3995_v41  ;;  %v3998_v59 = vmul.f32 0.03125, %v3986_v10 }
0x14b4   :  { %v4007_v27 = vadd.f32 1e-05, %v4001_v3  ;;  %v4004_v11 = vadd.f32 1e-05, %v3998_v59 }
0x14b5   :  { %v3992_v23 = vpop.xlane.xlu0 %3991 }
0x14b6   :  { %5786 = vrsqrt.f32 %v4007_v27  ;;  %v4000_v55 = vmul.f32 0.03125, %v3992_v23 }
0x14b7   :  { %5788 = vrsqrt.f32 %v4004_v11 }
0x14b8   :  { %v4006_v18 = vadd.f32 1e-05, %v4000_v55 }
0x14b9   :  { %v5781_v62 = vpop.eup %5780 }
0x14ba   :  { %v4015_v22 = vmul.f32 %v5781_v62, %v7557_v21  ;;  %5790 = vrsqrt.f32 %v4006_v18 }
0x14bb   :  { %v5783_v19 = vpop.eup %5782 }
0x14bc   :  { %v4014_v36 = vmul.f32 %v5783_v19, %v7559_v52  ;;  %v4027_v45 = vmul.f32 %v4740_v34, %v4015_v22 }
0x14be   :  { %v4026_v7 = vmul.f32 %v4740_v34, %v4014_v36  ;;  %v4039_v12 = vadd.f32 %v4741_v24, %v4027_v45 }
0x14bf   :  { %v5785_v5 = vpop.eup %5784 }
0x14c0   :  { %v4038_v49 = vadd.f32 %v4741_v24, %v4026_v7  ;;  %v4017_v2 = vmul.f32 %v5785_v5, %v7567_v35 }
0x14c2   :  { %5463 = vmatprep.mubr.msk.f32.mxu1 %vm198_vm1, %v4038_v49  ;;  %v4029_v52 = vmul.f32 %v4740_v34, %v4017_v2 }
0x14c3   :  { %v5787_v0 = vpop.eup %5786  ;;  %5464 = vmatmul.mubr.msk.f32.vlgmr.msra.gmra.mxu1 %vm198_vm1, %v4039_v12 }
0x14c4   :  { %v5789_v21 = vpop.eup %5788  ;;  %v4019_v56 = vmul.f32 %v5787_v0, %v7573_v47  ;;  %v4041_v13 = vadd.f32 %v4741_v24, %v4029_v52  ;;  %v4769_v47 = vld [vmem:[%s7728_s13 + $0xf8] sm:$0xff] }
0x14c5   :  { %v4016_v8 = vmul.f32 %v5789_v21, %v7576_v30  ;;  %5472 = vmatprep.subr.mxu0 %v4769_v47  ;;  %v4768_v30 = vld [vmem:[%s7728_s13 + $0xf0] sm:$0xff] }
0x14c6   :  { %v4031_v40 = vmul.f32 %v4740_v34, %v4019_v56  ;;  %5473 = vmatpush3.msra.mxu0 %v4769_v47 }
0x14c7   :  { %v5791_v17 = vpop.eup %5790  ;;  %v4028_v44 = vmul.f32 %v4740_v34, %v4016_v8  ;;  %5474 = vmatprep.subr.mxu0 %v4768_v30 }
0x14c8   :  { %v4018_v58 = vmul.f32 %v5791_v17, %v7584_v15  ;;  %v4043_v53 = vadd.f32 %v4741_v24, %v4031_v40  ;;  %5475 = vmatpush3.msra.mxu0 %v4768_v30  ;;  %v4762_v15 = vld [vmem:[%s7728_s13 + $0xc0] sm:$0xff] }
0x14c9   :  { %v4040_v6 = vadd.f32 %v4741_v24, %v4028_v44  ;;  %5476 = vmatprep.subr.mxu0 %v4767_v28 }
0x14ca   :  { %v4030_v33 = vmul.f32 %v4740_v34, %v4018_v58  ;;  %5477 = vmatpush3.msra.mxu0 %v4767_v28 }
0x14cb   :  { %5466 = vmatprep.mubr.msk.f32.mxu1 %vm198_vm1, %v4040_v6  ;;  %5478 = vmatprep.subr.mxu0 %v4766_v1 }
0x14cc   :  { %5467 = vmatmul.mubr.msk.f32.gmra.mxu1 %vm198_vm1, %v4041_v13  ;;  %v4042_v35 = vadd.f32 %v4741_v24, %v4030_v33  ;;  %5479 = vmatpush3.msra.mxu0 %v4766_v1 }
0x14cd   :  { %5480 = vmatprep.subr.mxu0 %v4765_v51 }
0x14ce   :  { %5469 = vmatprep.mubr.msk.f32.mxu1 %vm198_vm1, %v4042_v35  ;;  %5481 = vmatpush3.msra.mxu0 %v4765_v51 }
0x14cf   :  { %5482 = vmatprep.subr.mxu0 %v4764_v60 }
0x14d0   :  { %5470 = vmatmul.mubr.msk.f32.gmra.mxu1 %vm198_vm1, %v4043_v53  ;;  %5483 = vmatpush3.msra.mxu0 %v4764_v60 }
0x14d1   :  { %5484 = vmatprep.subr.mxu0 %v4763_v31 }
0x14d2   :  { %5485 = vmatpush3.msra.mxu0 %v4763_v31 }
0x14d3   :  { %5486 = vmatprep.subr.mxu0 %v4762_v15 }
0x14d4   :  { %5487 = vmatpush3.msra.mxu0 %v4762_v15 }
0x14d5   :  { %5488 = vmatprep.subr.mxu0 %v4761_v46 }
0x14d6   :  { %5489 = vmatpush3.msra.mxu0 %v4761_v46 }
0x14d7   :  { %5490 = vmatprep.subr.mxu0 %v4760_v14 }
0x14d8   :  { %5491 = vmatpush3.msra.mxu0 %v4760_v14 }
0x14d9   :  { %5492 = vmatprep.subr.mxu0 %v4759_v63 }
0x14da   :  { %5493 = vmatpush3.msra.mxu0 %v4759_v63 }
0x14db   :  { %5494 = vmatprep.subr.mxu0 %v4758_v43 }
0x14dc   :  { %5495 = vmatpush3.msra.mxu0 %v4758_v43 }
0x14dd   :  { %5496 = vmatprep.subr.mxu0 %v4757_v4 }
0x14de   :  { %5497 = vmatpush3.msra.mxu0 %v4757_v4 }
0x14df   :  { %5498 = vmatprep.subr.mxu0 %v4756_v29 }
0x14e0   :  { %5499 = vmatpush3.msra.mxu0 %v4756_v29 }
0x14e1   :  { %5500 = vmatprep.subr.mxu0 %v4755_v37 }
0x14e2   :  { %5501 = vmatpush3.msra.mxu0 %v4755_v37 }
0x14e3   :  { %5502 = vmatprep.subr.mxu0 %v4754_v25 }
0x14e4   :  { %5503 = vmatpush3.msra.mxu0 %v4754_v25 }
0x1583   :  { %v5465_v39 = vpop.f32.mrf.mxu1 }
0x1584   :  { %v4147_v38 = vadd.f32 %v5465_v39, %v4747_v57 }
0x1585   :  { %v4141_v50 = vpop.f32.mrf.mxu1 }
0x1586   :  { %v4171_v42 = vmul.f32 %v4147_v38, %v4147_v38  ;;  %v4142_v32 = vadd.f32 %v4747_v57, %v4141_v50 }
0x1588   :  { %v4177_v16 = vmul.f32 %v4171_v42, %v4147_v38  ;;  %v4170_v61 = vmul.f32 %v4142_v32, %v4142_v32 }
0x158a   :  { %v4183_v48 = vmul.f32 0.044715, %v4177_v16  ;;  %v4176_v41 = vmul.f32 %v4170_v61, %v4142_v32 }
0x158c   :  { %v4189_v10 = vadd.f32 %v4183_v48, %v4147_v38  ;;  %v4182_v3 = vmul.f32 0.044715, %v4176_v41  ;;  %v5468_v59 = vpop.f32.mrf.mxu1  ;;  %v4771_v41 = vld [vmem:[%s7758_s28 + $0x1] ss:$0 sm:$0xff] }
0x158d   :  { %v4157_v27 = vadd.f32 %v5468_v59, %v4747_v57 }
0x158e   :  { %v4195_v11 = vmul.f32 0.7978846, %v4189_v10  ;;  %v4188_v23 = vadd.f32 %v4182_v3, %v4142_v32  ;;  %v4151_v55 = vpop.f32.mrf.mxu1 }
0x158f   :  { %v4173_v18 = vmul.f32 %v4157_v27, %v4157_v27  ;;  %v4152_v62 = vadd.f32 %v4747_v57, %v4151_v55 }
0x1590   :  { %5792 = vtanh.f32 %v4195_v11  ;;  %v4194_v34 = vmul.f32 0.7978846, %v4188_v23  ;;  %v5471_v22 = vpop.f32.mrf.mxu1 }
0x1591   :  { %v4179_v19 = vmul.f32 %v4173_v18, %v4157_v27  ;;  %v4172_v36 = vmul.f32 %v4152_v62, %v4152_v62  ;;  %v4167_v45 = vadd.f32 %v5471_v22, %v4747_v57 }
0x1592   :  { %5794 = vtanh.f32 %v4194_v34  ;;  %v4161_v24 = vpop.f32.mrf.mxu1 }
0x1593   :  { %v4185_v7 = vmul.f32 0.044715, %v4179_v19  ;;  %v4178_v5 = vmul.f32 %v4172_v36, %v4152_v62  ;;  %v4175_v49 = vmul.f32 %v4167_v45, %v4167_v45  ;;  %v4162_v12 = vadd.f32 %v4747_v57, %v4161_v24 }
0x1595   :  { %v4191_v2 = vadd.f32 %v4185_v7, %v4157_v27  ;;  %v4184_v0 = vmul.f32 0.044715, %v4178_v5  ;;  %v4181_v21 = vmul.f32 %v4175_v49, %v4167_v45  ;;  %v4174_v8 = vmul.f32 %v4162_v12, %v4162_v12 }
0x1597   :  { %v4197_v52 = vmul.f32 0.7978846, %v4191_v2  ;;  %v4190_v56 = vadd.f32 %v4184_v0, %v4152_v62  ;;  %v4187_v17 = vmul.f32 0.044715, %v4181_v21  ;;  %v4180_v44 = vmul.f32 %v4174_v8, %v4162_v12 }
0x1599   :  { %5796 = vtanh.f32 %v4197_v52  ;;  %v4196_v58 = vmul.f32 0.7978846, %v4190_v56  ;;  %v4193_v6 = vadd.f32 %v4187_v17, %v4167_v45  ;;  %v4186_v13 = vmul.f32 0.044715, %v4180_v44 }
0x159b   :  { %5798 = vtanh.f32 %v4196_v58  ;;  %v4199_v33 = vmul.f32 0.7978846, %v4193_v6  ;;  %v4192_v40 = vadd.f32 %v4186_v13, %v4162_v12 }
0x159d   :  { %v5793_v35 = vpop.eup %5792  ;;  %5800 = vtanh.f32 %v4199_v33  ;;  %v4198_v53 = vmul.f32 0.7978846, %v4192_v40 }
0x159e   :  { %v4207_v47 = vadd.f32 1.0, %v5793_v35  ;;  %v4423_v35 = vld [vmem:[%s7732_s17 + $0x18] sm:$0xff] }
0x159f   :  { %v5795_v30 = vpop.eup %5794  ;;  %5802 = vtanh.f32 %v4198_v53  ;;  %v4422_v53 = vld [vmem:[%s7732_s17 + $0x10] sm:$0xff]  ;;  %5513 = vmatprep.subr.mxu1 %v4423_v35 }
0x15a0   :  { %v4206_v28 = vadd.f32 1.0, %v5795_v30  ;;  %v4213_v1 = vmul.f32 0.5, %v4207_v47  ;;  %5514 = vmatpush3.msra.mxu1 %v4423_v35  ;;  %v4421_v47 = vld [vmem:[%s7732_s17 + $0x8] sm:$0xff]  ;;  %v4420_v30 = vld [vmem:[%s7732_s17] sm:$0xff] }
0x15a1   :  { %5515 = vmatprep.subr.mxu1 %v4422_v53 }
0x15a2   :  { %v4212_v51 = vmul.f32 0.5, %v4206_v28  ;;  %v4219_v31 = vmul.f32 %v4213_v1, %v4147_v38  ;;  %5516 = vmatpush3.msra.mxu1 %v4422_v53 }
0x15a3   :  { %5517 = vmatprep.subr.mxu1 %v4421_v47 }
0x15a4   :  { %v4218_v60 = vmul.f32 %v4212_v51, %v4142_v32  ;;  %5518 = vmatpush3.msra.mxu1 %v4421_v47 }
0x15a5   :  { %5519 = vmatprep.subr.mxu1 %v4420_v30 }
0x15a6   :  { %v5797_v15 = vpop.eup %5796  ;;  %5504 = vmatprep.mubr.f32.mxu0 %v4218_v60  ;;  %5520 = vmatpush3.msra.mxu1 %v4420_v30 }
0x15a7   :  { %5505 = vmatmul.mubr.f32.vlgmr.msra.gmra.mxu0 %v4219_v31  ;;  %v4209_v46 = vadd.f32 1.0, %v5797_v15 }
0x15a8   :  { %v5799_v14 = vpop.eup %5798 }
0x15a9   :  { %v4208_v63 = vadd.f32 1.0, %v5799_v14  ;;  %v4215_v4 = vmul.f32 0.5, %v4209_v46 }
0x15aa   :  { %v5801_v43 = vpop.eup %5800 }
0x15ab   :  { %v4214_v29 = vmul.f32 0.5, %v4208_v63  ;;  %v4211_v37 = vadd.f32 1.0, %v5801_v43  ;;  %v4221_v50 = vmul.f32 %v4215_v4, %v4157_v27 }
0x15ac   :  { %v5803_v25 = vpop.eup %5802 }
0x15ad   :  { %v4220_v57 = vmul.f32 %v4214_v29, %v4152_v62  ;;  %v4210_v39 = vadd.f32 1.0, %v5803_v25  ;;  %v4217_v42 = vmul.f32 0.5, %v4211_v37 }
0x15af   :  { %5507 = vmatprep.mubr.f32.mxu0 %v4220_v57  ;;  %v4216_v16 = vmul.f32 0.5, %v4210_v39  ;;  %v4223_v38 = vmul.f32 %v4217_v42, %v4167_v45  ;;  %v4772_v57 = vld [vmem:[%s7730_s15] ss:$0 sm:$0xff] }
0x15b0   :  { %5508 = vmatmul.mubr.f32.gmra.mxu0 %v4221_v50 }
0x15b1   :  { %v4222_v32 = vmul.f32 %v4216_v16, %v4162_v12 }
0x15b3   :  { %5510 = vmatprep.mubr.f32.mxu0 %v4222_v32  ;;  %v4773_v32 = vld [vmem:[%s7731_s16] ss:$0 sm:$0xff] }
0x15b4   :  { %5511 = vmatmul.mubr.f32.gmra.mxu0 %v4223_v38 }
0x1667   :  { %v5506_v61 = vpop.f32.mrf.mxu0 }
0x1669   :  { %v4315_v48 = vpop.f32.mrf.mxu0 }
0x1670   :  { %v5509_v10 = vpop.f32.mrf.mxu0 }
0x1671   :  { %v4329_v3 = vadd.f32 %v5509_v10, %v4771_v41 }
0x1672   :  { %v4323_v59 = vpop.f32.mrf.mxu0 }
0x1673   :  { %v4343_v11 = vadd.f32 %v4329_v3, %v7536_v9  ;;  %v4324_v27 = vadd.f32 %v4771_v41, %v4323_v59 }
0x1674   :  { %v5512_v23 = vpop.f32.mrf.mxu0 }
0x1675   :  { %v4342_v55 = vadd.f32 %v4324_v27, %v7540_v26  ;;  %v4339_v18 = vadd.f32 %v5512_v23, %v4771_v41  ;;  %v4351_v62 = vsel %vm198_vm1, %v4343_v11, 0.0 }
0x1676   :  { %4352 = vadd.xlane.f32.xlu1 %v4351_v62  ;;  %v4333_v34 = vpop.f32.mrf.mxu0 }
0x1677   :  { %v4345_v22 = vadd.f32 %v4339_v18, %v7546_v54  ;;  %v4334_v19 = vadd.f32 %v4771_v41, %v4333_v34  ;;  %v4348_v36 = vsel %vm198_vm1, %v4342_v55, 0.0 }
0x1678   :  { %4349 = vadd.xlane.f32.xlu0 %v4348_v36 }
0x1679   :  { %v4344_v45 = vadd.f32 %v4334_v19, %v7549_v20  ;;  %v4357_v24 = vsel %vm198_vm1, %v4345_v22, 0.0 }
0x167a   :  { %4358 = vadd.xlane.f32.xlu1 %v4357_v24 }
0x167b   :  { %v4354_v9 = vsel %vm198_vm1, %v4344_v45, 0.0 }
0x167c   :  { %4355 = vadd.xlane.f32.xlu0 %v4354_v9 }
0x16ff   :  { %v4353_v26 = vpop.xlane.xlu1 %4352 }
0x1700   :  { %v4361_v7 = vmul.f32 0.03125, %v4353_v26 }
0x1701   :  { %v4350_v5 = vpop.xlane.xlu0 %4349 }
0x1702   :  { %v4365_v49 = vsub.f32 %v4343_v11, %v4361_v7  ;;  %v4360_v12 = vmul.f32 0.03125, %v4350_v5 }
0x1703   :  { %v4359_v2 = vpop.xlane.xlu1 %4358 }
0x1704   :  { %v4364_v0 = vsub.f32 %v4342_v55, %v4360_v12  ;;  %v4363_v54 = vmul.f32 0.03125, %v4359_v2  ;;  %v4369_v21 = vmul.f32 %v4365_v49, %v4365_v49  ;;  %v4774_v55 = vld [vmem:[%s7733_s18] ss:$0 sm:$0xff] }
0x1705   :  { %v4356_v8 = vpop.xlane.xlu0 %4355 }
0x1706   :  { %v4367_v52 = vsub.f32 %v4345_v22, %v4363_v54  ;;  %v4362_v56 = vmul.f32 0.03125, %v4356_v8  ;;  %v4375_v20 = vsel %vm198_vm1, %v4369_v21, 0.0  ;;  %v4368_v17 = vmul.f32 %v4364_v0, %v4364_v0 }
0x1707   :  { %4376 = vadd.xlane.f32.xlu1 %v4375_v20 }
0x1708   :  { %v4366_v44 = vsub.f32 %v4344_v45, %v4362_v56  ;;  %v4372_v58 = vsel %vm198_vm1, %v4368_v17, 0.0  ;;  %v4371_v6 = vmul.f32 %v4367_v52, %v4367_v52 }
0x1709   :  { %4373 = vadd.xlane.f32.xlu0 %v4372_v58 }
0x170a   :  { %v4381_v13 = vsel %vm198_vm1, %v4371_v6, 0.0  ;;  %v4370_v33 = vmul.f32 %v4366_v44, %v4366_v44 }
0x170b   :  { %4382 = vadd.xlane.f32.xlu1 %v4381_v13 }
0x170c   :  { %v4378_v40 = vsel %vm198_vm1, %v4370_v33, 0.0 }
0x170d   :  { %4379 = vadd.xlane.f32.xlu0 %v4378_v40 }
0x1790   :  { %v4377_v28 = vpop.xlane.xlu1 %4376 }
0x1791   :  { %v4385_v1 = vmul.f32 0.03125, %v4377_v28 }
0x1792   :  { %v4374_v51 = vpop.xlane.xlu0 %4373 }
0x1793   :  { %v4389_v60 = vadd.f32 1e-05, %v4385_v1  ;;  %v4384_v31 = vmul.f32 0.03125, %v4374_v51 }
0x1794   :  { %v4383_v15 = vpop.xlane.xlu1 %4382 }
0x1795   :  { %5804 = vrsqrt.f32 %v4389_v60  ;;  %v4388_v46 = vadd.f32 1e-05, %v4384_v31  ;;  %v4387_v14 = vmul.f32 0.03125, %v4383_v15 }
0x1796   :  { %v4380_v63 = vpop.xlane.xlu0 %4379 }
0x1797   :  { %5806 = vrsqrt.f32 %v4388_v46  ;;  %v4391_v43 = vadd.f32 1e-05, %v4387_v14  ;;  %v4386_v4 = vmul.f32 0.03125, %v4380_v63 }
0x1799   :  { %5808 = vrsqrt.f32 %v4391_v43  ;;  %v4390_v29 = vadd.f32 1e-05, %v4386_v4 }
0x179b   :  { %5810 = vrsqrt.f32 %v4390_v29 }
0x17a2   :  { %v5805_v37 = vpop.eup %5804 }
0x17a3   :  { %v4397_v25 = vmul.f32 %v5805_v37, %v4365_v49 }
0x17a4   :  { %v5807_v39 = vpop.eup %5806 }
0x17a5   :  { %v4396_v50 = vmul.f32 %v5807_v39, %v4364_v0  ;;  %v4407_v16 = vmul.f32 %v4772_v57, %v4397_v25 }
0x17a6   :  { %v5809_v42 = vpop.eup %5808 }
0x17a7   :  { %v4406_v38 = vmul.f32 %v4772_v57, %v4396_v50  ;;  %v4399_v61 = vmul.f32 %v5809_v42, %v4367_v52  ;;  %v4417_v3 = vadd.f32 %v4773_v32, %v4407_v16 }
0x17a8   :  { %v5811_v48 = vpop.eup %5810 }
0x17a9   :  { %v4416_v41 = vadd.f32 %v4773_v32, %v4406_v38  ;;  %v4398_v10 = vmul.f32 %v5811_v48, %v4366_v44  ;;  %v4409_v59 = vmul.f32 %v4772_v57, %v4399_v61 }
0x17ab   :  { %5521 = vmatprep.mubr.msk.f32.mxu1 %vm198_vm1, %v4416_v41  ;;  %v4408_v11 = vmul.f32 %v4772_v57, %v4398_v10  ;;  %v4419_v23 = vadd.f32 %v4773_v32, %v4409_v59 }
0x17ac   :  { %5522 = vmatmul.mubr.msk.f32.vlgmr.msra.gmra.mxu1 %vm198_vm1, %v4417_v3 }
0x17ad   :  { %v4418_v27 = vadd.f32 %v4773_v32, %v4408_v11 }
0x17af   :  { %5524 = vmatprep.mubr.msk.f32.mxu1 %vm198_vm1, %v4418_v27 }
0x17b0   :  { %5525 = vmatmul.mubr.msk.f32.gmra.mxu1 %vm198_vm1, %v4419_v23 }
0x186c   :  { %v5523_v18 = vpop.f32.mrf.mxu1 }
0x186d   :  { %v4515_v62 = vadd.f32 %v5523_v18, %v4774_v55 }
0x186e   :  { %v4509_v34 = vpop.f32.mrf.mxu1 }
0x186f   :  { %4529 = vst [vmem:[#allocation2 + $0x8] sm:$0xff] %v4515_v62  ;;  %v4510_v22 = vadd.f32 %v4774_v55, %v4509_v34 }
0x1870   :  { %v5526_v19 = vpop.f32.mrf.mxu1 }
0x1871   :  { %4528 = vst [vmem:[#allocation2] sm:$0xff] %v4510_v22  ;;  %v4525_v36 = vadd.f32 %v5526_v19, %v4774_v55 }
0x1872   :  { %v4519_v45 = vpop.f32.mrf.mxu1 }
0x1873   :  { %4531 = vst [vmem:[#allocation2 + $0x18] sm:$0xff] %v4525_v36  ;;  %v4520_v24 = vadd.f32 %v4774_v55, %v4519_v45 }
0x1875   :  { %4530 = vst [vmem:[#allocation2 + $0x10] sm:$0xff] %v4520_v24 }
0x1876   :  { %5829 = shalt.err (!%p5826_p4)
}
0x1877   :  { %s5851_s18 = smov 128   ;;  %s5852_s10 = smov 8  }
0x1878   :  { %4543 = dma.vmem_to_hbm [thread:$0]  %s4538_s26, 512, %s7734_s19, [#allocation3], %s5851_s18, %s5851_s18, %s5852_s10  }
0x1879   :  { %5838 = dma.done.wait [#allocation3], 512  }
0x187a   :  { %5839 = vsyncadd [#allocation3], 4294966784 }
0x187b   :  { %4547 = vsyncpa [#allocation3], 1 }

</bundles_post_ra>
